<compile_context>
chip_gen: v7x
topology: tpu7x:2x2x1
jax: 0.10.0
libtpu: 0.0.40
codegen_flags: <defaults>
</compile_context>

<pallas_src>
import functools

import jax
import jax.numpy as jnp
from jax.experimental import pallas as pl
from jax.experimental.pallas import tpu as pltpu


def _round_up(v: int, m: int) -> int:
    return (v + m - 1) // m * m


def _vmem_capacity_bytes() -> int:
    """Best-effort physical VMEM capacity query; conservative 64 MiB fallback."""
    try:
        info = pltpu.get_tpu_info()
        cap = getattr(info, "vmem_capacity_bytes", None)
        if cap:
            return int(cap)
    except Exception:
        pass
    return 64 * 1024 * 1024          # v7x per-TensorCore VMEM (worst case)


def _num_tensorcores() -> int:
    """Best-effort TensorCores-per-chip query; defaults to 1 (v5e/v6e-safe)."""
    # TODO(synk): widen attribute probing once TpuInfo exposes a stable field.
    try:
        info = pltpu.get_tpu_info()
        for name in ("num_tensorcores", "tensorcores_per_chip",
                     "num_tensor_cores", "tensorcore_count"):
            v = getattr(info, name, None)
            if isinstance(v, int) and v > 0:
                return v
    except Exception:
        pass
    return 1


def _lstm_recurrent_kernel(x2g_ref, wh_ref, h0_ref, c0_ref,
                           out_ref, hN_ref, cN_ref,
                           h_scr, c_scr,
                           *, t_total, t_chunk, mask_time, unroll):
    """One grid step processes `t_chunk` timesteps for one batch block."""
    chunk = pl.program_id(1)             # time-chunk axis (sequential)
    n_chunks = pl.num_programs(1)
    hp = h_scr.shape[1]                  # padded hidden dim (multiple of 128)

    # Initialize the carried state at the first time chunk of each batch block.
    @pl.when(chunk == 0)
    def _():
        h_scr[...] = h0_ref[...].astype(jnp.float32)
        c_scr[...] = c0_ref[...].astype(jnp.float32)

    wh = wh_ref[...]                     # (H_pad, 4*H_pad), bf16 or f32

    def run_steps(masked):
        def step(lt, _):
            h = h_scr[...]               # f32 (B_blk, H_pad)
            c = c_scr[...]
            # gates = x2g[t] + h @ Wh   (MXU matmul with f32 accumulation)
            gates = x2g_ref[lt].astype(jnp.float32) + jnp.dot(
                h.astype(wh.dtype), wh, preferred_element_type=jnp.float32)
            # chunk(4, dim=1): [input, forget, cell, output]; each slice is a
            # whole lane-aligned (B_blk, H_pad) tile.
            i_g = jax.nn.sigmoid(gates[:, 0 * hp:1 * hp])
            f_g = jax.nn.sigmoid(gates[:, 1 * hp:2 * hp])
            g_g = jnp.tanh(gates[:, 2 * hp:3 * hp])
            o_g = jax.nn.sigmoid(gates[:, 3 * hp:4 * hp])
            c_new = f_g * c + i_g * g_g
            h_new = o_g * jnp.tanh(c_new)
            if masked:
                # Freeze the state on padded tail timesteps (last chunk only)
                # so the carried / final state matches the unpadded recurrence.
                valid = (chunk * t_chunk + lt) < t_total
                c_new = jnp.where(valid, c_new, c)
                h_new = jnp.where(valid, h_new, h)
            out_ref[lt] = h_new.astype(out_ref.dtype)   # lane-dense store
            h_scr[...] = h_new
            c_scr[...] = c_new
            return 0
        jax.lax.fori_loop(0, t_chunk, step, 0, unroll=unroll)

    if mask_time:
        # Pay the per-step select only in the final (tail) chunk.
        @pl.when(chunk == n_chunks - 1)
        def _():
            run_steps(True)

        @pl.when(chunk != n_chunks - 1)
        def _():
            run_steps(False)
    else:
        run_steps(False)

    # Emit the final state on the last time chunk of this batch block.
    @pl.when(chunk == n_chunks - 1)
    def _():
        hN_ref[...] = h_scr[...].astype(hN_ref.dtype)
        cN_ref[...] = c_scr[...].astype(cN_ref.dtype)


def custom_lstm_forward(x, wx, bx, wh, h0, c0, *,
                        t_chunk=8, batch_block=None,
                        matmul_dtype=jnp.bfloat16, unroll=True):
    """x: (T, B, D); wx: (D, 4H); bx: (1, 4H); wh: (H, 4H); h0/c0: (B, H)."""
    T, B, D = x.shape
    H = wh.shape[0]
    assert wx.shape == (D, 4 * H) and bx.shape == (1, 4 * H)
    assert wh.shape == (H, 4 * H) and h0.shape == (B, H) and c0.shape == (B, H)

    use_bf16 = (jnp.dtype(matmul_dtype) == jnp.dtype(jnp.bfloat16))

    # ---- TPU-friendly padded shapes (per-gate hidden padding). ----
    h_pad = _round_up(H, 128)                    # lane-aligned gate slices
    sub_min = 16 if use_bf16 else 8              # bf16 min sublane tile is 16
    b_pad = _round_up(B, sub_min)

    # Batch-block split only when a second TensorCore is positively detected
    # (v7x); on single-TC chips (v5e/v6e) keep one batch block — splitting
    # there only shrinks the matmul M dim and adds grid-step overhead.
    n_tc = _num_tensorcores()
    if batch_block is None:
        if n_tc >= 2 and b_pad >= 2 * sub_min:
            b_blk = _round_up(pl.cdiv(b_pad, n_tc), sub_min)
        else:
            b_blk = b_pad
    else:
        b_blk = _round_up(min(batch_block, b_pad), sub_min)
    b_pad = _round_up(b_pad, b_blk)
    n_bblk = b_pad // b_blk
    g_pad = 4 * h_pad

    # ---- Generation-aware VMEM budgeting and t_chunk capping. ----
    vmem_cap = _vmem_capacity_bytes()
    vmem_limit = max(32 * 1024 * 1024,
                     min(vmem_cap * 3 // 4, vmem_cap - (8 << 20)))

    bytes_x2g = 2 if use_bf16 else 4
    bytes_wh = jnp.dtype(matmul_dtype).itemsize
    bytes_io = jnp.dtype(x.dtype).itemsize

    def _vmem_est(tc_, wh_bufs):
        return (tc_ * b_blk * g_pad * bytes_x2g * 2         # x2g (double-buffered)
                + h_pad * g_pad * bytes_wh * wh_bufs        # Wh
                + 2 * b_blk * h_pad * bytes_io * wh_bufs    # h0, c0
                + tc_ * b_blk * h_pad * bytes_io * 2        # output block
                + 2 * b_blk * h_pad * bytes_io * 2          # final h, c blocks
                + 2 * b_blk * h_pad * 4)                    # f32 carry scratch

    tc = max(1, min(int(t_chunk), T))
    while tc > 1 and _vmem_est(tc, 1) + (2 << 20) > vmem_limit:
        tc = max(1, tc // 2)

    t_padded = _round_up(T, tc)
    n_chunks = t_padded // tc
    mask_time = (t_padded != T)

    # ---- Pad the WEIGHTS per-gate (not the big activation tensor). ----
    wx_p = jnp.pad(wx.reshape(D, 4, H),
                   ((0, 0), (0, 0), (0, h_pad - H))).reshape(D, g_pad)
    bx_p = jnp.pad(bx.reshape(1, 4, H),
                   ((0, 0), (0, 0), (0, h_pad - H))).reshape(1, g_pad)
    wh_p = jnp.pad(wh.reshape(H, 4, H),
                   ((0, h_pad - H), (0, 0), (0, h_pad - H)))
    wh_p = wh_p.reshape(h_pad, g_pad).astype(matmul_dtype)

    # Pad x only on T / B (cheap) so the projection is produced pre-padded.
    if t_padded != T or b_pad != B:
        x_p = jnp.pad(x, ((0, t_padded - T), (0, b_pad - B), (0, 0)))
    else:
        x_p = x

    # ---- Hoisted, time-parallel input projection (one big matmul). ----
    x2g = jnp.einsum("tbd,dg->tbg", x_p, wx_p,
                     preferred_element_type=jnp.float32) + bx_p
    # Stream x2g in bf16 on the bf16 path (bias already added in f32);
    # keep f32 streaming for the f32 path (tight-tolerance correctness).
    x2g = x2g.astype(jnp.bfloat16 if use_bf16 else jnp.float32)

    h0_p = jnp.pad(h0, ((0, b_pad - B), (0, h_pad - H)))
    c0_p = jnp.pad(c0, ((0, b_pad - B), (0, h_pad - H)))

    kernel = functools.partial(
        _lstm_recurrent_kernel,
        t_total=T, t_chunk=tc, mask_time=mask_time, unroll=unroll)

    out_shapes = (
        jax.ShapeDtypeStruct((t_padded, b_pad, h_pad), x.dtype),  # output seq
        jax.ShapeDtypeStruct((b_pad, h_pad), x.dtype),            # final h
        jax.ShapeDtypeStruct((b_pad, h_pad), x.dtype),            # final c
    )

    def build_call(single_buffer):
        # Constant-index operands (Wh, h0, c0) never change across the time
        # axis — single-buffer them to reclaim VMEM (one Wh copy saved).
        const_kw = ({"pipeline_mode": pl.Buffered(buffer_count=1)}
                    if single_buffer else {})
        in_specs = [
            pl.BlockSpec((tc, b_blk, g_pad), lambda b, t: (t, b, 0)),          # x2g
            pl.BlockSpec((h_pad, g_pad), lambda b, t: (0, 0), **const_kw),     # Wh
            pl.BlockSpec((b_blk, h_pad), lambda b, t: (b, 0), **const_kw),     # h0
            pl.BlockSpec((b_blk, h_pad), lambda b, t: (b, 0), **const_kw),     # c0
        ]
        out_specs = [
            pl.BlockSpec((tc, b_blk, h_pad), lambda b, t: (t, b, 0)),          # out
            pl.BlockSpec((b_blk, h_pad), lambda b, t: (b, 0)),                 # h_N
            pl.BlockSpec((b_blk, h_pad), lambda b, t: (b, 0)),                 # c_N
        ]
        grid_spec = pltpu.PrefetchScalarGridSpec(
            num_scalar_prefetch=0,
            grid=(n_bblk, n_chunks),             # (batch blocks, time chunks)
            in_specs=in_specs,
            out_specs=out_specs,
            scratch_shapes=[
                pltpu.VMEM((b_blk, h_pad), jnp.float32),   # h carry
                pltpu.VMEM((b_blk, h_pad), jnp.float32),   # c carry
            ],
        )
        return pl.pallas_call(
            kernel,
            out_shape=out_shapes,
            grid_spec=grid_spec,
            compiler_params=pltpu.CompilerParams(
                # Batch blocks are independent (megacore-parallel on v7x);
                # the time-chunk axis is the sequential recurrence.
                dimension_semantics=("parallel", "arbitrary"),
                vmem_limit_bytes=int(vmem_limit),
            ),
        )

    try:
        out_p, h_n, c_n = build_call(True)(x2g, wh_p, h0_p, c0_p)
    except Exception:
        # Fallback if this JAX/Mosaic version rejects Buffered(1) specs.
        out_p, h_n, c_n = build_call(False)(x2g, wh_p, h0_p, c0_p)

    # Avoid the extra output copy when no padding was applied.
    if (t_padded, b_pad, h_pad) == (T, B, H):
        out = out_p
    else:
        out = out_p[:T, :B, :H]
    if (b_pad, h_pad) == (B, H):
        h_out, c_out = h_n, c_n
    else:
        h_out, c_out = h_n[:B, :H], c_n[:B, :H]
    return out, [h_out, c_out]


def _lstm_reference(x, wx, bx, wh, h0, c0):
    """Pure-JAX f32 reference mirroring the PyTorch forward (layer_norm=False)."""
    def step(carry, x_t):
        h, c = carry
        gates = x_t @ wx + bx[0] + h @ wh
        i_g, f_g, g_g, o_g = jnp.split(gates, 4, axis=1)
        c = jax.nn.sigmoid(f_g) * c + jax.nn.sigmoid(i_g) * jnp.tanh(g_g)
        h = jax.nn.sigmoid(o_g) * jnp.tanh(c)
        return (h, c), h

    (h, c), ys = jax.lax.scan(step, (h0, c0), x)
    return ys, h, c


if __name__ == "__main__":
    # Small shapes implied by the module's forward: (T, B, D), hidden H.
    T, B, D, H = 8, 2, 16, 32
    G = 4 * H

    key = jax.random.PRNGKey(0)
    k_x, k_wx, k_bx, k_wh, k_h, k_c = jax.random.split(key, 6)

    # Deterministic parameter init (~ torch.nn.Linear default range).
    wx = jax.random.uniform(k_wx, (D, G), jnp.float32,
                            minval=-1.0 / D ** 0.5, maxval=1.0 / D ** 0.5)
    bx = jax.random.uniform(k_bx, (1, G), jnp.float32,
                            minval=-1.0 / D ** 0.5, maxval=1.0 / D ** 0.5)
    wh = jax.random.uniform(k_wh, (H, G), jnp.float32,
                            minval=-1.0 / H ** 0.5, maxval=1.0 / H ** 0.5)

    x = jax.random.normal(k_x, (T, B, D), jnp.float32)
    # Exercise the non-None `state` path with a nonzero initial state.
    h0 = jax.random.normal(k_h, (B, H), jnp.float32) * 0.1
    c0 = jax.random.normal(k_c, (B, H), jnp.float32) * 0.1

    ref_out, ref_h, ref_c = _lstm_reference(x, wx, bx, wh, h0, c0)

    # 1) f32 recurrent matmul + uneven time chunk (exercises the last-chunk
    #    tail mask): must match the scan reference to tight tolerance.
    out, (h_n, c_n) = custom_lstm_forward(x, wx, bx, wh, h0, c0,
                                          t_chunk=3,
                                          matmul_dtype=jnp.float32)
    jax.block_until_ready((out, h_n, c_n))
    assert out.shape == (T, B, H)
    assert h_n.shape == (B, H) and c_n.shape == (B, H)
    assert jnp.allclose(out, ref_out, atol=1e-5, rtol=1e-5)
    assert jnp.allclose(h_n, ref_h, atol=1e-5, rtol=1e-5)
    assert jnp.allclose(c_n, ref_c, atol=1e-5, rtol=1e-5)

    # 2) default path (bf16 recurrent matmul + bf16-streamed x2g, f32
    #    accumulation / gate math): bf16-level tolerance vs. f32 reference.
    out_bf, (h_bf, c_bf) = custom_lstm_forward(x, wx, bx, wh, h0, c0,
                                               t_chunk=4)
    jax.block_until_ready((out_bf, h_bf, c_bf))
    assert jnp.allclose(out_bf, ref_out, atol=5e-2, rtol=5e-2)
    assert jnp.allclose(h_bf, ref_h, atol=5e-2, rtol=5e-2)
    assert jnp.allclose(c_bf, ref_c, atol=5e-2, rtol=5e-2)

    print("KERNEL_OK")
</pallas_src>

<mosaic_0001>
module attributes {stable_mosaic.version = 11 : i64} {
  func.func @_lstm_recurrent_kernel(%arg0: i32, %arg1: i32, %arg2: memref<3x8x512xf32, #tpu.memory_space<vmem>>, %arg3: memref<128x512xf32, #tpu.memory_space<vmem>>, %arg4: memref<8x128xf32, #tpu.memory_space<vmem>>, %arg5: memref<8x128xf32, #tpu.memory_space<vmem>>, %arg6: memref<3x8x128xf32, #tpu.memory_space<vmem>>, %arg7: memref<8x128xf32, #tpu.memory_space<vmem>>, %arg8: memref<8x128xf32, #tpu.memory_space<vmem>>, %arg9: memref<8x128xf32, #tpu.memory_space<vmem>>, %arg10: memref<8x128xf32, #tpu.memory_space<vmem>>) attributes {dimension_semantics = [#tpu.dimension_semantics<parallel>, #tpu.dimension_semantics<arbitrary>], iteration_bounds = array<i64: 1, 3>, scalar_prefetch = 0 : i64, scratch_operands = 2 : i64, tpu.core_type = #tpu.core_type<tc>, window_params = [{transform_indices = @transform_0, window_bounds = array<i64: 3, 8, 512>}, {pipeline_mode = #tpu.pipeline_mode<synchronous>, transform_indices = @transform_1, window_bounds = array<i64: 128, 512>}, {pipeline_mode = #tpu.pipeline_mode<synchronous>, transform_indices = @transform_2, window_bounds = array<i64: 8, 128>}, {pipeline_mode = #tpu.pipeline_mode<synchronous>, transform_indices = @transform_3, window_bounds = array<i64: 8, 128>}, {transform_indices = @transform_4, window_bounds = array<i64: 3, 8, 128>}, {transform_indices = @transform_5, window_bounds = array<i64: 8, 128>}, {transform_indices = @transform_6, window_bounds = array<i64: 8, 128>}]} {
    %c0_i32 = arith.constant 0 : i32
    %0 = arith.cmpi eq, %arg1, %c0_i32 : i32
    %1 = arith.extui %0 : i1 to i32
    %c0_i32_0 = arith.constant 0 : i32
    %2 = arith.cmpi ne, %1, %c0_i32_0 : i32
    scf.if %2 {
      %c0_7 = arith.constant 0 : index
      %c0_8 = arith.constant 0 : index
      %13 = vector.load %arg4[%c0_7, %c0_8] : memref<8x128xf32, #tpu.memory_space<vmem>>, vector<8x128xf32>
      %c0_9 = arith.constant 0 : index
      %c0_10 = arith.constant 0 : index
      %14 = vector.load %arg9[%c0_9, %c0_10] : memref<8x128xf32, #tpu.memory_space<vmem>>, vector<8x128xf32>
      tpu.vector_store %arg9[%c0_9, %c0_10], %13 {strides = array<i32>} : memref<8x128xf32, #tpu.memory_space<vmem>>, vector<8x128xf32>,
      %c0_11 = arith.constant 0 : index
      %c0_12 = arith.constant 0 : index
      %15 = vector.load %arg5[%c0_11, %c0_12] : memref<8x128xf32, #tpu.memory_space<vmem>>, vector<8x128xf32>
      %c0_13 = arith.constant 0 : index
      %c0_14 = arith.constant 0 : index
      %16 = vector.load %arg10[%c0_13, %c0_14] : memref<8x128xf32, #tpu.memory_space<vmem>>, vector<8x128xf32>
      tpu.vector_store %arg10[%c0_13, %c0_14], %15 {strides = array<i32>} : memref<8x128xf32, #tpu.memory_space<vmem>>, vector<8x128xf32>,
    } else {
    }
    %c0 = arith.constant 0 : index
    %c0_1 = arith.constant 0 : index
    %3 = vector.load %arg3[%c0, %c0_1] : memref<128x512xf32, #tpu.memory_space<vmem>>, vector<128x512xf32>
    %c2_i32 = arith.constant 2 : i32
    %4 = arith.cmpi eq, %arg1, %c2_i32 : i32
    %5 = arith.extui %4 : i1 to i32
    %c0_i32_2 = arith.constant 0 : i32
    %6 = arith.cmpi ne, %5, %c0_i32_2 : i32
    scf.if %6 {
      %c0_i32_7 = arith.constant 0 : i32
      %c0_8 = arith.constant 0 : index
      %c0_9 = arith.constant 0 : index
      %13 = vector.load %arg9[%c0_8, %c0_9] : memref<8x128xf32, #tpu.memory_space<vmem>>, vector<8x128xf32>
      %c0_10 = arith.constant 0 : index
      %c0_11 = arith.constant 0 : index
      %14 = vector.load %arg10[%c0_10, %c0_11] : memref<8x128xf32, #tpu.memory_space<vmem>>, vector<8x128xf32>
      %15 = arith.index_cast %c0_i32_7 : i32 to index
      %c0_12 = arith.constant 0 : index
      %c0_13 = arith.constant 0 : index
      %16 = vector.load %arg2[%15, %c0_12, %c0_13] : memref<3x8x512xf32, #tpu.memory_space<vmem>>, vector<1x8x512xf32>
      %17 = vector.shape_cast %16 : vector<1x8x512xf32> to vector<8x512xf32>
      %cst = arith.constant dense<0.000000e+00> : vector<8x512xf32>
      %18 = tpu.matmul %13, %3, %cst {dimension_numbers = #tpu.dot_dimension_numbers<[1], [0], [0], [1], [0, 0, 1, 1], [], []>} : vector<8x128xf32>, vector<128x512xf32>, vector<8x512xf32> -> vector<8x512xf32>
      %19 = arith.addf %17, %18 : vector<8x512xf32>
      %20 = vector.extract_strided_slice %19 {offsets = [0, 0], sizes = [8, 128], strides = [1, 1]} : vector<8x512xf32> to vector<8x128xf32>
      %21 = arith.negf %20 : vector<8x128xf32>
      %22 = math.exp %21 : vector<8x128xf32>
      %cst_14 = arith.constant 1.000000e+00 : f32
      %23 = vector.broadcast %cst_14 : f32 to vector<8x128xf32>
      %24 = arith.addf %23, %22 : vector<8x128xf32>
      %25 = arith.divf %23, %24 : vector<8x128xf32>
      %26 = vector.extract_strided_slice %19 {offsets = [0, 128], sizes = [8, 128], strides = [1, 1]} : vector<8x512xf32> to vector<8x128xf32>
      %27 = arith.negf %26 : vector<8x128xf32>
      %28 = math.exp %27 : vector<8x128xf32>
      %cst_15 = arith.constant 1.000000e+00 : f32
      %29 = vector.broadcast %cst_15 : f32 to vector<8x128xf32>
      %30 = arith.addf %29, %28 : vector<8x128xf32>
      %31 = arith.divf %29, %30 : vector<8x128xf32>
      %32 = vector.extract_strided_slice %19 {offsets = [0, 256], sizes = [8, 128], strides = [1, 1]} : vector<8x512xf32> to vector<8x128xf32>
      %33 = math.tanh %32 : vector<8x128xf32>
      %34 = vector.extract_strided_slice %19 {offsets = [0, 384], sizes = [8, 128], strides = [1, 1]} : vector<8x512xf32> to vector<8x128xf32>
      %35 = arith.negf %34 : vector<8x128xf32>
      %36 = math.exp %35 : vector<8x128xf32>
      %cst_16 = arith.constant 1.000000e+00 : f32
      %37 = vector.broadcast %cst_16 : f32 to vector<8x128xf32>
      %38 = arith.addf %37, %36 : vector<8x128xf32>
      %39 = arith.divf %37, %38 : vector<8x128xf32>
      %40 = arith.mulf %31, %14 : vector<8x128xf32>
      %41 = arith.mulf %25, %33 : vector<8x128xf32>
      %42 = arith.addf %40, %41 : vector<8x128xf32>
      %43 = math.tanh %42 : vector<8x128xf32>
      %44 = arith.mulf %39, %43 : vector<8x128xf32>
      %c3_i32 = arith.constant 3 : i32
      %45 = arith.muli %arg1, %c3_i32 : i32
      %46 = arith.addi %45, %c0_i32_7 : i32
      %c8_i32 = arith.constant 8 : i32
      %47 = arith.cmpi slt, %46, %c8_i32 : i32
      %48 = arith.select %47, %42, %14 : vector<8x128xf32>
      %49 = arith.select %47, %44, %13 : vector<8x128xf32>
      %50 = arith.index_cast %c0_i32_7 : i32 to index
      %c0_17 = arith.constant 0 : index
      %c0_18 = arith.constant 0 : index
      %51 = vector.load %arg6[%50, %c0_17, %c0_18] : memref<3x8x128xf32, #tpu.memory_space<vmem>>, vector<1x8x128xf32>
      %52 = vector.shape_cast %51 : vector<1x8x128xf32> to vector<8x128xf32>
      %53 = vector.shape_cast %49 : vector<8x128xf32> to vector<1x8x128xf32>
      tpu.vector_store %arg6[%50, %c0_17, %c0_18], %53 {strides = array<i32>} : memref<3x8x128xf32, #tpu.memory_space<vmem>>, vector<1x8x128xf32>,
      %c0_19 = arith.constant 0 : index
      %c0_20 = arith.constant 0 : index
      %54 = vector.load %arg9[%c0_19, %c0_20] : memref<8x128xf32, #tpu.memory_space<vmem>>, vector<8x128xf32>
      tpu.vector_store %arg9[%c0_19, %c0_20], %49 {strides = array<i32>} : memref<8x128xf32, #tpu.memory_space<vmem>>, vector<8x128xf32>,
      %c0_21 = arith.constant 0 : index
      %c0_22 = arith.constant 0 : index
      %55 = vector.load %arg10[%c0_21, %c0_22] : memref<8x128xf32, #tpu.memory_space<vmem>>, vector<8x128xf32>
      tpu.vector_store %arg10[%c0_21, %c0_22], %48 {strides = array<i32>} : memref<8x128xf32, #tpu.memory_space<vmem>>, vector<8x128xf32>,
      %c1_i32 = arith.constant 1 : i32
      %c0_23 = arith.constant 0 : index
      %c0_24 = arith.constant 0 : index
      %56 = vector.load %arg9[%c0_23, %c0_24] : memref<8x128xf32, #tpu.memory_space<vmem>>, vector<8x128xf32>
      %c0_25 = arith.constant 0 : index
      %c0_26 = arith.constant 0 : index
      %57 = vector.load %arg10[%c0_25, %c0_26] : memref<8x128xf32, #tpu.memory_space<vmem>>, vector<8x128xf32>
      %58 = arith.index_cast %c1_i32 : i32 to index
      %c0_27 = arith.constant 0 : index
      %c0_28 = arith.constant 0 : index
      %59 = vector.load %arg2[%58, %c0_27, %c0_28] : memref<3x8x512xf32, #tpu.memory_space<vmem>>, vector<1x8x512xf32>
      %60 = vector.shape_cast %59 : vector<1x8x512xf32> to vector<8x512xf32>
      %cst_29 = arith.constant dense<0.000000e+00> : vector<8x512xf32>
      %61 = tpu.matmul %56, %3, %cst_29 {dimension_numbers = #tpu.dot_dimension_numbers<[1], [0], [0], [1], [0, 0, 1, 1], [], []>} : vector<8x128xf32>, vector<128x512xf32>, vector<8x512xf32> -> vector<8x512xf32>
      %62 = arith.addf %60, %61 : vector<8x512xf32>
      %63 = vector.extract_strided_slice %62 {offsets = [0, 0], sizes = [8, 128], strides = [1, 1]} : vector<8x512xf32> to vector<8x128xf32>
      %64 = arith.negf %63 : vector<8x128xf32>
      %65 = math.exp %64 : vector<8x128xf32>
      %cst_30 = arith.constant 1.000000e+00 : f32
      %66 = vector.broadcast %cst_30 : f32 to vector<8x128xf32>
      %67 = arith.addf %66, %65 : vector<8x128xf32>
      %68 = arith.divf %66, %67 : vector<8x128xf32>
      %69 = vector.extract_strided_slice %62 {offsets = [0, 128], sizes = [8, 128], strides = [1, 1]} : vector<8x512xf32> to vector<8x128xf32>
      %70 = arith.negf %69 : vector<8x128xf32>
      %71 = math.exp %70 : vector<8x128xf32>
      %cst_31 = arith.constant 1.000000e+00 : f32
      %72 = vector.broadcast %cst_31 : f32 to vector<8x128xf32>
      %73 = arith.addf %72, %71 : vector<8x128xf32>
      %74 = arith.divf %72, %73 : vector<8x128xf32>
      %75 = vector.extract_strided_slice %62 {offsets = [0, 256], sizes = [8, 128], strides = [1, 1]} : vector<8x512xf32> to vector<8x128xf32>
      %76 = math.tanh %75 : vector<8x128xf32>
      %77 = vector.extract_strided_slice %62 {offsets = [0, 384], sizes = [8, 128], strides = [1, 1]} : vector<8x512xf32> to vector<8x128xf32>
      %78 = arith.negf %77 : vector<8x128xf32>
      %79 = math.exp %78 : vector<8x128xf32>
      %cst_32 = arith.constant 1.000000e+00 : f32
      %80 = vector.broadcast %cst_32 : f32 to vector<8x128xf32>
      %81 = arith.addf %80, %79 : vector<8x128xf32>
      %82 = arith.divf %80, %81 : vector<8x128xf32>
      %83 = arith.mulf %74, %57 : vector<8x128xf32>
      %84 = arith.mulf %68, %76 : vector<8x128xf32>
      %85 = arith.addf %83, %84 : vector<8x128xf32>
      %86 = math.tanh %85 : vector<8x128xf32>
      %87 = arith.mulf %82, %86 : vector<8x128xf32>
      %c3_i32_33 = arith.constant 3 : i32
      %88 = arith.muli %arg1, %c3_i32_33 : i32
      %89 = arith.addi %88, %c1_i32 : i32
      %c8_i32_34 = arith.constant 8 : i32
      %90 = arith.cmpi slt, %89, %c8_i32_34 : i32
      %91 = arith.select %90, %85, %57 : vector<8x128xf32>
      %92 = arith.select %90, %87, %56 : vector<8x128xf32>
      %93 = arith.index_cast %c1_i32 : i32 to index
      %c0_35 = arith.constant 0 : index
      %c0_36 = arith.constant 0 : index
      %94 = vector.load %arg6[%93, %c0_35, %c0_36] : memref<3x8x128xf32, #tpu.memory_space<vmem>>, vector<1x8x128xf32>
      %95 = vector.shape_cast %94 : vector<1x8x128xf32> to vector<8x128xf32>
      %96 = vector.shape_cast %92 : vector<8x128xf32> to vector<1x8x128xf32>
      tpu.vector_store %arg6[%93, %c0_35, %c0_36], %96 {strides = array<i32>} : memref<3x8x128xf32, #tpu.memory_space<vmem>>, vector<1x8x128xf32>,
      %c0_37 = arith.constant 0 : index
      %c0_38 = arith.constant 0 : index
      %97 = vector.load %arg9[%c0_37, %c0_38] : memref<8x128xf32, #tpu.memory_space<vmem>>, vector<8x128xf32>
      tpu.vector_store %arg9[%c0_37, %c0_38], %92 {strides = array<i32>} : memref<8x128xf32, #tpu.memory_space<vmem>>, vector<8x128xf32>,
      %c0_39 = arith.constant 0 : index
      %c0_40 = arith.constant 0 : index
      %98 = vector.load %arg10[%c0_39, %c0_40] : memref<8x128xf32, #tpu.memory_space<vmem>>, vector<8x128xf32>
      tpu.vector_store %arg10[%c0_39, %c0_40], %91 {strides = array<i32>} : memref<8x128xf32, #tpu.memory_space<vmem>>, vector<8x128xf32>,
      %c2_i32_41 = arith.constant 2 : i32
      %c0_42 = arith.constant 0 : index
      %c0_43 = arith.constant 0 : index
      %99 = vector.load %arg9[%c0_42, %c0_43] : memref<8x128xf32, #tpu.memory_space<vmem>>, vector<8x128xf32>
      %c0_44 = arith.constant 0 : index
      %c0_45 = arith.constant 0 : index
      %100 = vector.load %arg10[%c0_44, %c0_45] : memref<8x128xf32, #tpu.memory_space<vmem>>, vector<8x128xf32>
      %101 = arith.index_cast %c2_i32_41 : i32 to index
      %c0_46 = arith.constant 0 : index
      %c0_47 = arith.constant 0 : index
      %102 = vector.load %arg2[%101, %c0_46, %c0_47] : memref<3x8x512xf32, #tpu.memory_space<vmem>>, vector<1x8x512xf32>
      %103 = vector.shape_cast %102 : vector<1x8x512xf32> to vector<8x512xf32>
      %cst_48 = arith.constant dense<0.000000e+00> : vector<8x512xf32>
      %104 = tpu.matmul %99, %3, %cst_48 {dimension_numbers = #tpu.dot_dimension_numbers<[1], [0], [0], [1], [0, 0, 1, 1], [], []>} : vector<8x128xf32>, vector<128x512xf32>, vector<8x512xf32> -> vector<8x512xf32>
      %105 = arith.addf %103, %104 : vector<8x512xf32>
      %106 = vector.extract_strided_slice %105 {offsets = [0, 0], sizes = [8, 128], strides = [1, 1]} : vector<8x512xf32> to vector<8x128xf32>
      %107 = arith.negf %106 : vector<8x128xf32>
      %108 = math.exp %107 : vector<8x128xf32>
      %cst_49 = arith.constant 1.000000e+00 : f32
      %109 = vector.broadcast %cst_49 : f32 to vector<8x128xf32>
      %110 = arith.addf %109, %108 : vector<8x128xf32>
      %111 = arith.divf %109, %110 : vector<8x128xf32>
      %112 = vector.extract_strided_slice %105 {offsets = [0, 128], sizes = [8, 128], strides = [1, 1]} : vector<8x512xf32> to vector<8x128xf32>
      %113 = arith.negf %112 : vector<8x128xf32>
      %114 = math.exp %113 : vector<8x128xf32>
      %cst_50 = arith.constant 1.000000e+00 : f32
      %115 = vector.broadcast %cst_50 : f32 to vector<8x128xf32>
      %116 = arith.addf %115, %114 : vector<8x128xf32>
      %117 = arith.divf %115, %116 : vector<8x128xf32>
      %118 = vector.extract_strided_slice %105 {offsets = [0, 256], sizes = [8, 128], strides = [1, 1]} : vector<8x512xf32> to vector<8x128xf32>
      %119 = math.tanh %118 : vector<8x128xf32>
      %120 = vector.extract_strided_slice %105 {offsets = [0, 384], sizes = [8, 128], strides = [1, 1]} : vector<8x512xf32> to vector<8x128xf32>
      %121 = arith.negf %120 : vector<8x128xf32>
      %122 = math.exp %121 : vector<8x128xf32>
      %cst_51 = arith.constant 1.000000e+00 : f32
      %123 = vector.broadcast %cst_51 : f32 to vector<8x128xf32>
      %124 = arith.addf %123, %122 : vector<8x128xf32>
      %125 = arith.divf %123, %124 : vector<8x128xf32>
      %126 = arith.mulf %117, %100 : vector<8x128xf32>
      %127 = arith.mulf %111, %119 : vector<8x128xf32>
      %128 = arith.addf %126, %127 : vector<8x128xf32>
      %129 = math.tanh %128 : vector<8x128xf32>
      %130 = arith.mulf %125, %129 : vector<8x128xf32>
      %c3_i32_52 = arith.constant 3 : i32
      %131 = arith.muli %arg1, %c3_i32_52 : i32
      %132 = arith.addi %131, %c2_i32_41 : i32
      %c8_i32_53 = arith.constant 8 : i32
      %133 = arith.cmpi slt, %132, %c8_i32_53 : i32
      %134 = arith.select %133, %128, %100 : vector<8x128xf32>
      %135 = arith.select %133, %130, %99 : vector<8x128xf32>
      %136 = arith.index_cast %c2_i32_41 : i32 to index
      %c0_54 = arith.constant 0 : index
      %c0_55 = arith.constant 0 : index
      %137 = vector.load %arg6[%136, %c0_54, %c0_55] : memref<3x8x128xf32, #tpu.memory_space<vmem>>, vector<1x8x128xf32>
      %138 = vector.shape_cast %137 : vector<1x8x128xf32> to vector<8x128xf32>
      %139 = vector.shape_cast %135 : vector<8x128xf32> to vector<1x8x128xf32>
      tpu.vector_store %arg6[%136, %c0_54, %c0_55], %139 {strides = array<i32>} : memref<3x8x128xf32, #tpu.memory_space<vmem>>, vector<1x8x128xf32>,
      %c0_56 = arith.constant 0 : index
      %c0_57 = arith.constant 0 : index
      %140 = vector.load %arg9[%c0_56, %c0_57] : memref<8x128xf32, #tpu.memory_space<vmem>>, vector<8x128xf32>
      tpu.vector_store %arg9[%c0_56, %c0_57], %135 {strides = array<i32>} : memref<8x128xf32, #tpu.memory_space<vmem>>, vector<8x128xf32>,
      %c0_58 = arith.constant 0 : index
      %c0_59 = arith.constant 0 : index
      %141 = vector.load %arg10[%c0_58, %c0_59] : memref<8x128xf32, #tpu.memory_space<vmem>>, vector<8x128xf32>
      tpu.vector_store %arg10[%c0_58, %c0_59], %134 {strides = array<i32>} : memref<8x128xf32, #tpu.memory_space<vmem>>, vector<8x128xf32>,
      %c3_i32_60 = arith.constant 3 : i32
    } else {
    }
    %c2_i32_3 = arith.constant 2 : i32
    %7 = arith.cmpi ne, %arg1, %c2_i32_3 : i32
    %8 = arith.extui %7 : i1 to i32
    %c0_i32_4 = arith.constant 0 : i32
    %9 = arith.cmpi ne, %8, %c0_i32_4 : i32
    scf.if %9 {
      %c0_i32_7 = arith.constant 0 : i32
      %c0_8 = arith.constant 0 : index
      %c0_9 = arith.constant 0 : index
      %13 = vector.load %arg9[%c0_8, %c0_9] : memref<8x128xf32, #tpu.memory_space<vmem>>, vector<8x128xf32>
      %c0_10 = arith.constant 0 : index
      %c0_11 = arith.constant 0 : index
      %14 = vector.load %arg10[%c0_10, %c0_11] : memref<8x128xf32, #tpu.memory_space<vmem>>, vector<8x128xf32>
      %15 = arith.index_cast %c0_i32_7 : i32 to index
      %c0_12 = arith.constant 0 : index
      %c0_13 = arith.constant 0 : index
      %16 = vector.load %arg2[%15, %c0_12, %c0_13] : memref<3x8x512xf32, #tpu.memory_space<vmem>>, vector<1x8x512xf32>
      %17 = vector.shape_cast %16 : vector<1x8x512xf32> to vector<8x512xf32>
      %cst = arith.constant dense<0.000000e+00> : vector<8x512xf32>
      %18 = tpu.matmul %13, %3, %cst {dimension_numbers = #tpu.dot_dimension_numbers<[1], [0], [0], [1], [0, 0, 1, 1], [], []>} : vector<8x128xf32>, vector<128x512xf32>, vector<8x512xf32> -> vector<8x512xf32>
      %19 = arith.addf %17, %18 : vector<8x512xf32>
      %20 = vector.extract_strided_slice %19 {offsets = [0, 0], sizes = [8, 128], strides = [1, 1]} : vector<8x512xf32> to vector<8x128xf32>
      %21 = arith.negf %20 : vector<8x128xf32>
      %22 = math.exp %21 : vector<8x128xf32>
      %cst_14 = arith.constant 1.000000e+00 : f32
      %23 = vector.broadcast %cst_14 : f32 to vector<8x128xf32>
      %24 = arith.addf %23, %22 : vector<8x128xf32>
      %25 = arith.divf %23, %24 : vector<8x128xf32>
      %26 = vector.extract_strided_slice %19 {offsets = [0, 128], sizes = [8, 128], strides = [1, 1]} : vector<8x512xf32> to vector<8x128xf32>
      %27 = arith.negf %26 : vector<8x128xf32>
      %28 = math.exp %27 : vector<8x128xf32>
      %cst_15 = arith.constant 1.000000e+00 : f32
      %29 = vector.broadcast %cst_15 : f32 to vector<8x128xf32>
      %30 = arith.addf %29, %28 : vector<8x128xf32>
      %31 = arith.divf %29, %30 : vector<8x128xf32>
      %32 = vector.extract_strided_slice %19 {offsets = [0, 256], sizes = [8, 128], strides = [1, 1]} : vector<8x512xf32> to vector<8x128xf32>
      %33 = math.tanh %32 : vector<8x128xf32>
      %34 = vector.extract_strided_slice %19 {offsets = [0, 384], sizes = [8, 128], strides = [1, 1]} : vector<8x512xf32> to vector<8x128xf32>
      %35 = arith.negf %34 : vector<8x128xf32>
      %36 = math.exp %35 : vector<8x128xf32>
      %cst_16 = arith.constant 1.000000e+00 : f32
      %37 = vector.broadcast %cst_16 : f32 to vector<8x128xf32>
      %38 = arith.addf %37, %36 : vector<8x128xf32>
      %39 = arith.divf %37, %38 : vector<8x128xf32>
      %40 = arith.mulf %31, %14 : vector<8x128xf32>
      %41 = arith.mulf %25, %33 : vector<8x128xf32>
      %42 = arith.addf %40, %41 : vector<8x128xf32>
      %43 = math.tanh %42 : vector<8x128xf32>
      %44 = arith.mulf %39, %43 : vector<8x128xf32>
      %45 = arith.index_cast %c0_i32_7 : i32 to index
      %c0_17 = arith.constant 0 : index
      %c0_18 = arith.constant 0 : index
      %46 = vector.load %arg6[%45, %c0_17, %c0_18] : memref<3x8x128xf32, #tpu.memory_space<vmem>>, vector<1x8x128xf32>
      %47 = vector.shape_cast %46 : vector<1x8x128xf32> to vector<8x128xf32>
      %48 = vector.shape_cast %44 : vector<8x128xf32> to vector<1x8x128xf32>
      tpu.vector_store %arg6[%45, %c0_17, %c0_18], %48 {strides = array<i32>} : memref<3x8x128xf32, #tpu.memory_space<vmem>>, vector<1x8x128xf32>,
      %c0_19 = arith.constant 0 : index
      %c0_20 = arith.constant 0 : index
      %49 = vector.load %arg9[%c0_19, %c0_20] : memref<8x128xf32, #tpu.memory_space<vmem>>, vector<8x128xf32>
      tpu.vector_store %arg9[%c0_19, %c0_20], %44 {strides = array<i32>} : memref<8x128xf32, #tpu.memory_space<vmem>>, vector<8x128xf32>,
      %c0_21 = arith.constant 0 : index
      %c0_22 = arith.constant 0 : index
      %50 = vector.load %arg10[%c0_21, %c0_22] : memref<8x128xf32, #tpu.memory_space<vmem>>, vector<8x128xf32>
      tpu.vector_store %arg10[%c0_21, %c0_22], %42 {strides = array<i32>} : memref<8x128xf32, #tpu.memory_space<vmem>>, vector<8x128xf32>,
      %c1_i32 = arith.constant 1 : i32
      %c0_23 = arith.constant 0 : index
      %c0_24 = arith.constant 0 : index
      %51 = vector.load %arg9[%c0_23, %c0_24] : memref<8x128xf32, #tpu.memory_space<vmem>>, vector<8x128xf32>
      %c0_25 = arith.constant 0 : index
      %c0_26 = arith.constant 0 : index
      %52 = vector.load %arg10[%c0_25, %c0_26] : memref<8x128xf32, #tpu.memory_space<vmem>>, vector<8x128xf32>
      %53 = arith.index_cast %c1_i32 : i32 to index
      %c0_27 = arith.constant 0 : index
      %c0_28 = arith.constant 0 : index
      %54 = vector.load %arg2[%53, %c0_27, %c0_28] : memref<3x8x512xf32, #tpu.memory_space<vmem>>, vector<1x8x512xf32>
      %55 = vector.shape_cast %54 : vector<1x8x512xf32> to vector<8x512xf32>
      %cst_29 = arith.constant dense<0.000000e+00> : vector<8x512xf32>
      %56 = tpu.matmul %51, %3, %cst_29 {dimension_numbers = #tpu.dot_dimension_numbers<[1], [0], [0], [1], [0, 0, 1, 1], [], []>} : vector<8x128xf32>, vector<128x512xf32>, vector<8x512xf32> -> vector<8x512xf32>
      %57 = arith.addf %55, %56 : vector<8x512xf32>
      %58 = vector.extract_strided_slice %57 {offsets = [0, 0], sizes = [8, 128], strides = [1, 1]} : vector<8x512xf32> to vector<8x128xf32>
      %59 = arith.negf %58 : vector<8x128xf32>
      %60 = math.exp %59 : vector<8x128xf32>
      %cst_30 = arith.constant 1.000000e+00 : f32
      %61 = vector.broadcast %cst_30 : f32 to vector<8x128xf32>
      %62 = arith.addf %61, %60 : vector<8x128xf32>
      %63 = arith.divf %61, %62 : vector<8x128xf32>
      %64 = vector.extract_strided_slice %57 {offsets = [0, 128], sizes = [8, 128], strides = [1, 1]} : vector<8x512xf32> to vector<8x128xf32>
      %65 = arith.negf %64 : vector<8x128xf32>
      %66 = math.exp %65 : vector<8x128xf32>
      %cst_31 = arith.constant 1.000000e+00 : f32
      %67 = vector.broadcast %cst_31 : f32 to vector<8x128xf32>
      %68 = arith.addf %67, %66 : vector<8x128xf32>
      %69 = arith.divf %67, %68 : vector<8x128xf32>
      %70 = vector.extract_strided_slice %57 {offsets = [0, 256], sizes = [8, 128], strides = [1, 1]} : vector<8x512xf32> to vector<8x128xf32>
      %71 = math.tanh %70 : vector<8x128xf32>
      %72 = vector.extract_strided_slice %57 {offsets = [0, 384], sizes = [8, 128], strides = [1, 1]} : vector<8x512xf32> to vector<8x128xf32>
      %73 = arith.negf %72 : vector<8x128xf32>
      %74 = math.exp %73 : vector<8x128xf32>
      %cst_32 = arith.constant 1.000000e+00 : f32
      %75 = vector.broadcast %cst_32 : f32 to vector<8x128xf32>
      %76 = arith.addf %75, %74 : vector<8x128xf32>
      %77 = arith.divf %75, %76 : vector<8x128xf32>
      %78 = arith.mulf %69, %52 : vector<8x128xf32>
      %79 = arith.mulf %63, %71 : vector<8x128xf32>
      %80 = arith.addf %78, %79 : vector<8x128xf32>
      %81 = math.tanh %80 : vector<8x128xf32>
      %82 = arith.mulf %77, %81 : vector<8x128xf32>
      %83 = arith.index_cast %c1_i32 : i32 to index
      %c0_33 = arith.constant 0 : index
      %c0_34 = arith.constant 0 : index
      %84 = vector.load %arg6[%83, %c0_33, %c0_34] : memref<3x8x128xf32, #tpu.memory_space<vmem>>, vector<1x8x128xf32>
      %85 = vector.shape_cast %84 : vector<1x8x128xf32> to vector<8x128xf32>
      %86 = vector.shape_cast %82 : vector<8x128xf32> to vector<1x8x128xf32>
      tpu.vector_store %arg6[%83, %c0_33, %c0_34], %86 {strides = array<i32>} : memref<3x8x128xf32, #tpu.memory_space<vmem>>, vector<1x8x128xf32>,
      %c0_35 = arith.constant 0 : index
      %c0_36 = arith.constant 0 : index
      %87 = vector.load %arg9[%c0_35, %c0_36] : memref<8x128xf32, #tpu.memory_space<vmem>>, vector<8x128xf32>
      tpu.vector_store %arg9[%c0_35, %c0_36], %82 {strides = array<i32>} : memref<8x128xf32, #tpu.memory_space<vmem>>, vector<8x128xf32>,
      %c0_37 = arith.constant 0 : index
      %c0_38 = arith.constant 0 : index
      %88 = vector.load %arg10[%c0_37, %c0_38] : memref<8x128xf32, #tpu.memory_space<vmem>>, vector<8x128xf32>
      tpu.vector_store %arg10[%c0_37, %c0_38], %80 {strides = array<i32>} : memref<8x128xf32, #tpu.memory_space<vmem>>, vector<8x128xf32>,
      %c2_i32_39 = arith.constant 2 : i32
      %c0_40 = arith.constant 0 : index
      %c0_41 = arith.constant 0 : index
      %89 = vector.load %arg9[%c0_40, %c0_41] : memref<8x128xf32, #tpu.memory_space<vmem>>, vector<8x128xf32>
      %c0_42 = arith.constant 0 : index
      %c0_43 = arith.constant 0 : index
      %90 = vector.load %arg10[%c0_42, %c0_43] : memref<8x128xf32, #tpu.memory_space<vmem>>, vector<8x128xf32>
      %91 = arith.index_cast %c2_i32_39 : i32 to index
      %c0_44 = arith.constant 0 : index
      %c0_45 = arith.constant 0 : index
      %92 = vector.load %arg2[%91, %c0_44, %c0_45] : memref<3x8x512xf32, #tpu.memory_space<vmem>>, vector<1x8x512xf32>
      %93 = vector.shape_cast %92 : vector<1x8x512xf32> to vector<8x512xf32>
      %cst_46 = arith.constant dense<0.000000e+00> : vector<8x512xf32>
      %94 = tpu.matmul %89, %3, %cst_46 {dimension_numbers = #tpu.dot_dimension_numbers<[1], [0], [0], [1], [0, 0, 1, 1], [], []>} : vector<8x128xf32>, vector<128x512xf32>, vector<8x512xf32> -> vector<8x512xf32>
      %95 = arith.addf %93, %94 : vector<8x512xf32>
      %96 = vector.extract_strided_slice %95 {offsets = [0, 0], sizes = [8, 128], strides = [1, 1]} : vector<8x512xf32> to vector<8x128xf32>
      %97 = arith.negf %96 : vector<8x128xf32>
      %98 = math.exp %97 : vector<8x128xf32>
      %cst_47 = arith.constant 1.000000e+00 : f32
      %99 = vector.broadcast %cst_47 : f32 to vector<8x128xf32>
      %100 = arith.addf %99, %98 : vector<8x128xf32>
      %101 = arith.divf %99, %100 : vector<8x128xf32>
      %102 = vector.extract_strided_slice %95 {offsets = [0, 128], sizes = [8, 128], strides = [1, 1]} : vector<8x512xf32> to vector<8x128xf32>
      %103 = arith.negf %102 : vector<8x128xf32>
      %104 = math.exp %103 : vector<8x128xf32>
      %cst_48 = arith.constant 1.000000e+00 : f32
      %105 = vector.broadcast %cst_48 : f32 to vector<8x128xf32>
      %106 = arith.addf %105, %104 : vector<8x128xf32>
      %107 = arith.divf %105, %106 : vector<8x128xf32>
      %108 = vector.extract_strided_slice %95 {offsets = [0, 256], sizes = [8, 128], strides = [1, 1]} : vector<8x512xf32> to vector<8x128xf32>
      %109 = math.tanh %108 : vector<8x128xf32>
      %110 = vector.extract_strided_slice %95 {offsets = [0, 384], sizes = [8, 128], strides = [1, 1]} : vector<8x512xf32> to vector<8x128xf32>
      %111 = arith.negf %110 : vector<8x128xf32>
      %112 = math.exp %111 : vector<8x128xf32>
      %cst_49 = arith.constant 1.000000e+00 : f32
      %113 = vector.broadcast %cst_49 : f32 to vector<8x128xf32>
      %114 = arith.addf %113, %112 : vector<8x128xf32>
      %115 = arith.divf %113, %114 : vector<8x128xf32>
      %116 = arith.mulf %107, %90 : vector<8x128xf32>
      %117 = arith.mulf %101, %109 : vector<8x128xf32>
      %118 = arith.addf %116, %117 : vector<8x128xf32>
      %119 = math.tanh %118 : vector<8x128xf32>
      %120 = arith.mulf %115, %119 : vector<8x128xf32>
      %121 = arith.index_cast %c2_i32_39 : i32 to index
      %c0_50 = arith.constant 0 : index
      %c0_51 = arith.constant 0 : index
      %122 = vector.load %arg6[%121, %c0_50, %c0_51] : memref<3x8x128xf32, #tpu.memory_space<vmem>>, vector<1x8x128xf32>
      %123 = vector.shape_cast %122 : vector<1x8x128xf32> to vector<8x128xf32>
      %124 = vector.shape_cast %120 : vector<8x128xf32> to vector<1x8x128xf32>
      tpu.vector_store %arg6[%121, %c0_50, %c0_51], %124 {strides = array<i32>} : memref<3x8x128xf32, #tpu.memory_space<vmem>>, vector<1x8x128xf32>,
      %c0_52 = arith.constant 0 : index
      %c0_53 = arith.constant 0 : index
      %125 = vector.load %arg9[%c0_52, %c0_53] : memref<8x128xf32, #tpu.memory_space<vmem>>, vector<8x128xf32>
      tpu.vector_store %arg9[%c0_52, %c0_53], %120 {strides = array<i32>} : memref<8x128xf32, #tpu.memory_space<vmem>>, vector<8x128xf32>,
      %c0_54 = arith.constant 0 : index
      %c0_55 = arith.constant 0 : index
      %126 = vector.load %arg10[%c0_54, %c0_55] : memref<8x128xf32, #tpu.memory_space<vmem>>, vector<8x128xf32>
      tpu.vector_store %arg10[%c0_54, %c0_55], %118 {strides = array<i32>} : memref<8x128xf32, #tpu.memory_space<vmem>>, vector<8x128xf32>,
      %c3_i32 = arith.constant 3 : i32
    } else {
    }
    %c2_i32_5 = arith.constant 2 : i32
    %10 = arith.cmpi eq, %arg1, %c2_i32_5 : i32
    %11 = arith.extui %10 : i1 to i32
    %c0_i32_6 = arith.constant 0 : i32
    %12 = arith.cmpi ne, %11, %c0_i32_6 : i32
    scf.if %12 {
      %c0_7 = arith.constant 0 : index
      %c0_8 = arith.constant 0 : index
      %13 = vector.load %arg9[%c0_7, %c0_8] : memref<8x128xf32, #tpu.memory_space<vmem>>, vector<8x128xf32>
      %c0_9 = arith.constant 0 : index
      %c0_10 = arith.constant 0 : index
      %14 = vector.load %arg7[%c0_9, %c0_10] : memref<8x128xf32, #tpu.memory_space<vmem>>, vector<8x128xf32>
      tpu.vector_store %arg7[%c0_9, %c0_10], %13 {strides = array<i32>} : memref<8x128xf32, #tpu.memory_space<vmem>>, vector<8x128xf32>,
      %c0_11 = arith.constant 0 : index
      %c0_12 = arith.constant 0 : index
      %15 = vector.load %arg10[%c0_11, %c0_12] : memref<8x128xf32, #tpu.memory_space<vmem>>, vector<8x128xf32>
      %c0_13 = arith.constant 0 : index
      %c0_14 = arith.constant 0 : index
      %16 = vector.load %arg8[%c0_13, %c0_14] : memref<8x128xf32, #tpu.memory_space<vmem>>, vector<8x128xf32>
      tpu.vector_store %arg8[%c0_13, %c0_14], %15 {strides = array<i32>} : memref<8x128xf32, #tpu.memory_space<vmem>>, vector<8x128xf32>,
    } else {
    }
    return
  }
  func.func @transform_0(%arg0: i32, %arg1: i32) -> (i32, i32, i32) {
    %c0_i32 = arith.constant 0 : i32
    %c0_i32_0 = arith.constant 0 : i32
    return %arg1, %arg0, %c0_i32 : i32, i32, i32
  }
  func.func @transform_1(%arg0: i32, %arg1: i32) -> (i32, i32) {
    %c0_i32 = arith.constant 0 : i32
    %c0_i32_0 = arith.constant 0 : i32
    %c0_i32_1 = arith.constant 0 : i32
    return %c0_i32, %c0_i32_0 : i32, i32
  }
  func.func @transform_2(%arg0: i32, %arg1: i32) -> (i32, i32) {
    %c0_i32 = arith.constant 0 : i32
    %c0_i32_0 = arith.constant 0 : i32
    return %arg0, %c0_i32 : i32, i32
  }
  func.func @transform_3(%arg0: i32, %arg1: i32) -> (i32, i32) {
    %c0_i32 = arith.constant 0 : i32
    %c0_i32_0 = arith.constant 0 : i32
    return %arg0, %c0_i32 : i32, i32
  }
  func.func @transform_4(%arg0: i32, %arg1: i32) -> (i32, i32, i32) {
    %c0_i32 = arith.constant 0 : i32
    %c0_i32_0 = arith.constant 0 : i32
    return %arg1, %arg0, %c0_i32 : i32, i32, i32
  }
  func.func @transform_5(%arg0: i32, %arg1: i32) -> (i32, i32) {
    %c0_i32 = arith.constant 0 : i32
    %c0_i32_0 = arith.constant 0 : i32
    return %arg0, %c0_i32 : i32, i32
  }
  func.func @transform_6(%arg0: i32, %arg1: i32) -> (i32, i32) {
    %c0_i32 = arith.constant 0 : i32
    %c0_i32_0 = arith.constant 0 : i32
    return %arg0, %c0_i32 : i32, i32
  }
}

module attributes {stable_mosaic.version = 11 : i64} {
  func.func @_lstm_recurrent_kernel(%arg0: i32, %arg1: i32, %arg2: memref<3x8x512xf32, #tpu.memory_space<vmem>>, %arg3: memref<128x512xf32, #tpu.memory_space<vmem>>, %arg4: memref<8x128xf32, #tpu.memory_space<vmem>>, %arg5: memref<8x128xf32, #tpu.memory_space<vmem>>, %arg6: memref<3x8x128xf32, #tpu.memory_space<vmem>>, %arg7: memref<8x128xf32, #tpu.memory_space<vmem>>, %arg8: memref<8x128xf32, #tpu.memory_space<vmem>>, %arg9: memref<8x128xf32, #tpu.memory_space<vmem>>, %arg10: memref<8x128xf32, #tpu.memory_space<vmem>>) attributes {dimension_semantics = [#tpu.dimension_semantics<parallel>, #tpu.dimension_semantics<arbitrary>], iteration_bounds = array<i64: 1, 3>, scalar_prefetch = 0 : i64, scratch_operands = 2 : i64, tpu.core_type = #tpu.core_type<tc>, window_params = [{transform_indices = @transform_0, window_bounds = array<i64: 3, 8, 512>}, {pipeline_mode = #tpu.pipeline_mode<synchronous>, transform_indices = @transform_1, window_bounds = array<i64: 128, 512>}, {transform_indices = @transform_2, window_bounds = array<i64: 8, 128>}, {transform_indices = @transform_3, window_bounds = array<i64: 8, 128>}, {transform_indices = @transform_4, window_bounds = array<i64: 3, 8, 128>}, {transform_indices = @transform_5, window_bounds = array<i64: 8, 128>}, {transform_indices = @transform_6, window_bounds = array<i64: 8, 128>}]} {
    %c0_i32 = arith.constant 0 : i32
    %0 = arith.cmpi eq, %arg1, %c0_i32 : i32
    %1 = arith.extui %0 : i1 to i32
    %c0_i32_0 = arith.constant 0 : i32
    %2 = arith.cmpi ne, %1, %c0_i32_0 : i32
    scf.if %2 {
      %c0_7 = arith.constant 0 : index
      %c0_8 = arith.constant 0 : index
      %13 = vector.load %arg4[%c0_7, %c0_8] : memref<8x128xf32, #tpu.memory_space<vmem>>, vector<8x128xf32>
      %c0_9 = arith.constant 0 : index
      %c0_10 = arith.constant 0 : index
      %14 = vector.load %arg9[%c0_9, %c0_10] : memref<8x128xf32, #tpu.memory_space<vmem>>, vector<8x128xf32>
      tpu.vector_store %arg9[%c0_9, %c0_10], %13 {strides = array<i32>} : memref<8x128xf32, #tpu.memory_space<vmem>>, vector<8x128xf32>,
      %c0_11 = arith.constant 0 : index
      %c0_12 = arith.constant 0 : index
      %15 = vector.load %arg5[%c0_11, %c0_12] : memref<8x128xf32, #tpu.memory_space<vmem>>, vector<8x128xf32>
      %c0_13 = arith.constant 0 : index
      %c0_14 = arith.constant 0 : index
      %16 = vector.load %arg10[%c0_13, %c0_14] : memref<8x128xf32, #tpu.memory_space<vmem>>, vector<8x128xf32>
      tpu.vector_store %arg10[%c0_13, %c0_14], %15 {strides = array<i32>} : memref<8x128xf32, #tpu.memory_space<vmem>>, vector<8x128xf32>,
    } else {
    }
    %c0 = arith.constant 0 : index
    %c0_1 = arith.constant 0 : index
    %3 = vector.load %arg3[%c0, %c0_1] : memref<128x512xf32, #tpu.memory_space<vmem>>, vector<128x512xf32>
    %c2_i32 = arith.constant 2 : i32
    %4 = arith.cmpi eq, %arg1, %c2_i32 : i32
    %5 = arith.extui %4 : i1 to i32
    %c0_i32_2 = arith.constant 0 : i32
    %6 = arith.cmpi ne, %5, %c0_i32_2 : i32
    scf.if %6 {
      %c0_i32_7 = arith.constant 0 : i32
      %c0_8 = arith.constant 0 : index
      %c0_9 = arith.constant 0 : index
      %13 = vector.load %arg9[%c0_8, %c0_9] : memref<8x128xf32, #tpu.memory_space<vmem>>, vector<8x128xf32>
      %c0_10 = arith.constant 0 : index
      %c0_11 = arith.constant 0 : index
      %14 = vector.load %arg10[%c0_10, %c0_11] : memref<8x128xf32, #tpu.memory_space<vmem>>, vector<8x128xf32>
      %15 = arith.index_cast %c0_i32_7 : i32 to index
      %c0_12 = arith.constant 0 : index
      %c0_13 = arith.constant 0 : index
      %16 = vector.load %arg2[%15, %c0_12, %c0_13] : memref<3x8x512xf32, #tpu.memory_space<vmem>>, vector<1x8x512xf32>
      %17 = vector.shape_cast %16 : vector<1x8x512xf32> to vector<8x512xf32>
      %cst = arith.constant dense<0.000000e+00> : vector<8x512xf32>
      %18 = tpu.matmul %13, %3, %cst {dimension_numbers = #tpu.dot_dimension_numbers<[1], [0], [0], [1], [0, 0, 1, 1], [], []>} : vector<8x128xf32>, vector<128x512xf32>, vector<8x512xf32> -> vector<8x512xf32>
      %19 = arith.addf %17, %18 : vector<8x512xf32>
      %20 = vector.extract_strided_slice %19 {offsets = [0, 0], sizes = [8, 128], strides = [1, 1]} : vector<8x512xf32> to vector<8x128xf32>
      %21 = arith.negf %20 : vector<8x128xf32>
      %22 = math.exp %21 : vector<8x128xf32>
      %cst_14 = arith.constant 1.000000e+00 : f32
      %23 = vector.broadcast %cst_14 : f32 to vector<8x128xf32>
      %24 = arith.addf %23, %22 : vector<8x128xf32>
      %25 = arith.divf %23, %24 : vector<8x128xf32>
      %26 = vector.extract_strided_slice %19 {offsets = [0, 128], sizes = [8, 128], strides = [1, 1]} : vector<8x512xf32> to vector<8x128xf32>
      %27 = arith.negf %26 : vector<8x128xf32>
      %28 = math.exp %27 : vector<8x128xf32>
      %cst_15 = arith.constant 1.000000e+00 : f32
      %29 = vector.broadcast %cst_15 : f32 to vector<8x128xf32>
      %30 = arith.addf %29, %28 : vector<8x128xf32>
      %31 = arith.divf %29, %30 : vector<8x128xf32>
      %32 = vector.extract_strided_slice %19 {offsets = [0, 256], sizes = [8, 128], strides = [1, 1]} : vector<8x512xf32> to vector<8x128xf32>
      %33 = math.tanh %32 : vector<8x128xf32>
      %34 = vector.extract_strided_slice %19 {offsets = [0, 384], sizes = [8, 128], strides = [1, 1]} : vector<8x512xf32> to vector<8x128xf32>
      %35 = arith.negf %34 : vector<8x128xf32>
      %36 = math.exp %35 : vector<8x128xf32>
      %cst_16 = arith.constant 1.000000e+00 : f32
      %37 = vector.broadcast %cst_16 : f32 to vector<8x128xf32>
      %38 = arith.addf %37, %36 : vector<8x128xf32>
      %39 = arith.divf %37, %38 : vector<8x128xf32>
      %40 = arith.mulf %31, %14 : vector<8x128xf32>
      %41 = arith.mulf %25, %33 : vector<8x128xf32>
      %42 = arith.addf %40, %41 : vector<8x128xf32>
      %43 = math.tanh %42 : vector<8x128xf32>
      %44 = arith.mulf %39, %43 : vector<8x128xf32>
      %c3_i32 = arith.constant 3 : i32
      %45 = arith.muli %arg1, %c3_i32 : i32
      %46 = arith.addi %45, %c0_i32_7 : i32
      %c8_i32 = arith.constant 8 : i32
      %47 = arith.cmpi slt, %46, %c8_i32 : i32
      %48 = arith.select %47, %42, %14 : vector<8x128xf32>
      %49 = arith.select %47, %44, %13 : vector<8x128xf32>
      %50 = arith.index_cast %c0_i32_7 : i32 to index
      %c0_17 = arith.constant 0 : index
      %c0_18 = arith.constant 0 : index
      %51 = vector.load %arg6[%50, %c0_17, %c0_18] : memref<3x8x128xf32, #tpu.memory_space<vmem>>, vector<1x8x128xf32>
      %52 = vector.shape_cast %51 : vector<1x8x128xf32> to vector<8x128xf32>
      %53 = vector.shape_cast %49 : vector<8x128xf32> to vector<1x8x128xf32>
      tpu.vector_store %arg6[%50, %c0_17, %c0_18], %53 {strides = array<i32>} : memref<3x8x128xf32, #tpu.memory_space<vmem>>, vector<1x8x128xf32>,
      %c0_19 = arith.constant 0 : index
      %c0_20 = arith.constant 0 : index
      %54 = vector.load %arg9[%c0_19, %c0_20] : memref<8x128xf32, #tpu.memory_space<vmem>>, vector<8x128xf32>
      tpu.vector_store %arg9[%c0_19, %c0_20], %49 {strides = array<i32>} : memref<8x128xf32, #tpu.memory_space<vmem>>, vector<8x128xf32>,
      %c0_21 = arith.constant 0 : index
      %c0_22 = arith.constant 0 : index
      %55 = vector.load %arg10[%c0_21, %c0_22] : memref<8x128xf32, #tpu.memory_space<vmem>>, vector<8x128xf32>
      tpu.vector_store %arg10[%c0_21, %c0_22], %48 {strides = array<i32>} : memref<8x128xf32, #tpu.memory_space<vmem>>, vector<8x128xf32>,
      %c1_i32 = arith.constant 1 : i32
      %c0_23 = arith.constant 0 : index
      %c0_24 = arith.constant 0 : index
      %56 = vector.load %arg9[%c0_23, %c0_24] : memref<8x128xf32, #tpu.memory_space<vmem>>, vector<8x128xf32>
      %c0_25 = arith.constant 0 : index
      %c0_26 = arith.constant 0 : index
      %57 = vector.load %arg10[%c0_25, %c0_26] : memref<8x128xf32, #tpu.memory_space<vmem>>, vector<8x128xf32>
      %58 = arith.index_cast %c1_i32 : i32 to index
      %c0_27 = arith.constant 0 : index
      %c0_28 = arith.constant 0 : index
      %59 = vector.load %arg2[%58, %c0_27, %c0_28] : memref<3x8x512xf32, #tpu.memory_space<vmem>>, vector<1x8x512xf32>
      %60 = vector.shape_cast %59 : vector<1x8x512xf32> to vector<8x512xf32>
      %cst_29 = arith.constant dense<0.000000e+00> : vector<8x512xf32>
      %61 = tpu.matmul %56, %3, %cst_29 {dimension_numbers = #tpu.dot_dimension_numbers<[1], [0], [0], [1], [0, 0, 1, 1], [], []>} : vector<8x128xf32>, vector<128x512xf32>, vector<8x512xf32> -> vector<8x512xf32>
      %62 = arith.addf %60, %61 : vector<8x512xf32>
      %63 = vector.extract_strided_slice %62 {offsets = [0, 0], sizes = [8, 128], strides = [1, 1]} : vector<8x512xf32> to vector<8x128xf32>
      %64 = arith.negf %63 : vector<8x128xf32>
      %65 = math.exp %64 : vector<8x128xf32>
      %cst_30 = arith.constant 1.000000e+00 : f32
      %66 = vector.broadcast %cst_30 : f32 to vector<8x128xf32>
      %67 = arith.addf %66, %65 : vector<8x128xf32>
      %68 = arith.divf %66, %67 : vector<8x128xf32>
      %69 = vector.extract_strided_slice %62 {offsets = [0, 128], sizes = [8, 128], strides = [1, 1]} : vector<8x512xf32> to vector<8x128xf32>
      %70 = arith.negf %69 : vector<8x128xf32>
      %71 = math.exp %70 : vector<8x128xf32>
      %cst_31 = arith.constant 1.000000e+00 : f32
      %72 = vector.broadcast %cst_31 : f32 to vector<8x128xf32>
      %73 = arith.addf %72, %71 : vector<8x128xf32>
      %74 = arith.divf %72, %73 : vector<8x128xf32>
      %75 = vector.extract_strided_slice %62 {offsets = [0, 256], sizes = [8, 128], strides = [1, 1]} : vector<8x512xf32> to vector<8x128xf32>
      %76 = math.tanh %75 : vector<8x128xf32>
      %77 = vector.extract_strided_slice %62 {offsets = [0, 384], sizes = [8, 128], strides = [1, 1]} : vector<8x512xf32> to vector<8x128xf32>
      %78 = arith.negf %77 : vector<8x128xf32>
      %79 = math.exp %78 : vector<8x128xf32>
      %cst_32 = arith.constant 1.000000e+00 : f32
      %80 = vector.broadcast %cst_32 : f32 to vector<8x128xf32>
      %81 = arith.addf %80, %79 : vector<8x128xf32>
      %82 = arith.divf %80, %81 : vector<8x128xf32>
      %83 = arith.mulf %74, %57 : vector<8x128xf32>
      %84 = arith.mulf %68, %76 : vector<8x128xf32>
      %85 = arith.addf %83, %84 : vector<8x128xf32>
      %86 = math.tanh %85 : vector<8x128xf32>
      %87 = arith.mulf %82, %86 : vector<8x128xf32>
      %c3_i32_33 = arith.constant 3 : i32
      %88 = arith.muli %arg1, %c3_i32_33 : i32
      %89 = arith.addi %88, %c1_i32 : i32
      %c8_i32_34 = arith.constant 8 : i32
      %90 = arith.cmpi slt, %89, %c8_i32_34 : i32
      %91 = arith.select %90, %85, %57 : vector<8x128xf32>
      %92 = arith.select %90, %87, %56 : vector<8x128xf32>
      %93 = arith.index_cast %c1_i32 : i32 to index
      %c0_35 = arith.constant 0 : index
      %c0_36 = arith.constant 0 : index
      %94 = vector.load %arg6[%93, %c0_35, %c0_36] : memref<3x8x128xf32, #tpu.memory_space<vmem>>, vector<1x8x128xf32>
      %95 = vector.shape_cast %94 : vector<1x8x128xf32> to vector<8x128xf32>
      %96 = vector.shape_cast %92 : vector<8x128xf32> to vector<1x8x128xf32>
      tpu.vector_store %arg6[%93, %c0_35, %c0_36], %96 {strides = array<i32>} : memref<3x8x128xf32, #tpu.memory_space<vmem>>, vector<1x8x128xf32>,
      %c0_37 = arith.constant 0 : index
      %c0_38 = arith.constant 0 : index
      %97 = vector.load %arg9[%c0_37, %c0_38] : memref<8x128xf32, #tpu.memory_space<vmem>>, vector<8x128xf32>
      tpu.vector_store %arg9[%c0_37, %c0_38], %92 {strides = array<i32>} : memref<8x128xf32, #tpu.memory_space<vmem>>, vector<8x128xf32>,
      %c0_39 = arith.constant 0 : index
      %c0_40 = arith.constant 0 : index
      %98 = vector.load %arg10[%c0_39, %c0_40] : memref<8x128xf32, #tpu.memory_space<vmem>>, vector<8x128xf32>
      tpu.vector_store %arg10[%c0_39, %c0_40], %91 {strides = array<i32>} : memref<8x128xf32, #tpu.memory_space<vmem>>, vector<8x128xf32>,
      %c2_i32_41 = arith.constant 2 : i32
      %c0_42 = arith.constant 0 : index
      %c0_43 = arith.constant 0 : index
      %99 = vector.load %arg9[%c0_42, %c0_43] : memref<8x128xf32, #tpu.memory_space<vmem>>, vector<8x128xf32>
      %c0_44 = arith.constant 0 : index
      %c0_45 = arith.constant 0 : index
      %100 = vector.load %arg10[%c0_44, %c0_45] : memref<8x128xf32, #tpu.memory_space<vmem>>, vector<8x128xf32>
      %101 = arith.index_cast %c2_i32_41 : i32 to index
      %c0_46 = arith.constant 0 : index
      %c0_47 = arith.constant 0 : index
      %102 = vector.load %arg2[%101, %c0_46, %c0_47] : memref<3x8x512xf32, #tpu.memory_space<vmem>>, vector<1x8x512xf32>
      %103 = vector.shape_cast %102 : vector<1x8x512xf32> to vector<8x512xf32>
      %cst_48 = arith.constant dense<0.000000e+00> : vector<8x512xf32>
      %104 = tpu.matmul %99, %3, %cst_48 {dimension_numbers = #tpu.dot_dimension_numbers<[1], [0], [0], [1], [0, 0, 1, 1], [], []>} : vector<8x128xf32>, vector<128x512xf32>, vector<8x512xf32> -> vector<8x512xf32>
      %105 = arith.addf %103, %104 : vector<8x512xf32>
      %106 = vector.extract_strided_slice %105 {offsets = [0, 0], sizes = [8, 128], strides = [1, 1]} : vector<8x512xf32> to vector<8x128xf32>
      %107 = arith.negf %106 : vector<8x128xf32>
      %108 = math.exp %107 : vector<8x128xf32>
      %cst_49 = arith.constant 1.000000e+00 : f32
      %109 = vector.broadcast %cst_49 : f32 to vector<8x128xf32>
      %110 = arith.addf %109, %108 : vector<8x128xf32>
      %111 = arith.divf %109, %110 : vector<8x128xf32>
      %112 = vector.extract_strided_slice %105 {offsets = [0, 128], sizes = [8, 128], strides = [1, 1]} : vector<8x512xf32> to vector<8x128xf32>
      %113 = arith.negf %112 : vector<8x128xf32>
      %114 = math.exp %113 : vector<8x128xf32>
      %cst_50 = arith.constant 1.000000e+00 : f32
      %115 = vector.broadcast %cst_50 : f32 to vector<8x128xf32>
      %116 = arith.addf %115, %114 : vector<8x128xf32>
      %117 = arith.divf %115, %116 : vector<8x128xf32>
      %118 = vector.extract_strided_slice %105 {offsets = [0, 256], sizes = [8, 128], strides = [1, 1]} : vector<8x512xf32> to vector<8x128xf32>
      %119 = math.tanh %118 : vector<8x128xf32>
      %120 = vector.extract_strided_slice %105 {offsets = [0, 384], sizes = [8, 128], strides = [1, 1]} : vector<8x512xf32> to vector<8x128xf32>
      %121 = arith.negf %120 : vector<8x128xf32>
      %122 = math.exp %121 : vector<8x128xf32>
      %cst_51 = arith.constant 1.000000e+00 : f32
      %123 = vector.broadcast %cst_51 : f32 to vector<8x128xf32>
      %124 = arith.addf %123, %122 : vector<8x128xf32>
      %125 = arith.divf %123, %124 : vector<8x128xf32>
      %126 = arith.mulf %117, %100 : vector<8x128xf32>
      %127 = arith.mulf %111, %119 : vector<8x128xf32>
      %128 = arith.addf %126, %127 : vector<8x128xf32>
      %129 = math.tanh %128 : vector<8x128xf32>
      %130 = arith.mulf %125, %129 : vector<8x128xf32>
      %c3_i32_52 = arith.constant 3 : i32
      %131 = arith.muli %arg1, %c3_i32_52 : i32
      %132 = arith.addi %131, %c2_i32_41 : i32
      %c8_i32_53 = arith.constant 8 : i32
      %133 = arith.cmpi slt, %132, %c8_i32_53 : i32
      %134 = arith.select %133, %128, %100 : vector<8x128xf32>
      %135 = arith.select %133, %130, %99 : vector<8x128xf32>
      %136 = arith.index_cast %c2_i32_41 : i32 to index
      %c0_54 = arith.constant 0 : index
      %c0_55 = arith.constant 0 : index
      %137 = vector.load %arg6[%136, %c0_54, %c0_55] : memref<3x8x128xf32, #tpu.memory_space<vmem>>, vector<1x8x128xf32>
      %138 = vector.shape_cast %137 : vector<1x8x128xf32> to vector<8x128xf32>
      %139 = vector.shape_cast %135 : vector<8x128xf32> to vector<1x8x128xf32>
      tpu.vector_store %arg6[%136, %c0_54, %c0_55], %139 {strides = array<i32>} : memref<3x8x128xf32, #tpu.memory_space<vmem>>, vector<1x8x128xf32>,
      %c0_56 = arith.constant 0 : index
      %c0_57 = arith.constant 0 : index
      %140 = vector.load %arg9[%c0_56, %c0_57] : memref<8x128xf32, #tpu.memory_space<vmem>>, vector<8x128xf32>
      tpu.vector_store %arg9[%c0_56, %c0_57], %135 {strides = array<i32>} : memref<8x128xf32, #tpu.memory_space<vmem>>, vector<8x128xf32>,
      %c0_58 = arith.constant 0 : index
      %c0_59 = arith.constant 0 : index
      %141 = vector.load %arg10[%c0_58, %c0_59] : memref<8x128xf32, #tpu.memory_space<vmem>>, vector<8x128xf32>
      tpu.vector_store %arg10[%c0_58, %c0_59], %134 {strides = array<i32>} : memref<8x128xf32, #tpu.memory_space<vmem>>, vector<8x128xf32>,
      %c3_i32_60 = arith.constant 3 : i32
    } else {
    }
    %c2_i32_3 = arith.constant 2 : i32
    %7 = arith.cmpi ne, %arg1, %c2_i32_3 : i32
    %8 = arith.extui %7 : i1 to i32
    %c0_i32_4 = arith.constant 0 : i32
    %9 = arith.cmpi ne, %8, %c0_i32_4 : i32
    scf.if %9 {
      %c0_i32_7 = arith.constant 0 : i32
      %c0_8 = arith.constant 0 : index
      %c0_9 = arith.constant 0 : index
      %13 = vector.load %arg9[%c0_8, %c0_9] : memref<8x128xf32, #tpu.memory_space<vmem>>, vector<8x128xf32>
      %c0_10 = arith.constant 0 : index
      %c0_11 = arith.constant 0 : index
      %14 = vector.load %arg10[%c0_10, %c0_11] : memref<8x128xf32, #tpu.memory_space<vmem>>, vector<8x128xf32>
      %15 = arith.index_cast %c0_i32_7 : i32 to index
      %c0_12 = arith.constant 0 : index
      %c0_13 = arith.constant 0 : index
      %16 = vector.load %arg2[%15, %c0_12, %c0_13] : memref<3x8x512xf32, #tpu.memory_space<vmem>>, vector<1x8x512xf32>
      %17 = vector.shape_cast %16 : vector<1x8x512xf32> to vector<8x512xf32>
      %cst = arith.constant dense<0.000000e+00> : vector<8x512xf32>
      %18 = tpu.matmul %13, %3, %cst {dimension_numbers = #tpu.dot_dimension_numbers<[1], [0], [0], [1], [0, 0, 1, 1], [], []>} : vector<8x128xf32>, vector<128x512xf32>, vector<8x512xf32> -> vector<8x512xf32>
      %19 = arith.addf %17, %18 : vector<8x512xf32>
      %20 = vector.extract_strided_slice %19 {offsets = [0, 0], sizes = [8, 128], strides = [1, 1]} : vector<8x512xf32> to vector<8x128xf32>
      %21 = arith.negf %20 : vector<8x128xf32>
      %22 = math.exp %21 : vector<8x128xf32>
      %cst_14 = arith.constant 1.000000e+00 : f32
      %23 = vector.broadcast %cst_14 : f32 to vector<8x128xf32>
      %24 = arith.addf %23, %22 : vector<8x128xf32>
      %25 = arith.divf %23, %24 : vector<8x128xf32>
      %26 = vector.extract_strided_slice %19 {offsets = [0, 128], sizes = [8, 128], strides = [1, 1]} : vector<8x512xf32> to vector<8x128xf32>
      %27 = arith.negf %26 : vector<8x128xf32>
      %28 = math.exp %27 : vector<8x128xf32>
      %cst_15 = arith.constant 1.000000e+00 : f32
      %29 = vector.broadcast %cst_15 : f32 to vector<8x128xf32>
      %30 = arith.addf %29, %28 : vector<8x128xf32>
      %31 = arith.divf %29, %30 : vector<8x128xf32>
      %32 = vector.extract_strided_slice %19 {offsets = [0, 256], sizes = [8, 128], strides = [1, 1]} : vector<8x512xf32> to vector<8x128xf32>
      %33 = math.tanh %32 : vector<8x128xf32>
      %34 = vector.extract_strided_slice %19 {offsets = [0, 384], sizes = [8, 128], strides = [1, 1]} : vector<8x512xf32> to vector<8x128xf32>
      %35 = arith.negf %34 : vector<8x128xf32>
      %36 = math.exp %35 : vector<8x128xf32>
      %cst_16 = arith.constant 1.000000e+00 : f32
      %37 = vector.broadcast %cst_16 : f32 to vector<8x128xf32>
      %38 = arith.addf %37, %36 : vector<8x128xf32>
      %39 = arith.divf %37, %38 : vector<8x128xf32>
      %40 = arith.mulf %31, %14 : vector<8x128xf32>
      %41 = arith.mulf %25, %33 : vector<8x128xf32>
      %42 = arith.addf %40, %41 : vector<8x128xf32>
      %43 = math.tanh %42 : vector<8x128xf32>
      %44 = arith.mulf %39, %43 : vector<8x128xf32>
      %45 = arith.index_cast %c0_i32_7 : i32 to index
      %c0_17 = arith.constant 0 : index
      %c0_18 = arith.constant 0 : index
      %46 = vector.load %arg6[%45, %c0_17, %c0_18] : memref<3x8x128xf32, #tpu.memory_space<vmem>>, vector<1x8x128xf32>
      %47 = vector.shape_cast %46 : vector<1x8x128xf32> to vector<8x128xf32>
      %48 = vector.shape_cast %44 : vector<8x128xf32> to vector<1x8x128xf32>
      tpu.vector_store %arg6[%45, %c0_17, %c0_18], %48 {strides = array<i32>} : memref<3x8x128xf32, #tpu.memory_space<vmem>>, vector<1x8x128xf32>,
      %c0_19 = arith.constant 0 : index
      %c0_20 = arith.constant 0 : index
      %49 = vector.load %arg9[%c0_19, %c0_20] : memref<8x128xf32, #tpu.memory_space<vmem>>, vector<8x128xf32>
      tpu.vector_store %arg9[%c0_19, %c0_20], %44 {strides = array<i32>} : memref<8x128xf32, #tpu.memory_space<vmem>>, vector<8x128xf32>,
      %c0_21 = arith.constant 0 : index
      %c0_22 = arith.constant 0 : index
      %50 = vector.load %arg10[%c0_21, %c0_22] : memref<8x128xf32, #tpu.memory_space<vmem>>, vector<8x128xf32>
      tpu.vector_store %arg10[%c0_21, %c0_22], %42 {strides = array<i32>} : memref<8x128xf32, #tpu.memory_space<vmem>>, vector<8x128xf32>,
      %c1_i32 = arith.constant 1 : i32
      %c0_23 = arith.constant 0 : index
      %c0_24 = arith.constant 0 : index
      %51 = vector.load %arg9[%c0_23, %c0_24] : memref<8x128xf32, #tpu.memory_space<vmem>>, vector<8x128xf32>
      %c0_25 = arith.constant 0 : index
      %c0_26 = arith.constant 0 : index
      %52 = vector.load %arg10[%c0_25, %c0_26] : memref<8x128xf32, #tpu.memory_space<vmem>>, vector<8x128xf32>
      %53 = arith.index_cast %c1_i32 : i32 to index
      %c0_27 = arith.constant 0 : index
      %c0_28 = arith.constant 0 : index
      %54 = vector.load %arg2[%53, %c0_27, %c0_28] : memref<3x8x512xf32, #tpu.memory_space<vmem>>, vector<1x8x512xf32>
      %55 = vector.shape_cast %54 : vector<1x8x512xf32> to vector<8x512xf32>
      %cst_29 = arith.constant dense<0.000000e+00> : vector<8x512xf32>
      %56 = tpu.matmul %51, %3, %cst_29 {dimension_numbers = #tpu.dot_dimension_numbers<[1], [0], [0], [1], [0, 0, 1, 1], [], []>} : vector<8x128xf32>, vector<128x512xf32>, vector<8x512xf32> -> vector<8x512xf32>
      %57 = arith.addf %55, %56 : vector<8x512xf32>
      %58 = vector.extract_strided_slice %57 {offsets = [0, 0], sizes = [8, 128], strides = [1, 1]} : vector<8x512xf32> to vector<8x128xf32>
      %59 = arith.negf %58 : vector<8x128xf32>
      %60 = math.exp %59 : vector<8x128xf32>
      %cst_30 = arith.constant 1.000000e+00 : f32
      %61 = vector.broadcast %cst_30 : f32 to vector<8x128xf32>
      %62 = arith.addf %61, %60 : vector<8x128xf32>
      %63 = arith.divf %61, %62 : vector<8x128xf32>
      %64 = vector.extract_strided_slice %57 {offsets = [0, 128], sizes = [8, 128], strides = [1, 1]} : vector<8x512xf32> to vector<8x128xf32>
      %65 = arith.negf %64 : vector<8x128xf32>
      %66 = math.exp %65 : vector<8x128xf32>
      %cst_31 = arith.constant 1.000000e+00 : f32
      %67 = vector.broadcast %cst_31 : f32 to vector<8x128xf32>
      %68 = arith.addf %67, %66 : vector<8x128xf32>
      %69 = arith.divf %67, %68 : vector<8x128xf32>
      %70 = vector.extract_strided_slice %57 {offsets = [0, 256], sizes = [8, 128], strides = [1, 1]} : vector<8x512xf32> to vector<8x128xf32>
      %71 = math.tanh %70 : vector<8x128xf32>
      %72 = vector.extract_strided_slice %57 {offsets = [0, 384], sizes = [8, 128], strides = [1, 1]} : vector<8x512xf32> to vector<8x128xf32>
      %73 = arith.negf %72 : vector<8x128xf32>
      %74 = math.exp %73 : vector<8x128xf32>
      %cst_32 = arith.constant 1.000000e+00 : f32
      %75 = vector.broadcast %cst_32 : f32 to vector<8x128xf32>
      %76 = arith.addf %75, %74 : vector<8x128xf32>
      %77 = arith.divf %75, %76 : vector<8x128xf32>
      %78 = arith.mulf %69, %52 : vector<8x128xf32>
      %79 = arith.mulf %63, %71 : vector<8x128xf32>
      %80 = arith.addf %78, %79 : vector<8x128xf32>
      %81 = math.tanh %80 : vector<8x128xf32>
      %82 = arith.mulf %77, %81 : vector<8x128xf32>
      %83 = arith.index_cast %c1_i32 : i32 to index
      %c0_33 = arith.constant 0 : index
      %c0_34 = arith.constant 0 : index
      %84 = vector.load %arg6[%83, %c0_33, %c0_34] : memref<3x8x128xf32, #tpu.memory_space<vmem>>, vector<1x8x128xf32>
      %85 = vector.shape_cast %84 : vector<1x8x128xf32> to vector<8x128xf32>
      %86 = vector.shape_cast %82 : vector<8x128xf32> to vector<1x8x128xf32>
      tpu.vector_store %arg6[%83, %c0_33, %c0_34], %86 {strides = array<i32>} : memref<3x8x128xf32, #tpu.memory_space<vmem>>, vector<1x8x128xf32>,
      %c0_35 = arith.constant 0 : index
      %c0_36 = arith.constant 0 : index
      %87 = vector.load %arg9[%c0_35, %c0_36] : memref<8x128xf32, #tpu.memory_space<vmem>>, vector<8x128xf32>
      tpu.vector_store %arg9[%c0_35, %c0_36], %82 {strides = array<i32>} : memref<8x128xf32, #tpu.memory_space<vmem>>, vector<8x128xf32>,
      %c0_37 = arith.constant 0 : index
      %c0_38 = arith.constant 0 : index
      %88 = vector.load %arg10[%c0_37, %c0_38] : memref<8x128xf32, #tpu.memory_space<vmem>>, vector<8x128xf32>
      tpu.vector_store %arg10[%c0_37, %c0_38], %80 {strides = array<i32>} : memref<8x128xf32, #tpu.memory_space<vmem>>, vector<8x128xf32>,
      %c2_i32_39 = arith.constant 2 : i32
      %c0_40 = arith.constant 0 : index
      %c0_41 = arith.constant 0 : index
      %89 = vector.load %arg9[%c0_40, %c0_41] : memref<8x128xf32, #tpu.memory_space<vmem>>, vector<8x128xf32>
      %c0_42 = arith.constant 0 : index
      %c0_43 = arith.constant 0 : index
      %90 = vector.load %arg10[%c0_42, %c0_43] : memref<8x128xf32, #tpu.memory_space<vmem>>, vector<8x128xf32>
      %91 = arith.index_cast %c2_i32_39 : i32 to index
      %c0_44 = arith.constant 0 : index
      %c0_45 = arith.constant 0 : index
      %92 = vector.load %arg2[%91, %c0_44, %c0_45] : memref<3x8x512xf32, #tpu.memory_space<vmem>>, vector<1x8x512xf32>
      %93 = vector.shape_cast %92 : vector<1x8x512xf32> to vector<8x512xf32>
      %cst_46 = arith.constant dense<0.000000e+00> : vector<8x512xf32>
      %94 = tpu.matmul %89, %3, %cst_46 {dimension_numbers = #tpu.dot_dimension_numbers<[1], [0], [0], [1], [0, 0, 1, 1], [], []>} : vector<8x128xf32>, vector<128x512xf32>, vector<8x512xf32> -> vector<8x512xf32>
      %95 = arith.addf %93, %94 : vector<8x512xf32>
      %96 = vector.extract_strided_slice %95 {offsets = [0, 0], sizes = [8, 128], strides = [1, 1]} : vector<8x512xf32> to vector<8x128xf32>
      %97 = arith.negf %96 : vector<8x128xf32>
      %98 = math.exp %97 : vector<8x128xf32>
      %cst_47 = arith.constant 1.000000e+00 : f32
      %99 = vector.broadcast %cst_47 : f32 to vector<8x128xf32>
      %100 = arith.addf %99, %98 : vector<8x128xf32>
      %101 = arith.divf %99, %100 : vector<8x128xf32>
      %102 = vector.extract_strided_slice %95 {offsets = [0, 128], sizes = [8, 128], strides = [1, 1]} : vector<8x512xf32> to vector<8x128xf32>
      %103 = arith.negf %102 : vector<8x128xf32>
      %104 = math.exp %103 : vector<8x128xf32>
      %cst_48 = arith.constant 1.000000e+00 : f32
      %105 = vector.broadcast %cst_48 : f32 to vector<8x128xf32>
      %106 = arith.addf %105, %104 : vector<8x128xf32>
      %107 = arith.divf %105, %106 : vector<8x128xf32>
      %108 = vector.extract_strided_slice %95 {offsets = [0, 256], sizes = [8, 128], strides = [1, 1]} : vector<8x512xf32> to vector<8x128xf32>
      %109 = math.tanh %108 : vector<8x128xf32>
      %110 = vector.extract_strided_slice %95 {offsets = [0, 384], sizes = [8, 128], strides = [1, 1]} : vector<8x512xf32> to vector<8x128xf32>
      %111 = arith.negf %110 : vector<8x128xf32>
      %112 = math.exp %111 : vector<8x128xf32>
      %cst_49 = arith.constant 1.000000e+00 : f32
      %113 = vector.broadcast %cst_49 : f32 to vector<8x128xf32>
      %114 = arith.addf %113, %112 : vector<8x128xf32>
      %115 = arith.divf %113, %114 : vector<8x128xf32>
      %116 = arith.mulf %107, %90 : vector<8x128xf32>
      %117 = arith.mulf %101, %109 : vector<8x128xf32>
      %118 = arith.addf %116, %117 : vector<8x128xf32>
      %119 = math.tanh %118 : vector<8x128xf32>
      %120 = arith.mulf %115, %119 : vector<8x128xf32>
      %121 = arith.index_cast %c2_i32_39 : i32 to index
      %c0_50 = arith.constant 0 : index
      %c0_51 = arith.constant 0 : index
      %122 = vector.load %arg6[%121, %c0_50, %c0_51] : memref<3x8x128xf32, #tpu.memory_space<vmem>>, vector<1x8x128xf32>
      %123 = vector.shape_cast %122 : vector<1x8x128xf32> to vector<8x128xf32>
      %124 = vector.shape_cast %120 : vector<8x128xf32> to vector<1x8x128xf32>
      tpu.vector_store %arg6[%121, %c0_50, %c0_51], %124 {strides = array<i32>} : memref<3x8x128xf32, #tpu.memory_space<vmem>>, vector<1x8x128xf32>,
      %c0_52 = arith.constant 0 : index
      %c0_53 = arith.constant 0 : index
      %125 = vector.load %arg9[%c0_52, %c0_53] : memref<8x128xf32, #tpu.memory_space<vmem>>, vector<8x128xf32>
      tpu.vector_store %arg9[%c0_52, %c0_53], %120 {strides = array<i32>} : memref<8x128xf32, #tpu.memory_space<vmem>>, vector<8x128xf32>,
      %c0_54 = arith.constant 0 : index
      %c0_55 = arith.constant 0 : index
      %126 = vector.load %arg10[%c0_54, %c0_55] : memref<8x128xf32, #tpu.memory_space<vmem>>, vector<8x128xf32>
      tpu.vector_store %arg10[%c0_54, %c0_55], %118 {strides = array<i32>} : memref<8x128xf32, #tpu.memory_space<vmem>>, vector<8x128xf32>,
      %c3_i32 = arith.constant 3 : i32
    } else {
    }
    %c2_i32_5 = arith.constant 2 : i32
    %10 = arith.cmpi eq, %arg1, %c2_i32_5 : i32
    %11 = arith.extui %10 : i1 to i32
    %c0_i32_6 = arith.constant 0 : i32
    %12 = arith.cmpi ne, %11, %c0_i32_6 : i32
    scf.if %12 {
      %c0_7 = arith.constant 0 : index
      %c0_8 = arith.constant 0 : index
      %13 = vector.load %arg9[%c0_7, %c0_8] : memref<8x128xf32, #tpu.memory_space<vmem>>, vector<8x128xf32>
      %c0_9 = arith.constant 0 : index
      %c0_10 = arith.constant 0 : index
      %14 = vector.load %arg7[%c0_9, %c0_10] : memref<8x128xf32, #tpu.memory_space<vmem>>, vector<8x128xf32>
      tpu.vector_store %arg7[%c0_9, %c0_10], %13 {strides = array<i32>} : memref<8x128xf32, #tpu.memory_space<vmem>>, vector<8x128xf32>,
      %c0_11 = arith.constant 0 : index
      %c0_12 = arith.constant 0 : index
      %15 = vector.load %arg10[%c0_11, %c0_12] : memref<8x128xf32, #tpu.memory_space<vmem>>, vector<8x128xf32>
      %c0_13 = arith.constant 0 : index
      %c0_14 = arith.constant 0 : index
      %16 = vector.load %arg8[%c0_13, %c0_14] : memref<8x128xf32, #tpu.memory_space<vmem>>, vector<8x128xf32>
      tpu.vector_store %arg8[%c0_13, %c0_14], %15 {strides = array<i32>} : memref<8x128xf32, #tpu.memory_space<vmem>>, vector<8x128xf32>,
    } else {
    }
    return
  }
  func.func @transform_0(%arg0: i32, %arg1: i32) -> (i32, i32, i32) {
    %c0_i32 = arith.constant 0 : i32
    %c0_i32_0 = arith.constant 0 : i32
    return %arg1, %arg0, %c0_i32 : i32, i32, i32
  }
  func.func @transform_1(%arg0: i32, %arg1: i32) -> (i32, i32) {
    %c0_i32 = arith.constant 0 : i32
    %c0_i32_0 = arith.constant 0 : i32
    %c0_i32_1 = arith.constant 0 : i32
    return %c0_i32, %c0_i32_0 : i32, i32
  }
  func.func @transform_2(%arg0: i32, %arg1: i32) -> (i32, i32) {
    %c0_i32 = arith.constant 0 : i32
    %c0_i32_0 = arith.constant 0 : i32
    return %arg0, %c0_i32 : i32, i32
  }
  func.func @transform_3(%arg0: i32, %arg1: i32) -> (i32, i32) {
    %c0_i32 = arith.constant 0 : i32
    %c0_i32_0 = arith.constant 0 : i32
    return %arg0, %c0_i32 : i32, i32
  }
  func.func @transform_4(%arg0: i32, %arg1: i32) -> (i32, i32, i32) {
    %c0_i32 = arith.constant 0 : i32
    %c0_i32_0 = arith.constant 0 : i32
    return %arg1, %arg0, %c0_i32 : i32, i32, i32
  }
  func.func @transform_5(%arg0: i32, %arg1: i32) -> (i32, i32) {
    %c0_i32 = arith.constant 0 : i32
    %c0_i32_0 = arith.constant 0 : i32
    return %arg0, %c0_i32 : i32, i32
  }
  func.func @transform_6(%arg0: i32, %arg1: i32) -> (i32, i32) {
    %c0_i32 = arith.constant 0 : i32
    %c0_i32_0 = arith.constant 0 : i32
    return %arg0, %c0_i32 : i32, i32
  }
}

</mosaic_0001>

<bundles_post_ra>
// kernel: tpu_custom_call.1
= control target key start
LH: loop header
LB: loop body
LE: loop exit
PB: predicated region body
PF: predicated region fallthrough
CT: control target
= control target key end

     0   :  { %s3603_s0 = inlined_call_operand.hbm [shape: f32[9,8,512], index: 0, kind: input, shape index: {}]   ;;  %s3604_s1 = inlined_call_operand.hbm [shape: f32[128,512], index: 1, kind: input, shape index: {}]   ;;  %s3605_s2 = inlined_call_operand.hbm [shape: f32[8,128], index: 2, kind: input, shape index: {}]   ;;  %s3606_s3 = inlined_call_operand.vmem [shape: f32[8,128], index: 3, kind: input, shape index: {}]   ;;  %s3607_s4 = inlined_call_operand.hbm [shape: f32[9,8,128], index: 4, kind: output, shape index: {0}]   ;;  %s3608_s5 = inlined_call_operand.hbm [shape: f32[8,128], index: 5, kind: output, shape index: {1}]   ;;  %s3609_s6 = inlined_call_operand.hbm [shape: f32[8,128], index: 6, kind: output, shape index: {2}]  }
   0x1   :  { %3665 = sst [smem:[#allocation69_spill]] %s3604_s1 }
   0x2   :  { %12 = vsyncpa [#allocation5], 0 }
   0x3   :  { %14 = vsyncpa [#allocation5 + $0x1], 0 }
   0x4   :  { %15 = vsyncpa [#allocation8], 0 }
   0x5   :  { %16 = vsyncpa [#allocation6], 0 }
   0x6   :  { %18 = vsyncpa [#allocation6 + $0x1], 0 }
   0x7   :  { %19 = vsyncpa [#allocation12], 0  ;;  %s2654_s21 = smov 0   ;;  %s2656_s22 = smov 0  }
   0x8   :  { %s2658_s23 = smov 0   ;;  %s2660_s24 = smov 0  }
   0x9   :  { %s2662_s25 = smov 0   ;;  %s2664_s26 = smov 0  }
   0xa LB: > { %s1726_s27 = sadd.s32 4294967295, %s2605_s26   ;;  %s1727_s28 = sadd.s32 4294967294, %s2605_s26   ;;  %s2605_s26 = sphi %s2664_s26, %s25_s26   ;;  %s2601_s25 = sphi %s2662_s25, %s3795_s25   ;;  %s2597_s24 = sphi %s2660_s24, %s3794_s24   ;;  %s2593_s23 = sphi %s2658_s23, %s3793_s23   ;;  %s2589_s22 = sphi %s2656_s22, %s3792_s22   ;;  %s2585_s21 = sphi %s2654_s21, %s3791_s21  }
   0xb   : > { %p59_p0 = scmp.ne.s32.totalorder %s2589_s22, %s2585_s21  ;;  %p2688_p1 = scmp.eq.s32.totalorder %s1726_s27, 0 }
   0xc   : > { %p2692_p2 = scmp.eq.s32.totalorder %s1726_s27, 2  ;;  %p164_p3 = scmp.eq.s32.totalorder %s1727_s28, 2 }
   0xd   : > { %s3666_s29 = scalar_select %p2688_p1, 1, 0 }
   0xe   : > { %s3667_s30 = scalar_select %p2692_p2, 1, 0 }
   0xf   : > { %p2698_p4 = por %p2688_p1, %p59_p0  ;;  %p1728_p5 = scmp.ge.s32.totalorder %s2605_s26, 1 }
  0x10   : > { %p2703_p6 = por %p164_p3, %p59_p0  ;;  %p223_p7 = scmp.lt.s32.totalorder %s2605_s26, 4 }
  0x11   : > { %s3668_s7 = scalar_select %p2698_p4, 1, 0 }
  0x12   : > { %s3669_s8 = scalar_select %p2703_p6, 1, 0 }
  0x13   : > { %p2708_p8 = pnand %p1728_p5, %p223_p7  ;;  %s2607_s10 = smov [#allocation7]  }
  0x14   : > { %3670 = sst [smem:[#allocation18_spill]] %s3669_s8  ;;  %s235_s11 = sshll.u32 %s2607_s10, 4  ;;  %s236_s11 = int_to_ptr.vmem [resolvable:$true] %s235_s11 }
  0x15   : > { %s3671_s9 = scalar_select %p2708_p8, 1, 0 }
  0x16   : > { %p2198_p9 = pneg %p2708_p8  ;;  %s2608_s13 = smov [#allocation9]  }
  0x17   : > { %s251_s14 = sshll.u32 %s2608_s13, 4  ;;  %s3673_s1 = sld [smem:[#allocation69_spill]]  ;;  %s2720_s14 = int_to_ptr.vmem [resolvable:$true] %s251_s14 }
  0x18   : > { %p2716_p10 = pnand %p2198_p9, %p2688_p1 }
  0x1a   : > { %p2379_p12 = pneg %p2716_p10 }
  0x1d   : > { %s2377_s17 = scalar_lea.hbm %s3673_s1, 8192 }
  0x1e   : > { %p2378_p11 = scmp.ne.s32.totalorder %s3673_s1, %s2377_s17  ;;  %p2384_p3 = scmp.lt.u32.totalorder %s2377_s17, %s3673_s1 }
  0x20   : > { %p2380_p13 = pnand %p2379_p12, %p2378_p11 }
  0x22   : > { %p2381_p0 = pneg %p2380_p13 }
  0x24   : > { %p2386_p5 = pnand %p2384_p3, %p2381_p0 }
  0x26   : > { %2389 = shalt.err (!%p2386_p5)
}
  0x27   : > { %s2390_s28 = scalar_lea.vmem %s236_s11, 8192  ;;  %p2398_p1 = scmp.lt.s32.totalorder %s236_s11, %s236_s11 }
  0x28   : > { %p2391_p7 = scmp.ne.s32.totalorder %s236_s11, %s2390_s28  ;;  %p2399_p4 = scmp.lt.s32.totalorder %s2390_s28, %s2390_s28 }
  0x2a   : > { %p2393_p9 = pnand %p2391_p7, %p2379_p12  ;;  %p2400_p8 = por %p2399_p4, %p2398_p1 }
  0x2c   : > { %p2394_p6 = pneg %p2393_p9 }
  0x2e   : > { %p2401_p2 = pnand %p2400_p8, %p2394_p6 }
  0x30   : > { %2404 = shalt.err (!%p2401_p2)
}
  0x31   : > { %s3616_s10 = smov 512   ;;  %s3617_s13 = smov 32  }
  0x32   : > { %2201 = dma.hbm_to_vmem [thread:$0]  (!%p2716_p10), %s3673_s1, 8192, %s236_s11, [#allocation8], %s3616_s10, %s3616_s10, %s3617_s13  }
  0x33   : > { %s2405_s19 = scalar_lea.hbm %s3605_s2, 128 }
  0x34   : > { %p2406_p1 = scmp.ne.s32.totalorder %s3605_s2, %s2405_s19  ;;  %p2412_p6 = scmp.lt.u32.totalorder %s2405_s19, %s3605_s2 }
  0x36   : > { %p2408_p2 = pnand %p2406_p1, %p2379_p12 }
  0x38   : > { %p2409_p4 = pneg %p2408_p2 }
  0x3a   : > { %p2414_p8 = pnand %p2412_p6, %p2409_p4 }
  0x3c   : > { %2417 = shalt.err (!%p2414_p8)
}
  0x3d   : > { %s2418_s11 = scalar_lea.vmem %s2720_s14, 128  ;;  %p2426_p3 = scmp.lt.s32.totalorder %s2720_s14, %s2720_s14 }
  0x3e   : > { %p2419_p11 = scmp.ne.s32.totalorder %s2720_s14, %s2418_s11  ;;  %p2427_p5 = scmp.lt.s32.totalorder %s2418_s11, %s2418_s11 }
  0x40   : > { %p2421_p13 = pnand %p2419_p11, %p2379_p12  ;;  %p2428_p7 = por %p2427_p5, %p2426_p3 }
  0x42   : > { %p2422_p0 = pneg %p2421_p13 }
  0x44   : > { %p2429_p9 = pnand %p2428_p7, %p2422_p0 }
  0x46   : > { %2432 = shalt.err (!%p2429_p9)
}
  0x47   : > { %2204 = dma.hbm_to_vmem [thread:$0]  (!%p2716_p10), %s3605_s2, 128, %s2720_s14, [#allocation8]  }
  0x48   : > { %s34_s16 = sadd.s32 1, %s2601_s25  ;;  %s46_s17 = sadd.s32 1, %s2593_s23 }
  0x49   : > { %p35_p12 = scmp.ge.s32.totalorder %s34_s16, 3  ;;  %p53_p1 = scmp.ne.s32.totalorder %s2593_s23, %s2589_s22 }
  0x4a   : > { %p54_p2 = scmp.eq.s32.totalorder %s2605_s26, 0  ;;  %p2215_p4 = scmp.lt.s32.totalorder %s2605_s26, 3 }
  0x4b   : > { %s3797_s16 = smov (%p35_p12, %s34_s16), 0  ;;  %p3674_p8 = scmp.ne.s32.totalorder %s3667_s30, 0 }
  0x4c   : > { %p55_p6 = por %p54_p2, %p53_p1  ;;  %s41_s18 = ssub.s32 %s2601_s25, %s3797_s16 }
  0x4d   : > { %p2782_p11 = por %p3674_p8, %p53_p1  ;;  %s269_s19 = sand.u32 1, %s2593_s23  }
  0x4e   : > { %p44_p13 = scmp.eq.s32.totalorder %s41_s18, 0  ;;  %s2175_s14 = smul.u32 96, %s269_s19 }
  0x4f   : > { %p2789_p10 = pnand %p2215_p4, %p55_p6  ;;  %s1790_s28 = smul.u32 1536, %s2601_s25 }
  0x50   : > { %s2794_s27 = scalar_select %p44_p13, %s2593_s23, %s46_s17  }
  0x51   : > { %s273_s11 = scalar_lea.vmem [#allocation4], %s2175_s14  ;;  %s2800_s13 = scalar_lea.hbm %s3603_s0, %s1790_s28 }
  0x52   : > { %s283_s8 = sshll.u32 %s273_s11, 4  ;;  %s2804_s18 = scalar_lea.sflag [#allocation5], %s269_s19  ;;  %s2802_s8 = int_to_ptr.vmem [resolvable:$true] %s283_s8 }
  0x53   : > { %s2433_s1 = scalar_lea.hbm %s2800_s13, 1536  ;;  %p2435_p3 = pneg %p2789_p10 }
  0x54   : > { %p2434_p0 = scmp.ne.s32.totalorder %s2800_s13, %s2433_s1  ;;  %s2438_s14 = scalar_lea.hbm %s3603_s0, 4608 }
  0x55   : > { %p2439_p9 = scmp.lt.u32.totalorder %s2800_s13, %s3603_s0  ;;  %p2440_p12 = scmp.lt.u32.totalorder %s2438_s14, %s2433_s1 }
  0x56   : > { %p2436_p5 = pnand %p2435_p3, %p2434_p0  ;;  %p2442_p2 = scmp.lt.u32.totalorder %s2433_s1, %s2800_s13 }
  0x57   : > { %p2441_p1 = por %p2440_p12, %p2439_p9 }
  0x58   : > { %p2437_p7 = pneg %p2436_p5 }
  0x59   : > { %p2443_p4 = por %p2442_p2, %p2441_p1 }
  0x5b   : > { %p2444_p6 = pnand %p2443_p4, %p2437_p7 }
  0x5d   : > { %2447 = shalt.err (!%p2444_p6)
}
  0x5e   : > { %s2448_s19 = scalar_lea.vmem %s2802_s8, 1536  ;;  %s2611_s15 = smov [#allocation4]  }
  0x5f   : > { %p2449_p8 = scmp.ne.s32.totalorder %s2802_s8, %s2448_s19  ;;  %s2453_s17 = sshll.u32 %s2611_s15, 4  ;;  %s2454_s17 = int_to_ptr.vmem [resolvable:$false] %s2453_s17 }
  0x60   : > { %s2455_s10 = scalar_lea.vmem %s2454_s17, 3072  ;;  %p2456_p5 = scmp.lt.s32.totalorder %s2802_s8, %s2454_s17 }
  0x61   : > { %p2451_p13 = pnand %p2449_p8, %p2435_p3  ;;  %p2457_p9 = scmp.lt.s32.totalorder %s2455_s10, %s2448_s19 }
  0x63   : > { %p2452_p0 = pneg %p2451_p13  ;;  %p2458_p12 = por %p2457_p9, %p2456_p5 }
  0x65   : > { %p2459_p1 = pnand %p2458_p12, %p2452_p0 }
  0x67   : > { %2462 = shalt.err (!%p2459_p1)
}
  0x68   : > { %s3677_s1 = smov 32   ;;  %s3678_s14 = smov 512  }
  0x69   : > { %2208 = dma.hbm_to_vmem [thread:$0]  (!%p2789_p10), %s2800_s13, 1536, %s2802_s8, %s2804_s18, %s3678_s14, %s3678_s14, %s3677_s1  }
  0x6a   : > { %p3679_p3 = scmp.ne.s32.totalorder %s3671_s9, 0 }
  0x6c   : > { %295 = sbr.rel (%p3679_p3) target bundleno = 1861 (0x745), region = 36 }
  0x73   : > { %s2838_s28 = sand.u32 1, %s2589_s22   ;;  %p3680_p7 = scmp.ne.s32.totalorder %s3668_s7, 0 }
  0x74   : > { %s2176_s11 = smul.u32 96, %s2838_s28  ;;  %s298_s19 = scalar_lea.sflag [#allocation5], %s2838_s28 }
  0x76   : > { %s2842_s15 = scalar_lea.vmem [#allocation4], %s2176_s11 }
  0x77   : > { %2568 = dma.done.wait (%p3680_p7), %s298_s19, 1536  }
  0x78   : > { %2570 = vsyncadd (%p3680_p7), %s298_s19, 4294965760  ;;  %p3681_p10 = scmp.ne.s32.totalorder %s3666_s29, 0 }
  0x7a   : > { %2572 = dma.done.wait (%p3681_p10), [#allocation8], 8320  }
  0x7b   : > { %2574 = vsyncadd (%p3681_p10), [#allocation8], 4294958976  ;;  %s2177_s9 = smul.u32 24, %s2838_s28  ;;  %p1738_p2 = scmp.ne.s32.totalorder %s2597_s24, 0 }
  0x7c   : > { %v352_v0 = vld [vmem:[#allocation9] sm:$0xff] (!%p1738_p2)  ;;  %v354_v1 = vld [vmem:[%s3606_s3] sm:$0xff] (!%p1738_p2) }
  0x7d   : > { %s2853_s13 = scalar_lea.vmem [#allocation10], %s2177_s9  ;;  %351 = sbr.rel (%p1738_p2) target bundleno = 132 (0x84), region = 52  ;;  %353 = vst [vmem:[#allocation2] sm:$0xff] (!%p1738_p2), %v352_v0  ;;  %355 = vst [vmem:[#allocation3] sm:$0xff] (!%p1738_p2), %v354_v1 }
  0x84 PF: > { %v2859_v2 = vld [vmem:[#allocation7] sm:$0xff]  ;;  %v2861_v3 = vld [vmem:[#allocation7 + $0x8] sm:$0xff]  ;;  %v2863_v4 = vld [vmem:[#allocation7 + $0x10] sm:$0xff]  ;;  %p1739_p4 = scmp.ne.s32.totalorder %s2597_s24, 2 }
  0x85   : > { %v2865_v5 = vld [vmem:[#allocation7 + $0x18] sm:$0xff]  ;;  %v2867_v6 = vld [vmem:[#allocation7 + $0x20] sm:$0xff]  ;;  %v2869_v7 = vld [vmem:[#allocation7 + $0x28] sm:$0xff]  ;;  %s3197_s29 = smul.u32 (!%p1739_p4), 3, %s2597_s24 }
  0x86   : > { %3682 = vst [vmem:[#allocation19_spill] sm:$0xff] %v2867_v6  ;;  %v2871_v8 = vld [vmem:[#allocation7 + $0x30] sm:$0xff]  ;;  %v2873_v9 = vld [vmem:[#allocation7 + $0x38] sm:$0xff]  ;;  %v2875_v10 = vld [vmem:[#allocation7 + $0x40] sm:$0xff] }
  0x87   : > { %3683 = vst [vmem:[#allocation20_spill] sm:$0xff] %v2871_v8  ;;  %3684 = vst [vmem:[#allocation21_spill] sm:$0xff] %v2873_v9  ;;  %v2877_v11 = vld [vmem:[#allocation7 + $0x48] sm:$0xff]  ;;  %v2879_v12 = vld [vmem:[#allocation7 + $0x50] sm:$0xff]  ;;  %p601_p6 = scmp.lt.s32.totalorder (!%p1739_p4), %s3197_s29, 8  ;;  %s787_s18 = sadd.s32 (!%p1739_p4), 1, %s3197_s29 }
  0x88   : > { %v2881_v13 = vld [vmem:[#allocation7 + $0x58] sm:$0xff]  ;;  %v2883_v14 = vld [vmem:[#allocation7 + $0x60] sm:$0xff]  ;;  %v2885_v15 = vld [vmem:[#allocation7 + $0x68] sm:$0xff]  ;;  %p788_p8 = scmp.lt.s32.totalorder (!%p1739_p4), %s787_s18, 8  ;;  %s975_s10 = sadd.s32 (!%p1739_p4), 2, %s3197_s29 }
  0x89   : > { %3685 = vst [vmem:[#allocation22_spill] sm:$0xff] %v2881_v13  ;;  %3686 = vst [vmem:[#allocation23_spill] sm:$0xff] %v2885_v15  ;;  %v2887_v16 = vld [vmem:[#allocation7 + $0x70] sm:$0xff]  ;;  %v2889_v17 = vld [vmem:[#allocation7 + $0x78] sm:$0xff]  ;;  %p976_p13 = scmp.lt.s32.totalorder (!%p1739_p4), %s975_s10, 8 }
  0x8a   : > { %3687 = vst [vmem:[#allocation24_spill] sm:$0xff] %v2887_v16  ;;  %3688 = vst [vmem:[#allocation25_spill] sm:$0xff] %v2889_v17  ;;  %v2891_v18 = vld [vmem:[#allocation7 + $0x80] sm:$0xff]  ;;  %v2893_v19 = vld [vmem:[#allocation7 + $0x88] sm:$0xff] }
  0x8b   : > { %v2895_v20 = vld [vmem:[#allocation7 + $0x90] sm:$0xff]  ;;  %v2897_v21 = vld [vmem:[#allocation7 + $0x98] sm:$0xff]  ;;  %v2899_v22 = vld [vmem:[#allocation7 + $0xa0] sm:$0xff] }
  0x8c   : > { %3689 = vst [vmem:[#allocation26_spill] sm:$0xff] %v2899_v22  ;;  %v2901_v23 = vld [vmem:[#allocation7 + $0xa8] sm:$0xff]  ;;  %v2903_v24 = vld [vmem:[#allocation7 + $0xb0] sm:$0xff]  ;;  %v2905_v25 = vld [vmem:[#allocation7 + $0xb8] sm:$0xff] }
  0x8d   : > { %3690 = vst [vmem:[#allocation27_spill] sm:$0xff] %v2901_v23  ;;  %3691 = vst [vmem:[#allocation28_spill] sm:$0xff] %v2903_v24  ;;  %v2907_v26 = vld [vmem:[#allocation7 + $0xc0] sm:$0xff]  ;;  %v2909_v27 = vld [vmem:[#allocation7 + $0xc8] sm:$0xff] }
  0x8e   : > { %3692 = vst [vmem:[#allocation29_spill] sm:$0xff] %v2905_v25  ;;  %3693 = vst [vmem:[#allocation30_spill] sm:$0xff] %v2907_v26  ;;  %v2911_v28 = vld [vmem:[#allocation7 + $0xd0] sm:$0xff]  ;;  %v2913_v29 = vld [vmem:[#allocation7 + $0xd8] sm:$0xff] }
  0x8f   : > { %3694 = vst [vmem:[#allocation31_spill] sm:$0xff] %v2911_v28  ;;  %3695 = vst [vmem:[#allocation32_spill] sm:$0xff] %v2913_v29  ;;  %v2915_v30 = vld [vmem:[#allocation7 + $0xe0] sm:$0xff]  ;;  %v2917_v31 = vld [vmem:[#allocation7 + $0xe8] sm:$0xff] }
  0x90   : > { %3696 = vst [vmem:[#allocation33_spill] sm:$0xff] %v2915_v30  ;;  %3697 = vst [vmem:[#allocation34_spill] sm:$0xff] %v2917_v31  ;;  %v2919_v32 = vld [vmem:[#allocation7 + $0xf0] sm:$0xff]  ;;  %v2921_v33 = vld [vmem:[#allocation7 + $0xf8] sm:$0xff] }
  0x91   : > { %3698 = vst [vmem:[#allocation35_spill] sm:$0xff] %v2919_v32  ;;  %3699 = vst [vmem:[#allocation36_spill] sm:$0xff] %v2921_v33  ;;  %v2923_v34 = vld [vmem:[#allocation7 + $0x100] sm:$0xff]  ;;  %v2925_v35 = vld [vmem:[#allocation7 + $0x108] sm:$0xff] }
  0x92   : > { %3700 = vst [vmem:[#allocation37_spill] sm:$0xff] %v2923_v34  ;;  %3701 = vst [vmem:[#allocation38_spill] sm:$0xff] %v2925_v35  ;;  %v2927_v36 = vld [vmem:[#allocation7 + $0x110] sm:$0xff]  ;;  %v2929_v37 = vld [vmem:[#allocation7 + $0x118] sm:$0xff] }
  0x93   : > { %3702 = vst [vmem:[#allocation39_spill] sm:$0xff] %v2927_v36  ;;  %3703 = vst [vmem:[#allocation40_spill] sm:$0xff] %v2929_v37  ;;  %v2931_v38 = vld [vmem:[#allocation7 + $0x120] sm:$0xff]  ;;  %v2933_v39 = vld [vmem:[#allocation7 + $0x128] sm:$0xff] }
  0x94   : > { %3704 = vst [vmem:[#allocation41_spill] sm:$0xff] %v2931_v38  ;;  %3705 = vst [vmem:[#allocation42_spill] sm:$0xff] %v2933_v39  ;;  %v2935_v40 = vld [vmem:[#allocation7 + $0x130] sm:$0xff]  ;;  %v2937_v41 = vld [vmem:[#allocation7 + $0x138] sm:$0xff] }
  0x95   : > { %3706 = vst [vmem:[#allocation43_spill] sm:$0xff] %v2935_v40  ;;  %3707 = vst [vmem:[#allocation44_spill] sm:$0xff] %v2937_v41  ;;  %v2939_v42 = vld [vmem:[#allocation7 + $0x140] sm:$0xff]  ;;  %v2941_v43 = vld [vmem:[#allocation7 + $0x148] sm:$0xff] }
  0x96   : > { %3708 = vst [vmem:[#allocation45_spill] sm:$0xff] %v2939_v42  ;;  %3709 = vst [vmem:[#allocation46_spill] sm:$0xff] %v2941_v43  ;;  %v2943_v44 = vld [vmem:[#allocation7 + $0x150] sm:$0xff]  ;;  %v2945_v45 = vld [vmem:[#allocation7 + $0x158] sm:$0xff] }
  0x97   : > { %3710 = vst [vmem:[#allocation47_spill] sm:$0xff] %v2943_v44  ;;  %3711 = vst [vmem:[#allocation48_spill] sm:$0xff] %v2945_v45  ;;  %v2947_v46 = vld [vmem:[#allocation7 + $0x160] sm:$0xff]  ;;  %v2949_v47 = vld [vmem:[#allocation7 + $0x168] sm:$0xff] }
  0x98   : > { %3712 = vst [vmem:[#allocation49_spill] sm:$0xff] %v2947_v46  ;;  %3713 = vst [vmem:[#allocation50_spill] sm:$0xff] %v2949_v47  ;;  %v2951_v48 = vld [vmem:[#allocation7 + $0x170] sm:$0xff]  ;;  %v2953_v49 = vld [vmem:[#allocation7 + $0x178] sm:$0xff] }
  0x99   : > { %3714 = vst [vmem:[#allocation51_spill] sm:$0xff] %v2951_v48  ;;  %3715 = vst [vmem:[#allocation52_spill] sm:$0xff] %v2953_v49  ;;  %v2955_v50 = vld [vmem:[#allocation7 + $0x180] sm:$0xff]  ;;  %v2957_v51 = vld [vmem:[#allocation7 + $0x188] sm:$0xff] }
  0x9a   : > { %3716 = vst [vmem:[#allocation53_spill] sm:$0xff] %v2955_v50  ;;  %3717 = vst [vmem:[#allocation54_spill] sm:$0xff] %v2957_v51  ;;  %v2959_v52 = vld [vmem:[#allocation7 + $0x190] sm:$0xff]  ;;  %v2961_v53 = vld [vmem:[#allocation7 + $0x198] sm:$0xff] }
  0x9b   : > { %3718 = vst [vmem:[#allocation55_spill] sm:$0xff] %v2959_v52  ;;  %3719 = vst [vmem:[#allocation56_spill] sm:$0xff] %v2961_v53  ;;  %v2963_v54 = vld [vmem:[#allocation7 + $0x1a0] sm:$0xff]  ;;  %v2965_v55 = vld [vmem:[#allocation7 + $0x1a8] sm:$0xff]  ;;  %423 = sbr.rel (%p1739_p4) target bundleno = 970 (0x3ca), region = 56 }
  0x9c   : > { %3720 = vst [vmem:[#allocation57_spill] sm:$0xff] %v2963_v54  ;;  %3721 = vst [vmem:[#allocation58_spill] sm:$0xff] %v2965_v55  ;;  %v2967_v56 = vld [vmem:[#allocation7 + $0x1b0] sm:$0xff]  ;;  %v2969_v57 = vld [vmem:[#allocation7 + $0x1b8] sm:$0xff] }
  0x9d   : > { %3722 = vst [vmem:[#allocation59_spill] sm:$0xff] %v2967_v56  ;;  %3723 = vst [vmem:[#allocation60_spill] sm:$0xff] %v2969_v57  ;;  %v2971_v58 = vld [vmem:[#allocation7 + $0x1c0] sm:$0xff]  ;;  %v2973_v59 = vld [vmem:[#allocation7 + $0x1c8] sm:$0xff] }
  0x9e   : > { %3724 = vst [vmem:[#allocation61_spill] sm:$0xff] %v2971_v58  ;;  %3725 = vst [vmem:[#allocation62_spill] sm:$0xff] %v2973_v59  ;;  %v2975_v60 = vld [vmem:[#allocation7 + $0x1d0] sm:$0xff]  ;;  %v2977_v61 = vld [vmem:[#allocation7 + $0x1d8] sm:$0xff]  ;;  %v2992_v58 = vpack.c.bf16 (!%p1739_p4), %v2869_v7, %v2861_v3 }
  0x9f   : > { %3726 = vst [vmem:[#allocation63_spill] sm:$0xff] %v2975_v60  ;;  %3727 = vst [vmem:[#allocation64_spill] sm:$0xff] %v2977_v61  ;;  %v2979_v62 = vld [vmem:[#allocation7 + $0x1e0] sm:$0xff]  ;;  %v2981_v63 = vld [vmem:[#allocation7 + $0x1e8] sm:$0xff]  ;;  %v2996_v60 = vpack.c.bf16 (!%p1739_p4), %v2867_v6, %v2859_v2  ;;  %v3014_v6 = vpack.c.bf16 (!%p1739_p4), %v2883_v14, %v2875_v10 }
  0xa0   : > { %3728 = vst [vmem:[#allocation65_spill] sm:$0xff] %v2979_v62  ;;  %3729 = vst [vmem:[#allocation66_spill] sm:$0xff] %v2981_v63  ;;  %v2983_v0 = vld [vmem:[#allocation7 + $0x1f0] sm:$0xff]  ;;  %v2985_v1 = vld [vmem:[#allocation7 + $0x1f8] sm:$0xff]  ;;  %v3000_v62 = vpack.c.bf16 (!%p1739_p4), %v2885_v15, %v2877_v11  ;;  %1792 = vmatprep.subr.bf16.mxu0 (!%p1739_p4), %v2992_v58  ;;  %v3018_v15 = vpack.c.bf16 (!%p1739_p4), %v2889_v17, %v2881_v13  ;;  %v3034_v17 = vpack.c.bf16 (!%p1739_p4), %v2905_v25, %v2897_v21  ;;  %v3629_v13 = vmov (!%p1739_p4), 0.0  }
  0xa1   : > { %3730 = vst [vmem:[#allocation67_spill] sm:$0xff] %v2983_v0  ;;  %3731 = vst [vmem:[#allocation68_spill] sm:$0xff] %v2985_v1  ;;  %v3005_v0 = vpack.c.bf16 (!%p1739_p4), %v2873_v9, %v2865_v5  ;;  %v3009_v1 = vpack.c.bf16 (!%p1739_p4), %v2871_v8, %v2863_v4  ;;  %1794 = vmatpush1.bf16.msra.mxu0 (!%p1739_p4), %v2996_v60  ;;  %v3023_v9 = vpack.c.bf16 (!%p1739_p4), %v2901_v23, %v2893_v19 }
  0xa2   : > { %1796 = vmatprep.subr.bf16.mxu0 %v3000_v62  ;;  %v3029_v8 = vpack.c.bf16 %v2887_v16, %v2879_v12  ;;  %494 = vmatprep.mubr.f32.mxu0 %v3629_v13  ;;  %v3040_v23 = vpack.c.bf16 %v2899_v22, %v2891_v18  ;;  %v3045_v16 = vpack.c.bf16 %v2917_v31, %v2909_v27  ;;  %s602_s7 = scalar_select %p601_p6, 1, 0 }
  0xa3   : > { %1824 = vmatprep.subr.bf16.mxu1 %v3005_v0  ;;  %565 = vmatprep.mubr.f32.mxu1 %v3629_v13  ;;  %v3051_v25 = vpack.c.bf16 %v2903_v24, %v2895_v20  ;;  %v3056_v22 = vpack.c.bf16 %v2921_v33, %v2913_v29  ;;  %v3061_v31 = vpack.c.bf16 %v2915_v30, %v2907_v26  ;;  %s789_s17 = scalar_select %p788_p8, 1, 0 }
  0xa4   : > { %1826 = vmatpush1.bf16.msra.mxu1 %v3009_v1  ;;  %v3066_v13 = vpack.c.bf16 %v2933_v39, %v2925_v35  ;;  %v3071_v24 = vpack.c.bf16 %v2919_v32, %v2911_v28  ;;  %v3076_v33 = vpack.c.bf16 %v2937_v41, %v2929_v37  ;;  %v3081_v30 = vpack.c.bf16 %v2931_v38, %v2923_v34  ;;  %v429_v34 = vld [vmem:[%s2842_s15 + $0x18] sm:$0xff]  ;;  %v428_v37 = vld [vmem:[%s2842_s15 + $0x10] sm:$0xff]  ;;  %s977_s1 = scalar_select %p976_p13, 1, 0 }
  0xa5   : > { %1828 = vmatprep.subr.bf16.mxu1 %v3018_v15  ;;  %1798 = vmatpush1.bf16.msra.mxu0 %v3014_v6  ;;  %v3086_v39 = vpack.c.bf16 %v2949_v47, %v2941_v43  ;;  %v3091_v32 = vpack.c.bf16 %v2935_v40, %v2927_v36  ;;  %v3096_v41 = vpack.c.bf16 %v2953_v49, %v2945_v45 }
  0xa6   : > { %1800 = vmatprep.subr.bf16.mxu0 %v3023_v9  ;;  %v3101_v38 = vpack.c.bf16 %v2947_v46, %v2939_v42  ;;  %v3106_v47 = vpack.c.bf16 %v2965_v55, %v2957_v51  ;;  %v3111_v40 = vpack.c.bf16 %v2951_v48, %v2943_v44  ;;  %v3116_v49 = vpack.c.bf16 %v2969_v57, %v2961_v53 }
  0xa7   : > { %v3121_v46 = vpack.c.bf16 %v2963_v54, %v2955_v50  ;;  %v3126_v55 = vpack.c.bf16 %v2981_v63, %v2973_v59  ;;  %v3131_v48 = vpack.c.bf16 %v2967_v56, %v2959_v52  ;;  %v3733_v54 = vld [vmem:[#allocation61_spill] sm:$0xff]  ;;  %v3735_v63 = vld [vmem:[#allocation63_spill] sm:$0xff] }
  0xa8   : > { %1830 = vmatpush1.bf16.msra.mxu1 %v3029_v8  ;;  %v3732_v57 = vld [vmem:[#allocation68_spill] sm:$0xff]  ;;  %v3734_v50 = vld [vmem:[#allocation65_spill] sm:$0xff]  ;;  %v3736_v59 = vld [vmem:[#allocation67_spill] sm:$0xff] }
  0xa9   : > { %1832 = vmatprep.subr.bf16.mxu1 %v3034_v17  ;;  %1802 = vmatpush1.bf16.msra.mxu0 %v3040_v23  ;;  %v3136_v53 = vpack.c.bf16 %v3732_v57, %v2977_v61  ;;  %v3141_v44 = vpack.c.bf16 %v3734_v50, %v3733_v54  ;;  %v3147_v56 = vpack.c.bf16 %v3736_v59, %v3735_v63  ;;  %v3151_v57 = vld [vmem:[#allocation2] sm:$0xff]  ;;  %v3737_v50 = vmov 0.0   ;;  %v426_v54 = vld [vmem:[%s2842_s15] sm:$0xff]  ;;  %v427_v59 = vld [vmem:[%s2842_s15 + $0x8] sm:$0xff] }
  0xaa   : > { %1804 = vmatprep.subr.bf16.mxu0 %v3045_v16 }
  0xac   : > { %1834 = vmatpush1.bf16.msra.mxu1 %v3051_v25 }
  0xad   : > { %1836 = vmatprep.subr.bf16.mxu1 %v3056_v22  ;;  %1806 = vmatpush1.bf16.msra.mxu0 %v3061_v31 }
  0xae   : > { %1808 = vmatprep.subr.bf16.mxu0 %v3066_v13 }
  0xb0   : > { %1838 = vmatpush1.bf16.msra.mxu1 %v3071_v24 }
  0xb1   : > { %1840 = vmatprep.subr.bf16.mxu1 %v3076_v33  ;;  %1810 = vmatpush1.bf16.msra.mxu0 %v3081_v30 }
  0xb2   : > { %1812 = vmatprep.subr.bf16.mxu0 %v3086_v39 }
  0xb4   : > { %1842 = vmatpush1.bf16.msra.mxu1 %v3091_v32 }
  0xb5   : > { %1844 = vmatprep.subr.bf16.mxu1 %v3096_v41  ;;  %1814 = vmatpush1.bf16.msra.mxu0 %v3101_v38 }
  0xb6   : > { %1816 = vmatprep.subr.bf16.mxu0 %v3106_v47 }
  0xb8   : > { %1846 = vmatpush1.bf16.msra.mxu1 %v3111_v40 }
  0xb9   : > { %1848 = vmatprep.subr.bf16.mxu1 %v3116_v49  ;;  %1818 = vmatpush1.bf16.msra.mxu0 %v3121_v46 }
  0xba   : > { %1820 = vmatprep.subr.bf16.mxu0 %v3126_v55 }
  0xbc   : > { %1850 = vmatpush1.bf16.msra.mxu1 %v3131_v48 }
  0xbd   : > { %1852 = vmatprep.subr.bf16.mxu1 %v3136_v53  ;;  %1822 = vmatpush1.bf16.msra.mxu0 %v3141_v44 }
  0xbe   : > { %1856 = vmatprep.subr.bf16.mxu0 %v2992_v58 }
  0xc0   : > { %1854 = vmatpush1.bf16.msra.mxu1 %v3147_v56  ;;  %495 = vmatmul.mubr.f32.vlgmr.msra.gmra.mrb[0].mxu0 %v3151_v57 }
  0xc1   : > { %1888 = vmatprep.subr.bf16.mxu1 %v3005_v0  ;;  %1858 = vmatpush1.bf16.msra.mxu0 %v2996_v60 }
  0xc2   : > { %681 = vmatprep.mubr.f32.mxu0 %v3737_v50  ;;  %1860 = vmatprep.subr.bf16.mxu0 %v3000_v62 }
  0xc3   : > { %566 = vmatmul.mubr.f32.vlgmr.msra.gmra.mrb[0].mxu1 %v3151_v57 }
  0xc4   : > { %1890 = vmatpush1.bf16.msra.mxu1 %v3009_v1  ;;  %752 = vmatprep.mubr.f32.mxu1 %v3737_v50 }
  0xc5   : > { %1892 = vmatprep.subr.bf16.mxu1 %v3018_v15  ;;  %1862 = vmatpush1.bf16.msra.mxu0 %v3014_v6 }
  0xc6   : > { %1864 = vmatprep.subr.bf16.mxu0 %v3023_v9 }
  0xc8   : > { %1894 = vmatpush1.bf16.msra.mxu1 %v3029_v8 }
  0xc9   : > { %1896 = vmatprep.subr.bf16.mxu1 %v3034_v17  ;;  %1866 = vmatpush1.bf16.msra.mxu0 %v3040_v23 }
  0xca   : > { %1868 = vmatprep.subr.bf16.mxu0 %v3045_v16 }
  0xcc   : > { %1898 = vmatpush1.bf16.msra.mxu1 %v3051_v25 }
  0xcd   : > { %1900 = vmatprep.subr.bf16.mxu1 %v3056_v22  ;;  %1870 = vmatpush1.bf16.msra.mxu0 %v3061_v31 }
  0xce   : > { %1872 = vmatprep.subr.bf16.mxu0 %v3066_v13 }
  0xd0   : > { %1902 = vmatpush1.bf16.msra.mxu1 %v3071_v24 }
  0xd1   : > { %1904 = vmatprep.subr.bf16.mxu1 %v3076_v33  ;;  %1874 = vmatpush1.bf16.msra.mxu0 %v3081_v30 }
  0xd2   : > { %1876 = vmatprep.subr.bf16.mxu0 %v3086_v39 }
  0xd4   : > { %1906 = vmatpush1.bf16.msra.mxu1 %v3091_v32 }
  0xd5   : > { %1908 = vmatprep.subr.bf16.mxu1 %v3096_v41  ;;  %1878 = vmatpush1.bf16.msra.mxu0 %v3101_v38 }
  0xd6   : > { %1880 = vmatprep.subr.bf16.mxu0 %v3106_v47 }
  0xd8   : > { %1910 = vmatpush1.bf16.msra.mxu1 %v3111_v40 }
  0xd9   : > { %1912 = vmatprep.subr.bf16.mxu1 %v3116_v49  ;;  %1882 = vmatpush1.bf16.msra.mxu0 %v3121_v46 }
  0xda   : > { %1884 = vmatprep.subr.bf16.mxu0 %v3126_v55 }
  0xdc   : > { %1914 = vmatpush1.bf16.msra.mxu1 %v3131_v48 }
  0xdd   : > { %1916 = vmatprep.subr.bf16.mxu1 %v3136_v53  ;;  %1886 = vmatpush1.bf16.msra.mxu0 %v3141_v44 }
  0xde   : > { %1920 = vmatprep.subr.bf16.mxu0 %v2992_v58 }
  0xe0   : > { %1918 = vmatpush1.bf16.msra.mxu1 %v3147_v56 }
  0xe1   : > { %1952 = vmatprep.subr.bf16.mxu1 %v3005_v0 }
 0x193   : > { %v496_v63 = vpop.f32.mrb[0].mxu0 }
 0x194   : > { %v572_v61 = vadd.f32 %v496_v63, %v426_v54  ;;  %v498_v52 = vpop.f32.mrb[1].mxu0 }
 0x195   : > { %v573_v51 = vadd.f32 %v498_v52, %v427_v59 }
 0x196   : > { %v567_v42 = vpop.f32.mrb[0].mxu1  ;;  %v1740_v45 = vmul.f32 -1.442695, %v572_v61 }
 0x197   : > { %v569_v36 = vpop.f32.mrb[1].mxu1  ;;  %v1741_v43 = vmul.f32 -1.442695, %v573_v51  ;;  %v574_v35 = vadd.f32 %v567_v42, %v428_v37 }
 0x198   : > { %2281 = vpow2.f32 %v1740_v45  ;;  %v575_v58 = vadd.f32 %v569_v36, %v429_v34  ;;  %v603_v36 = vstv %s602_s7 }
 0x199   : > { %2283 = vpow2.f32 %v1741_v43  ;;  %v425_v43 = vld [vmem:[#allocation3] sm:$0xff]  ;;  %vm604_vm0 = vcmp.eq.s32.totalorder %v603_v36, 1 }
 0x19a   : > { %v1742_v28 = vmul.f32 -1.442695, %v575_v58 }
 0x19c   : > { %2285 = vpow2.f32 %v1742_v28 }
 0x19d   : > { %2287 = vtanh.f32 %v574_v35 }
 0x1a2   : > { %v2282_v26 = vpop.eup %2281 }
 0x1a3   : > { %v2284_v0 = vpop.eup %2283  ;;  %v579_v29 = vadd.f32 1.0, %v2282_v26 }
 0x1a4   : > { %v585_v52 = vadd.f32 1.0, %v2284_v0  ;;  %v1751_v0 = vld [vmem:[%s2842_s15 + $0x40] sm:$0xff] }
 0x1a5   : > { %2289 = vrcp.f32 %v579_v29 }
 0x1a6   : > { %2291 = vrcp.f32 %v585_v52  ;;  %v2286_v51 = vpop.eup %2285  ;;  %v1752_v52 = vld [vmem:[%s2842_s15 + $0x48] sm:$0xff] }
 0x1a7   : > { %v2288_v45 = vpop.eup %2287  ;;  %v592_v37 = vadd.f32 1.0, %v2286_v51 }
 0x1a9   : > { %2293 = vrcp.f32 %v592_v37 }
 0x1af   : > { %v2290_v34 = vpop.eup %2289 }
 0x1b0   : > { %v2292_v42 = vpop.eup %2291  ;;  %v596_v28 = vmul.f32 %v2290_v34, %v2288_v45 }
 0x1b1   : > { %v595_v61 = vmul.f32 %v2292_v42, %v425_v43 }
 0x1b3   : > { %v597_v26 = vadd.f32 %v596_v28, %v595_v61  ;;  %v2294_v29 = vpop.eup %2293  ;;  %v1754_v61 = vld [vmem:[%s2842_s15 + $0x58] sm:$0xff] }
 0x1b5   : > { %2295 = vtanh.f32 %v597_v26  ;;  %v3200_v35 = vsel %vm604_vm0, %v597_v26, %v425_v43 }
 0x1bf   : > { %v2296_v54 = vpop.eup %2295 }
 0x1c0   : > { %v599_v59 = vmul.f32 %v2296_v54, %v2294_v29 }
 0x1c2   : > { %v3203_v63 = vsel %vm604_vm0, %v599_v59, %v3151_v57 }
 0x1c3   : > { %607 = vst [vmem:[%s2853_s13] sm:$0xff] %v3203_v63  ;;  %682 = vmatmul.mubr.f32.vlgmr.msra.gmra.mrb[2].mxu0 %v3203_v63  ;;  %753 = vmatmul.mubr.f32.vlgmr.msra.gmra.mrb[2].mxu1 %v3203_v63 }
 0x1c4   : > { %1922 = vmatpush1.bf16.msra.mxu0 %v2996_v60  ;;  %1954 = vmatpush1.bf16.msra.mxu1 %v3009_v1 }
 0x1c5   : > { %1924 = vmatprep.subr.bf16.mxu0 %v3000_v62  ;;  %1956 = vmatprep.subr.bf16.mxu1 %v3018_v15 }
 0x1c6   : > { %869 = vmatprep.mubr.f32.mxu0 %v3737_v50  ;;  %940 = vmatprep.mubr.f32.mxu1 %v3737_v50 }
 0x1c8   : > { %1926 = vmatpush1.bf16.msra.mxu0 %v3014_v6  ;;  %1958 = vmatpush1.bf16.msra.mxu1 %v3029_v8  ;;  %v1743_v6 = vld [vmem:[%s2842_s15 + $0x20] sm:$0xff]  ;;  %v1744_v8 = vld [vmem:[%s2842_s15 + $0x28] sm:$0xff] }
 0x1c9   : > { %1928 = vmatprep.subr.bf16.mxu0 %v3023_v9  ;;  %1960 = vmatprep.subr.bf16.mxu1 %v3034_v17 }
 0x1cc   : > { %1930 = vmatpush1.bf16.msra.mxu0 %v3040_v23  ;;  %1962 = vmatpush1.bf16.msra.mxu1 %v3051_v25  ;;  %v1746_v25 = vld [vmem:[%s2842_s15 + $0x38] sm:$0xff] }
 0x1cd   : > { %1932 = vmatprep.subr.bf16.mxu0 %v3045_v16  ;;  %1964 = vmatprep.subr.bf16.mxu1 %v3056_v22 }
 0x1d0   : > { %1934 = vmatpush1.bf16.msra.mxu0 %v3061_v31  ;;  %1966 = vmatpush1.bf16.msra.mxu1 %v3071_v24  ;;  %v1745_v31 = vld [vmem:[%s2842_s15 + $0x30] sm:$0xff] }
 0x1d1   : > { %1936 = vmatprep.subr.bf16.mxu0 %v3066_v13  ;;  %1968 = vmatprep.subr.bf16.mxu1 %v3076_v33 }
 0x1d4   : > { %1938 = vmatpush1.bf16.msra.mxu0 %v3081_v30  ;;  %1970 = vmatpush1.bf16.msra.mxu1 %v3091_v32 }
 0x1d5   : > { %1940 = vmatprep.subr.bf16.mxu0 %v3086_v39  ;;  %1972 = vmatprep.subr.bf16.mxu1 %v3096_v41 }
 0x1d8   : > { %1942 = vmatpush1.bf16.msra.mxu0 %v3101_v38  ;;  %1974 = vmatpush1.bf16.msra.mxu1 %v3111_v40 }
 0x1d9   : > { %1944 = vmatprep.subr.bf16.mxu0 %v3106_v47  ;;  %1976 = vmatprep.subr.bf16.mxu1 %v3116_v49 }
 0x1dc   : > { %1946 = vmatpush1.bf16.msra.mxu0 %v3121_v46  ;;  %1978 = vmatpush1.bf16.msra.mxu1 %v3131_v48  ;;  %v790_v48 = vstv %s789_s17 }
 0x1dd   : > { %1948 = vmatprep.subr.bf16.mxu0 %v3126_v55  ;;  %1980 = vmatprep.subr.bf16.mxu1 %v3136_v53  ;;  %vm791_vm1 = vcmp.eq.s32.totalorder %v790_v48, 1 }
 0x1e0   : > { %1950 = vmatpush1.bf16.msra.mxu0 %v3141_v44  ;;  %1982 = vmatpush1.bf16.msra.mxu1 %v3147_v56 }
 0x296   : > { %v683_v9 = vpop.f32.mrb[2].mxu0  ;;  %v754_v13 = vpop.f32.mrb[2].mxu1 }
 0x297   : > { %v759_v15 = vadd.f32 %v1743_v6, %v683_v9  ;;  %v685_v16 = vpop.f32.mrb[3].mxu0  ;;  %v756_v17 = vpop.f32.mrb[3].mxu1  ;;  %v761_v33 = vadd.f32 %v1745_v31, %v754_v13 }
 0x298   : > { %v760_v22 = vadd.f32 %v1744_v8, %v685_v16  ;;  %v762_v30 = vadd.f32 %v1746_v25, %v756_v17  ;;  %v978_v16 = vstv %s977_s1 }
 0x299   : > { %v1747_v23 = vmul.f32 -1.442695, %v759_v15  ;;  %vm979_vm2 = vcmp.eq.s32.totalorder %v978_v16, 1 }
 0x29a   : > { %v1748_v24 = vmul.f32 -1.442695, %v760_v22  ;;  %v1749_v32 = vmul.f32 -1.442695, %v762_v30 }
 0x29b   : > { %2297 = vpow2.f32 %v1747_v23 }
 0x29c   : > { %2299 = vpow2.f32 %v1748_v24 }
 0x29d   : > { %2301 = vpow2.f32 %v1749_v32 }
 0x29e   : > { %2303 = vtanh.f32 %v761_v33 }
 0x2a5   : > { %v2298_v38 = vpop.eup %2297 }
 0x2a6   : > { %v2300_v39 = vpop.eup %2299  ;;  %v766_v40 = vadd.f32 1.0, %v2298_v38 }
 0x2a7   : > { %v772_v41 = vadd.f32 1.0, %v2300_v39  ;;  %v2302_v44 = vpop.eup %2301 }
 0x2a8   : > { %2305 = vrcp.f32 %v766_v40  ;;  %v2304_v46 = vpop.eup %2303  ;;  %v779_v55 = vadd.f32 1.0, %v2302_v44 }
 0x2a9   : > { %2307 = vrcp.f32 %v772_v41 }
 0x2aa   : > { %2309 = vrcp.f32 %v779_v55 }
 0x2b2   : > { %v2306_v47 = vpop.eup %2305 }
 0x2b3   : > { %v2308_v49 = vpop.eup %2307  ;;  %v783_v53 = vmul.f32 %v2306_v47, %v2304_v46 }
 0x2b4   : > { %v782_v56 = vmul.f32 %v2308_v49, %v3200_v35  ;;  %v2310_v1 = vpop.eup %2309 }
 0x2b6   : > { %v784_v60 = vadd.f32 %v783_v53, %v782_v56 }
 0x2b8   : > { %2311 = vtanh.f32 %v784_v60  ;;  %v792_v62 = vsel %vm791_vm1, %v784_v60, %v3200_v35  ;;  %v1753_v35 = vld [vmem:[%s2842_s15 + $0x50] sm:$0xff] }
 0x2c2   : > { %v2312_v57 = vpop.eup %2311 }
 0x2c3   : > { %v786_v50 = vmul.f32 %v2312_v57, %v2310_v1 }
 0x2c5   : > { %v793_v58 = vsel %vm791_vm1, %v786_v50, %v3203_v63 }
 0x2c6   : > { %1750 = vst [vmem:[%s2853_s13 + $0x8] sm:$0xff] %v793_v58  ;;  %870 = vmatmul.mubr.f32.vlgmr.msra.gmra.mrb[4].mxu0 %v793_v58  ;;  %941 = vmatmul.mubr.f32.vlgmr.msra.gmra.mrb[4].mxu1 %v793_v58 }
 0x399   : > { %v871_v51 = vpop.f32.mrb[4].mxu0  ;;  %v942_v45 = vpop.f32.mrb[4].mxu1 }
 0x39a   : > { %v947_v43 = vadd.f32 %v1751_v0, %v871_v51  ;;  %v873_v34 = vpop.f32.mrb[5].mxu0  ;;  %v944_v36 = vpop.f32.mrb[5].mxu1  ;;  %v949_v54 = vadd.f32 %v1753_v35, %v942_v45 }
 0x39b   : > { %v948_v37 = vadd.f32 %v1752_v52, %v873_v34  ;;  %v950_v26 = vadd.f32 %v1754_v61, %v944_v36 }
 0x39c   : > { %v1755_v42 = vmul.f32 -1.442695, %v947_v43 }
 0x39d   : > { %v1756_v28 = vmul.f32 -1.442695, %v948_v37  ;;  %v1757_v29 = vmul.f32 -1.442695, %v950_v26 }
 0x39e   : > { %2313 = vpow2.f32 %v1755_v42 }
 0x39f   : > { %2315 = vpow2.f32 %v1756_v28 }
 0x3a0   : > { %2317 = vpow2.f32 %v1757_v29 }
 0x3a1   : > { %2319 = vtanh.f32 %v949_v54 }
 0x3a8   : > { %v2314_v59 = vpop.eup %2313 }
 0x3a9   : > { %v2316_v63 = vpop.eup %2315  ;;  %v954_v6 = vadd.f32 1.0, %v2314_v59 }
 0x3aa   : > { %v960_v8 = vadd.f32 1.0, %v2316_v63  ;;  %v2318_v9 = vpop.eup %2317 }
 0x3ab   : > { %2321 = vrcp.f32 %v954_v6  ;;  %v2320_v13 = vpop.eup %2319  ;;  %v967_v23 = vadd.f32 1.0, %v2318_v9 }
 0x3ac   : > { %2323 = vrcp.f32 %v960_v8 }
 0x3ad   : > { %2325 = vrcp.f32 %v967_v23 }
 0x3b5   : > { %v2322_v15 = vpop.eup %2321 }
 0x3b6   : > { %v2324_v17 = vpop.eup %2323  ;;  %v971_v22 = vmul.f32 %v2322_v15, %v2320_v13 }
 0x3b7   : > { %v970_v24 = vmul.f32 %v2324_v17, %v792_v62  ;;  %v2326_v31 = vpop.eup %2325 }
 0x3b9   : > { %v972_v25 = vadd.f32 %v971_v22, %v970_v24 }
 0x3bb   : > { %2327 = vtanh.f32 %v972_v25  ;;  %v980_v30 = vsel %vm979_vm2, %v972_v25, %v792_v62 }
 0x3bc   : > { %985 = vst [vmem:[#allocation3] sm:$0xff] %v980_v30 }
 0x3c5   : > { %v2328_v32 = vpop.eup %2327 }
 0x3c6   : > { %v974_v33 = vmul.f32 %v2328_v32, %v2326_v31 }
 0x3c8   : > { %v981_v38 = vsel %vm979_vm2, %v974_v33, %v793_v58 }
 0x3c9   : > { %1758 = vst [vmem:[%s2853_s13 + $0x10] sm:$0xff] %v981_v38  ;;  %984 = vst [vmem:[#allocation2] sm:$0xff] %v981_v38 }
 0x3ca PF: > { %p1759_p0 = scmp.eq.s32.totalorder %s2597_s24, 2 }
 0x3cb   : > { %v3259_v39 = vpack.c.bf16 (!%p1759_p0), %v2869_v7, %v2861_v3  ;;  %v3738_v40 = vld [vmem:[#allocation19_spill] sm:$0xff] (!%p1759_p0)  ;;  %v3740_v47 = vld [vmem:[#allocation21_spill] sm:$0xff] (!%p1759_p0)  ;;  %v3741_v49 = vld [vmem:[#allocation20_spill] sm:$0xff] (!%p1759_p0)  ;;  %v2613_v60 = vmov (!%p1759_p0), 0.0  }
 0x3cc   : > { %989 = sbr.rel (%p1759_p0) target bundleno = 1780 (0x6f4), region = 60  ;;  %v3263_v41 = vpack.c.bf16 (!%p1759_p0), %v3738_v40, %v2859_v2  ;;  %v3739_v44 = vld [vmem:[#allocation23_spill] sm:$0xff] (!%p1759_p0)  ;;  %v3272_v48 = vpack.c.bf16 (!%p1759_p0), %v3740_v47, %v2865_v5  ;;  %v3276_v53 = vpack.c.bf16 (!%p1759_p0), %v3741_v49, %v2863_v4  ;;  %v3281_v2 = vpack.c.bf16 (!%p1759_p0), %v2883_v14, %v2875_v10  ;;  %v3742_v3 = vld [vmem:[#allocation22_spill] sm:$0xff] (!%p1759_p0)  ;;  %v3743_v7 = vld [vmem:[#allocation25_spill] sm:$0xff] (!%p1759_p0)  ;;  %1060 = vmatprep.mubr.f32.mxu0 (!%p1759_p0), %v2613_v60 }
 0x3cd   : > { %v3267_v46 = vpack.c.bf16 (!%p1759_p0), %v3739_v44, %v2877_v11  ;;  %1984 = vmatprep.subr.bf16.mxu0 (!%p1759_p0), %v3259_v39  ;;  %v3285_v11 = vpack.c.bf16 (!%p1759_p0), %v3743_v7, %v3742_v3  ;;  %v3744_v55 = vld [vmem:[#allocation27_spill] sm:$0xff] (!%p1759_p0)  ;;  %v3745_v4 = vld [vmem:[#allocation24_spill] sm:$0xff] (!%p1759_p0)  ;;  %v3746_v10 = vld [vmem:[#allocation29_spill] sm:$0xff] (!%p1759_p0)  ;;  %1131 = vmatprep.mubr.f32.mxu1 (!%p1759_p0), %v2613_v60 }
 0x3ce   : > { %1986 = vmatpush1.bf16.msra.mxu0 (!%p1759_p0), %v3263_v41  ;;  %v3290_v5 = vpack.c.bf16 (!%p1759_p0), %v3744_v55, %v2893_v19  ;;  %2016 = vmatprep.subr.bf16.mxu1 (!%p1759_p0), %v3272_v48  ;;  %v3296_v56 = vpack.c.bf16 (!%p1759_p0), %v3745_v4, %v2879_v12  ;;  %v3301_v14 = vpack.c.bf16 (!%p1759_p0), %v3746_v10, %v2897_v21  ;;  %v3747_v19 = vld [vmem:[#allocation26_spill] sm:$0xff] (!%p1759_p0)  ;;  %v3749_v21 = vld [vmem:[#allocation28_spill] sm:$0xff] (!%p1759_p0)  ;;  %v3753_v52 = vld [vmem:[#allocation33_spill] sm:$0xff] (!%p1759_p0) }
 0x3cf   : > { %1988 = vmatprep.subr.bf16.mxu0 (!%p1759_p0), %v3267_v46  ;;  %2018 = vmatpush1.bf16.msra.mxu1 (!%p1759_p0), %v3276_v53  ;;  %v3307_v62 = vpack.c.bf16 (!%p1759_p0), %v3747_v19, %v2891_v18  ;;  %v3748_v12 = vld [vmem:[#allocation34_spill] sm:$0xff] (!%p1759_p0)  ;;  %v3318_v57 = vpack.c.bf16 (!%p1759_p0), %v3749_v21, %v2895_v20  ;;  %v3750_v50 = vld [vmem:[#allocation32_spill] sm:$0xff] (!%p1759_p0)  ;;  %v3756_v20 = vld [vmem:[#allocation31_spill] sm:$0xff] (!%p1759_p0) }
 0x3d0   : > { %2020 = vmatprep.subr.bf16.mxu1 (!%p1759_p0), %v3285_v11  ;;  %v3312_v1 = vpack.c.bf16 (!%p1759_p0), %v3748_v12, %v2909_v27  ;;  %v3751_v58 = vld [vmem:[#allocation36_spill] sm:$0xff] (!%p1759_p0)  ;;  %v3752_v0 = vld [vmem:[#allocation30_spill] sm:$0xff] (!%p1759_p0)  ;;  %v3757_v34 = vld [vmem:[#allocation35_spill] sm:$0xff] (!%p1759_p0) }
 0x3d1   : > { %v3323_v18 = vpack.c.bf16 (!%p1759_p0), %v3751_v58, %v3750_v50  ;;  %v3328_v27 = vpack.c.bf16 (!%p1759_p0), %v3753_v52, %v3752_v0  ;;  %v3754_v51 = vld [vmem:[#allocation38_spill] sm:$0xff] (!%p1759_p0)  ;;  %v3338_v36 = vpack.c.bf16 (!%p1759_p0), %v3757_v34, %v3756_v20  ;;  %v3758_v37 = vld [vmem:[#allocation40_spill] sm:$0xff] (!%p1759_p0)  ;;  %v3760_v61 = vld [vmem:[#allocation37_spill] sm:$0xff] (!%p1759_p0) }
 0x3d2   : > { %1990 = vmatpush1.bf16.msra.mxu0 (!%p1759_p0), %v3281_v2  ;;  %v3755_v45 = vld [vmem:[#allocation42_spill] sm:$0xff] (!%p1759_p0)  ;;  %v3759_v42 = vld [vmem:[#allocation44_spill] sm:$0xff] (!%p1759_p0)  ;;  %v3761_v26 = vld [vmem:[#allocation41_spill] sm:$0xff] (!%p1759_p0) }
 0x3d3   : > { %1992 = vmatprep.subr.bf16.mxu0 %v3290_v5  ;;  %2022 = vmatpush1.bf16.msra.mxu1 %v3296_v56  ;;  %v3333_v43 = vpack.c.bf16 %v3755_v45, %v3754_v51  ;;  %v3343_v28 = vpack.c.bf16 %v3759_v42, %v3758_v37  ;;  %v3348_v35 = vpack.c.bf16 %v3761_v26, %v3760_v61  ;;  %v3762_v29 = vld [vmem:[#allocation46_spill] sm:$0xff]  ;;  %v3764_v63 = vld [vmem:[#allocation39_spill] sm:$0xff]  ;;  %v3766_v9 = vld [vmem:[#allocation48_spill] sm:$0xff] }
 0x3d4   : > { %2024 = vmatprep.subr.bf16.mxu1 %v3301_v14  ;;  %v3763_v54 = vld [vmem:[#allocation50_spill] sm:$0xff]  ;;  %v3765_v6 = vld [vmem:[#allocation43_spill] sm:$0xff]  ;;  %v3767_v13 = vld [vmem:[#allocation52_spill] sm:$0xff] }
 0x3d5   : > { %v3353_v59 = vpack.c.bf16 %v3763_v54, %v3762_v29  ;;  %v3358_v8 = vpack.c.bf16 %v3765_v6, %v3764_v63  ;;  %v3363_v15 = vpack.c.bf16 %v3767_v13, %v3766_v9  ;;  %v3768_v16 = vld [vmem:[#allocation45_spill] sm:$0xff]  ;;  %v3770_v23 = vld [vmem:[#allocation54_spill] sm:$0xff]  ;;  %v3772_v30 = vld [vmem:[#allocation47_spill] sm:$0xff] }
 0x3d6   : > { %1994 = vmatpush1.bf16.msra.mxu0 %v3307_v62  ;;  %v3769_v17 = vld [vmem:[#allocation49_spill] sm:$0xff]  ;;  %v3771_v24 = vld [vmem:[#allocation58_spill] sm:$0xff]  ;;  %v3773_v31 = vld [vmem:[#allocation51_spill] sm:$0xff] }
 0x3d7   : > { %1996 = vmatprep.subr.bf16.mxu0 %v3312_v1  ;;  %2026 = vmatpush1.bf16.msra.mxu1 %v3318_v57  ;;  %v3368_v22 = vpack.c.bf16 %v3769_v17, %v3768_v16  ;;  %v3373_v25 = vpack.c.bf16 %v3771_v24, %v3770_v23  ;;  %v3378_v32 = vpack.c.bf16 %v3773_v31, %v3772_v30  ;;  %v3774_v33 = vld [vmem:[#allocation56_spill] sm:$0xff]  ;;  %v3776_v44 = vld [vmem:[#allocation53_spill] sm:$0xff]  ;;  %v3778_v3 = vld [vmem:[#allocation62_spill] sm:$0xff] }
 0x3d8   : > { %2028 = vmatprep.subr.bf16.mxu1 %v3323_v18  ;;  %v3775_v38 = vld [vmem:[#allocation60_spill] sm:$0xff]  ;;  %v3777_v47 = vld [vmem:[#allocation57_spill] sm:$0xff]  ;;  %v3779_v7 = vld [vmem:[#allocation66_spill] sm:$0xff] }
 0x3d9   : > { %v3383_v40 = vpack.c.bf16 %v3775_v38, %v3774_v33  ;;  %v3388_v49 = vpack.c.bf16 %v3777_v47, %v3776_v44  ;;  %v3393_v55 = vpack.c.bf16 %v3779_v7, %v3778_v3  ;;  %v3780_v4 = vld [vmem:[#allocation55_spill] sm:$0xff]  ;;  %v3782_v12 = vld [vmem:[#allocation64_spill] sm:$0xff]  ;;  %v3784_v58 = vld [vmem:[#allocation61_spill] sm:$0xff] }
 0x3da   : > { %1998 = vmatpush1.bf16.msra.mxu0 %v3328_v27  ;;  %v3781_v10 = vld [vmem:[#allocation59_spill] sm:$0xff]  ;;  %v3783_v21 = vld [vmem:[#allocation68_spill] sm:$0xff]  ;;  %v3785_v0 = vld [vmem:[#allocation65_spill] sm:$0xff] }
 0x3db   : > { %2000 = vmatprep.subr.bf16.mxu0 %v3333_v43  ;;  %2030 = vmatpush1.bf16.msra.mxu1 %v3338_v36  ;;  %v3398_v19 = vpack.c.bf16 %v3781_v10, %v3780_v4  ;;  %v3403_v50 = vpack.c.bf16 %v3783_v21, %v3782_v12  ;;  %v3408_v52 = vpack.c.bf16 %v3785_v0, %v3784_v58  ;;  %v3786_v51 = vld [vmem:[#allocation63_spill] sm:$0xff]  ;;  %v990_v34 = vld [vmem:[#allocation2] sm:$0xff]  ;;  %v992_v37 = vld [vmem:[%s2842_s15] sm:$0xff] }
 0x3dc   : > { %2032 = vmatprep.subr.bf16.mxu1 %v3343_v28  ;;  %v3787_v45 = vld [vmem:[#allocation67_spill] sm:$0xff]  ;;  %v995_v16 = vld [vmem:[%s2842_s15 + $0x18] sm:$0xff] }
 0x3dd   : > { %v3414_v20 = vpack.c.bf16 %v3787_v45, %v3786_v51  ;;  %v993_v42 = vld [vmem:[%s2842_s15 + $0x8] sm:$0xff]  ;;  %v991_v47 = vld [vmem:[#allocation3] sm:$0xff]  ;;  %v1771_v45 = vld [vmem:[%s2842_s15 + $0x40] sm:$0xff] }
 0x3de   : > { %2002 = vmatpush1.bf16.msra.mxu0 %v3348_v35 }
 0x3df   : > { %2004 = vmatprep.subr.bf16.mxu0 %v3353_v59  ;;  %2034 = vmatpush1.bf16.msra.mxu1 %v3358_v8 }
 0x3e0   : > { %2036 = vmatprep.subr.bf16.mxu1 %v3363_v15 }
 0x3e2   : > { %2006 = vmatpush1.bf16.msra.mxu0 %v3368_v22 }
 0x3e3   : > { %2008 = vmatprep.subr.bf16.mxu0 %v3373_v25  ;;  %2038 = vmatpush1.bf16.msra.mxu1 %v3378_v32 }
 0x3e4   : > { %2040 = vmatprep.subr.bf16.mxu1 %v3383_v40 }
 0x3e6   : > { %2010 = vmatpush1.bf16.msra.mxu0 %v3388_v49 }
 0x3e7   : > { %2012 = vmatprep.subr.bf16.mxu0 %v3393_v55  ;;  %2042 = vmatpush1.bf16.msra.mxu1 %v3398_v19 }
 0x3e8   : > { %2044 = vmatprep.subr.bf16.mxu1 %v3403_v50 }
 0x3ea   : > { %2014 = vmatpush1.bf16.msra.mxu0 %v3408_v52 }
 0x3eb   : > { %2048 = vmatprep.subr.bf16.mxu0 %v3259_v39  ;;  %2046 = vmatpush1.bf16.msra.mxu1 %v3414_v20 }
 0x3ec   : > { %2080 = vmatprep.subr.bf16.mxu1 %v3272_v48 }
 0x3ed   : > { %1061 = vmatmul.mubr.f32.vlgmr.msra.gmra.mrb[0].mxu0 %v990_v34 }
 0x3ee   : > { %2050 = vmatpush1.bf16.msra.mxu0 %v3263_v41  ;;  %1240 = vmatprep.mubr.f32.mxu0 %v2613_v60 }
 0x3ef   : > { %1132 = vmatmul.mubr.f32.vlgmr.msra.gmra.mrb[0].mxu1 %v990_v34  ;;  %2052 = vmatprep.subr.bf16.mxu0 %v3267_v46 }
 0x3f0   : > { %2082 = vmatpush1.bf16.msra.mxu1 %v3276_v53  ;;  %1311 = vmatprep.mubr.f32.mxu1 %v2613_v60 }
 0x3f1   : > { %2084 = vmatprep.subr.bf16.mxu1 %v3285_v11 }
 0x3f2   : > { %2054 = vmatpush1.bf16.msra.mxu0 %v3281_v2 }
 0x3f3   : > { %2056 = vmatprep.subr.bf16.mxu0 %v3290_v5 }
 0x3f4   : > { %2086 = vmatpush1.bf16.msra.mxu1 %v3296_v56 }
 0x3f5   : > { %2088 = vmatprep.subr.bf16.mxu1 %v3301_v14 }
 0x3f6   : > { %2058 = vmatpush1.bf16.msra.mxu0 %v3307_v62 }
 0x3f7   : > { %2060 = vmatprep.subr.bf16.mxu0 %v3312_v1 }
 0x3f8   : > { %2090 = vmatpush1.bf16.msra.mxu1 %v3318_v57 }
 0x3f9   : > { %2092 = vmatprep.subr.bf16.mxu1 %v3323_v18 }
 0x3fa   : > { %2062 = vmatpush1.bf16.msra.mxu0 %v3328_v27 }
 0x3fb   : > { %2064 = vmatprep.subr.bf16.mxu0 %v3333_v43 }
 0x3fc   : > { %2094 = vmatpush1.bf16.msra.mxu1 %v3338_v36 }
 0x3fd   : > { %2096 = vmatprep.subr.bf16.mxu1 %v3343_v28 }
 0x3fe   : > { %2066 = vmatpush1.bf16.msra.mxu0 %v3348_v35 }
 0x3ff   : > { %2068 = vmatprep.subr.bf16.mxu0 %v3353_v59 }
 0x400   : > { %2098 = vmatpush1.bf16.msra.mxu1 %v3358_v8 }
 0x401   : > { %2100 = vmatprep.subr.bf16.mxu1 %v3363_v15 }
 0x402   : > { %2070 = vmatpush1.bf16.msra.mxu0 %v3368_v22 }
 0x403   : > { %2072 = vmatprep.subr.bf16.mxu0 %v3373_v25 }
 0x404   : > { %2102 = vmatpush1.bf16.msra.mxu1 %v3378_v32 }
 0x405   : > { %2104 = vmatprep.subr.bf16.mxu1 %v3383_v40 }
 0x406   : > { %2074 = vmatpush1.bf16.msra.mxu0 %v3388_v49 }
 0x407   : > { %2076 = vmatprep.subr.bf16.mxu0 %v3393_v55 }
 0x408   : > { %2106 = vmatpush1.bf16.msra.mxu1 %v3398_v19 }
 0x409   : > { %2108 = vmatprep.subr.bf16.mxu1 %v3403_v50 }
 0x40a   : > { %2078 = vmatpush1.bf16.msra.mxu0 %v3408_v52 }
 0x40b   : > { %2112 = vmatprep.subr.bf16.mxu0 %v3259_v39  ;;  %v994_v39 = vld [vmem:[%s2842_s15 + $0x10] sm:$0xff] }
 0x40c   : > { %2110 = vmatpush1.bf16.msra.mxu1 %v3414_v20 }
 0x40d   : > { %2144 = vmatprep.subr.bf16.mxu1 %v3272_v48 }
 0x4c0   : > { %v1062_v61 = vpop.f32.mrb[0].mxu0 }
 0x4c1   : > { %v1138_v26 = vadd.f32 %v1062_v61, %v992_v37  ;;  %v1064_v29 = vpop.f32.mrb[1].mxu0 }
 0x4c2   : > { %v1139_v54 = vadd.f32 %v1064_v29, %v993_v42  ;;  %v1133_v63 = vpop.f32.mrb[0].mxu1 }
 0x4c3   : > { %v1760_v6 = vmul.f32 -1.442695, %v1138_v26  ;;  %v1135_v9 = vpop.f32.mrb[1].mxu1  ;;  %v1140_v24 = vadd.f32 %v1133_v63, %v994_v39 }
 0x4c4   : > { %v1761_v13 = vmul.f32 -1.442695, %v1139_v54  ;;  %v1141_v17 = vadd.f32 %v1135_v9, %v995_v16 }
 0x4c5   : > { %2329 = vpow2.f32 %v1760_v6  ;;  %v1774_v6 = vld [vmem:[%s2842_s15 + $0x58] sm:$0xff] }
 0x4c6   : > { %2331 = vpow2.f32 %v1761_v13  ;;  %v1762_v23 = vmul.f32 -1.442695, %v1141_v17  ;;  %v1773_v13 = vld [vmem:[%s2842_s15 + $0x50] sm:$0xff] }
 0x4c8   : > { %2333 = vpow2.f32 %v1762_v23 }
 0x4c9   : > { %2335 = vtanh.f32 %v1140_v24 }
 0x4cf   : > { %v2330_v30 = vpop.eup %2329 }
 0x4d0   : > { %v2332_v48 = vpop.eup %2331  ;;  %v1145_v31 = vadd.f32 1.0, %v2330_v30 }
 0x4d1   : > { %v1151_v33 = vadd.f32 1.0, %v2332_v48 }
 0x4d2   : > { %2337 = vrcp.f32 %v1145_v31  ;;  %v2334_v38 = vpop.eup %2333 }
 0x4d3   : > { %2339 = vrcp.f32 %v1151_v33  ;;  %v2336_v44 = vpop.eup %2335  ;;  %v1158_v7 = vadd.f32 1.0, %v2334_v38 }
 0x4d5   : > { %2341 = vrcp.f32 %v1158_v7 }
 0x4dc   : > { %v2338_v3 = vpop.eup %2337 }
 0x4dd   : > { %v2340_v4 = vpop.eup %2339  ;;  %v1162_v10 = vmul.f32 %v2338_v3, %v2336_v44 }
 0x4de   : > { %v1161_v12 = vmul.f32 %v2340_v4, %v991_v47 }
 0x4df   : > { %v2342_v58 = vpop.eup %2341 }
 0x4e0   : > { %v3459_v21 = vadd.f32 %v1162_v10, %v1161_v12 }
 0x4e2   : > { %2343 = vtanh.f32 %v3459_v21 }
 0x4ec   : > { %v2344_v0 = vpop.eup %2343 }
 0x4ed   : > { %v1165_v51 = vmul.f32 %v2344_v0, %v2342_v58 }
 0x4ef   : > { %1166 = vst [vmem:[%s2853_s13] sm:$0xff] %v1165_v51  ;;  %1241 = vmatmul.mubr.f32.vlgmr.msra.gmra.mrb[2].mxu0 %v1165_v51  ;;  %1312 = vmatmul.mubr.f32.vlgmr.msra.gmra.mrb[2].mxu1 %v1165_v51 }
 0x4f0   : > { %2114 = vmatpush1.bf16.msra.mxu0 %v3263_v41  ;;  %2146 = vmatpush1.bf16.msra.mxu1 %v3276_v53  ;;  %v1763_v41 = vld [vmem:[%s2842_s15 + $0x20] sm:$0xff] }
 0x4f1   : > { %2116 = vmatprep.subr.bf16.mxu0 %v3267_v46  ;;  %2148 = vmatprep.subr.bf16.mxu1 %v3285_v11  ;;  %v1764_v46 = vld [vmem:[%s2842_s15 + $0x28] sm:$0xff] }
 0x4f2   : > { %1421 = vmatprep.mubr.f32.mxu0 %v2613_v60  ;;  %1492 = vmatprep.mubr.f32.mxu1 %v2613_v60 }
 0x4f4   : > { %2118 = vmatpush1.bf16.msra.mxu0 %v3281_v2  ;;  %2150 = vmatpush1.bf16.msra.mxu1 %v3296_v56 }
 0x4f5   : > { %2120 = vmatprep.subr.bf16.mxu0 %v3290_v5  ;;  %2152 = vmatprep.subr.bf16.mxu1 %v3301_v14 }
 0x4f8   : > { %2122 = vmatpush1.bf16.msra.mxu0 %v3307_v62  ;;  %2154 = vmatpush1.bf16.msra.mxu1 %v3318_v57 }
 0x4f9   : > { %2124 = vmatprep.subr.bf16.mxu0 %v3312_v1  ;;  %2156 = vmatprep.subr.bf16.mxu1 %v3323_v18  ;;  %v1766_v1 = vld [vmem:[%s2842_s15 + $0x38] sm:$0xff]  ;;  %v1765_v18 = vld [vmem:[%s2842_s15 + $0x30] sm:$0xff] }
 0x4fc   : > { %2126 = vmatpush1.bf16.msra.mxu0 %v3328_v27  ;;  %2158 = vmatpush1.bf16.msra.mxu1 %v3338_v36 }
 0x4fd   : > { %2128 = vmatprep.subr.bf16.mxu0 %v3333_v43  ;;  %2160 = vmatprep.subr.bf16.mxu1 %v3343_v28 }
 0x500   : > { %2130 = vmatpush1.bf16.msra.mxu0 %v3348_v35  ;;  %2162 = vmatpush1.bf16.msra.mxu1 %v3358_v8 }
 0x501   : > { %2132 = vmatprep.subr.bf16.mxu0 %v3353_v59  ;;  %2164 = vmatprep.subr.bf16.mxu1 %v3363_v15 }
 0x504   : > { %2134 = vmatpush1.bf16.msra.mxu0 %v3368_v22  ;;  %2166 = vmatpush1.bf16.msra.mxu1 %v3378_v32 }
 0x505   : > { %2136 = vmatprep.subr.bf16.mxu0 %v3373_v25  ;;  %2168 = vmatprep.subr.bf16.mxu1 %v3383_v40 }
 0x508   : > { %2138 = vmatpush1.bf16.msra.mxu0 %v3388_v49  ;;  %2170 = vmatpush1.bf16.msra.mxu1 %v3398_v19 }
 0x509   : > { %2140 = vmatprep.subr.bf16.mxu0 %v3393_v55  ;;  %2172 = vmatprep.subr.bf16.mxu1 %v3403_v50 }
 0x50c   : > { %2142 = vmatpush1.bf16.msra.mxu0 %v3408_v52  ;;  %2174 = vmatpush1.bf16.msra.mxu1 %v3414_v20  ;;  %v1772_v20 = vld [vmem:[%s2842_s15 + $0x48] sm:$0xff] }
 0x5c2   : > { %v1242_v53 = vpop.f32.mrb[2].mxu0  ;;  %v1313_v2 = vpop.f32.mrb[2].mxu1 }
 0x5c3   : > { %v1318_v11 = vadd.f32 %v1763_v41, %v1242_v53  ;;  %v1244_v5 = vpop.f32.mrb[3].mxu0  ;;  %v1315_v56 = vpop.f32.mrb[3].mxu1  ;;  %v1320_v43 = vadd.f32 %v1765_v18, %v1313_v2 }
 0x5c4   : > { %v1319_v14 = vadd.f32 %v1764_v46, %v1244_v5  ;;  %v1321_v57 = vadd.f32 %v1766_v1, %v1315_v56 }
 0x5c5   : > { %v1767_v60 = vmul.f32 -1.442695, %v1318_v11 }
 0x5c6   : > { %v1768_v62 = vmul.f32 -1.442695, %v1319_v14  ;;  %v1769_v27 = vmul.f32 -1.442695, %v1321_v57 }
 0x5c7   : > { %2345 = vpow2.f32 %v1767_v60 }
 0x5c8   : > { %2347 = vpow2.f32 %v1768_v62 }
 0x5c9   : > { %2349 = vpow2.f32 %v1769_v27 }
 0x5ca   : > { %2351 = vtanh.f32 %v1320_v43 }
 0x5d1   : > { %v2346_v36 = vpop.eup %2345 }
 0x5d2   : > { %v2348_v28 = vpop.eup %2347  ;;  %v1325_v35 = vadd.f32 1.0, %v2346_v36 }
 0x5d3   : > { %v1331_v59 = vadd.f32 1.0, %v2348_v28  ;;  %v2350_v8 = vpop.eup %2349 }
 0x5d4   : > { %2353 = vrcp.f32 %v1325_v35  ;;  %v2352_v15 = vpop.eup %2351  ;;  %v1338_v40 = vadd.f32 1.0, %v2350_v8 }
 0x5d5   : > { %2355 = vrcp.f32 %v1331_v59 }
 0x5d6   : > { %2357 = vrcp.f32 %v1338_v40 }
 0x5de   : > { %v2354_v22 = vpop.eup %2353 }
 0x5df   : > { %v2356_v25 = vpop.eup %2355  ;;  %v1342_v32 = vmul.f32 %v2354_v22, %v2352_v15 }
 0x5e0   : > { %v1341_v49 = vmul.f32 %v2356_v25, %v3459_v21  ;;  %v2358_v19 = vpop.eup %2357 }
 0x5e2   : > { %v1343_v55 = vadd.f32 %v1342_v32, %v1341_v49 }
 0x5e4   : > { %2359 = vtanh.f32 %v1343_v55 }
 0x5ee   : > { %v2360_v50 = vpop.eup %2359 }
 0x5ef   : > { %v1345_v52 = vmul.f32 %v2360_v50, %v2358_v19 }
 0x5f1   : > { %1770 = vst [vmem:[%s2853_s13 + $0x8] sm:$0xff] %v1345_v52  ;;  %1422 = vmatmul.mubr.f32.vlgmr.msra.gmra.mrb[4].mxu0 %v1345_v52  ;;  %1493 = vmatmul.mubr.f32.vlgmr.msra.gmra.mrb[4].mxu1 %v1345_v52 }
 0x6c4   : > { %v1423_v34 = vpop.f32.mrb[4].mxu0  ;;  %v1494_v37 = vpop.f32.mrb[4].mxu1 }
 0x6c5   : > { %v1499_v42 = vadd.f32 %v1771_v45, %v1423_v34  ;;  %v1425_v61 = vpop.f32.mrb[5].mxu0  ;;  %v1496_v26 = vpop.f32.mrb[5].mxu1  ;;  %v1501_v17 = vadd.f32 %v1773_v13, %v1494_v37 }
 0x6c6   : > { %v1500_v29 = vadd.f32 %v1772_v20, %v1425_v61  ;;  %v1502_v9 = vadd.f32 %v1774_v6, %v1496_v26 }
 0x6c7   : > { %v1775_v54 = vmul.f32 -1.442695, %v1499_v42 }
 0x6c8   : > { %v1776_v63 = vmul.f32 -1.442695, %v1500_v29  ;;  %v1777_v16 = vmul.f32 -1.442695, %v1502_v9 }
 0x6c9   : > { %2361 = vpow2.f32 %v1775_v54 }
 0x6ca   : > { %2363 = vpow2.f32 %v1776_v63 }
 0x6cb   : > { %2365 = vpow2.f32 %v1777_v16 }
 0x6cc   : > { %2367 = vtanh.f32 %v1501_v17 }
 0x6d3   : > { %v2362_v39 = vpop.eup %2361 }
 0x6d4   : > { %v2364_v23 = vpop.eup %2363  ;;  %v1506_v24 = vadd.f32 1.0, %v2362_v39 }
 0x6d5   : > { %v1512_v30 = vadd.f32 1.0, %v2364_v23  ;;  %v2366_v48 = vpop.eup %2365 }
 0x6d6   : > { %2369 = vrcp.f32 %v1506_v24  ;;  %v2368_v31 = vpop.eup %2367  ;;  %v1519_v47 = vadd.f32 1.0, %v2366_v48 }
 0x6d7   : > { %2371 = vrcp.f32 %v1512_v30 }
 0x6d8   : > { %2373 = vrcp.f32 %v1519_v47 }
 0x6e0   : > { %v2370_v33 = vpop.eup %2369 }
 0x6e1   : > { %v2372_v38 = vpop.eup %2371  ;;  %v1523_v44 = vmul.f32 %v2370_v33, %v2368_v31 }
 0x6e2   : > { %v1522_v3 = vmul.f32 %v2372_v38, %v1343_v55  ;;  %v2374_v4 = vpop.eup %2373 }
 0x6e4   : > { %v1524_v7 = vadd.f32 %v1523_v44, %v1522_v3 }
 0x6e6   : > { %2375 = vtanh.f32 %v1524_v7  ;;  %1530 = vst [vmem:[#allocation3] sm:$0xff] %v1524_v7 }
 0x6f0   : > { %v2376_v10 = vpop.eup %2375 }
 0x6f1   : > { %v1526_v12 = vmul.f32 %v2376_v10, %v2374_v4 }
 0x6f3   : > { %1778 = vst [vmem:[%s2853_s13 + $0x10] sm:$0xff] %v1526_v12  ;;  %1529 = vst [vmem:[#allocation2] sm:$0xff] %v1526_v12 }
 0x6f4 PF: > { %1533 = sbr.rel (%p1739_p4) target bundleno = 1788 (0x6fc), region = 64  ;;  %v1536_v58 = vld [vmem:[#allocation3] sm:$0xff] (!%p1739_p4) }
 0x6f5   : > { %1537 = vst [vmem:[#allocation13] sm:$0xff] (!%p1739_p4), %v1536_v58 }
 0x6fa   : > { %v1534_v21 = vld [vmem:[#allocation2] sm:$0xff] (!%p1739_p4) }
 0x6fb   : > { %1535 = vst [vmem:[#allocation11] sm:$0xff] %v1534_v21 }
 0x6fc PF: > { %s2614_s14 = smov [#allocation11]   ;;  %s1789_s19 = smul.u32 384, %s2597_s24 }
 0x6fd   : > { %s1569_s11 = sshll.u32 %s2614_s14, 4  ;;  %p3788_p9 = scmp.ne.s32.totalorder %s3667_s30, 0  ;;  %s1570_s11 = int_to_ptr.vmem [resolvable:$true] %s1569_s11 }
 0x6fe   : > { %s2463_s15 = scalar_lea.vmem %s1570_s11, 128  ;;  %p2470_p3 = scmp.lt.s32.totalorder %s1570_s11, %s1570_s11 }
 0x6ff   : > { %p2464_p5 = scmp.ne.s32.totalorder %s1570_s11, %s2463_s15  ;;  %p2471_p7 = scmp.lt.s32.totalorder %s2463_s15, %s2463_s15 }
 0x701   : > { %p2465_p12 = pnand %p2464_p5, %p3788_p9  ;;  %p2472_p10 = por %p2471_p7, %p2470_p3 }
 0x703   : > { %p2466_p1 = pneg %p2465_p12 }
 0x705   : > { %p2473_p2 = pnand %p2472_p10, %p2466_p1 }
 0x707   : > { %2476 = shalt.err (!%p2473_p2)
}
 0x708   : > { %s2477_s8 = scalar_lea.hbm %s3608_s5, 128 }
 0x709   : > { %p2478_p4 = scmp.ne.s32.totalorder %s3608_s5, %s2477_s8  ;;  %p2483_p13 = scmp.lt.u32.totalorder %s2477_s8, %s3608_s5 }
 0x70b   : > { %p2479_p6 = pnand %p2478_p4, %p3788_p9 }
 0x70d   : > { %p2480_p8 = pneg %p2479_p6 }
 0x70f   : > { %p2485_p0 = pnand %p2483_p13, %p2480_p8 }
 0x711   : > { %2488 = shalt.err (!%p2485_p0)
}
 0x712   : > { %2190 = dma.vmem_to_hbm [thread:$0]  (%p3788_p9), %s1570_s11, 128, %s3608_s5, [#allocation12]  }
 0x713   : > { %s3530_s15 = scalar_lea.hbm %s3607_s4, %s1789_s19  ;;  %s1553_s9 = sshll.u32 %s2853_s13, 4  ;;  %s3533_s9 = int_to_ptr.vmem [resolvable:$true] %s1553_s9 }
 0x714   : > { %s1539_s20 = scalar_lea.sflag [#allocation6], %s2838_s28  ;;  %s2489_s8 = scalar_lea.vmem %s3533_s9, 384 }
 0x715   : > { %p2490_p5 = scmp.ne.s32.totalorder %s3533_s9, %s2489_s8  ;;  %s2615_s29 = smov [#allocation10]  }
 0x716   : > { %s2493_s7 = sshll.u32 %s2615_s29, 4  ;;  %s2494_s7 = int_to_ptr.vmem [resolvable:$false] %s2493_s7 }
 0x717   : > { %p2491_p12 = pnand %p2490_p5, %p2782_p11  ;;  %s2495_s11 = scalar_lea.vmem %s2494_s7, 768 }
 0x718   : > { %p2496_p3 = scmp.lt.s32.totalorder %s3533_s9, %s2494_s7  ;;  %p2497_p7 = scmp.lt.s32.totalorder %s2495_s11, %s2489_s8 }
 0x719   : > { %p2492_p1 = pneg %p2491_p12 }
 0x71a   : > { %p2498_p10 = por %p2497_p7, %p2496_p3 }
 0x71c   : > { %p2499_p2 = pnand %p2498_p10, %p2492_p1 }
 0x71e   : > { %2502 = shalt.err (!%p2499_p2)
}
 0x71f   : > { %s2503_s13 = scalar_lea.hbm %s3530_s15, 384  ;;  %s2507_s18 = scalar_lea.hbm %s3607_s4, 1152 }
 0x720   : > { %p2504_p4 = scmp.ne.s32.totalorder %s3530_s15, %s2503_s13  ;;  %p2508_p13 = scmp.lt.u32.totalorder %s3530_s15, %s3607_s4 }
 0x721   : > { %p2509_p0 = scmp.lt.u32.totalorder %s2507_s18, %s2503_s13  ;;  %p2511_p12 = scmp.lt.u32.totalorder %s2503_s13, %s3530_s15 }
 0x722   : > { %p2505_p6 = pnand %p2504_p4, %p2782_p11 }
 0x723   : > { %p2510_p5 = por %p2509_p0, %p2508_p13 }
 0x724   : > { %p2506_p8 = pneg %p2505_p6 }
 0x725   : > { %p2512_p1 = por %p2511_p12, %p2510_p5 }
 0x727   : > { %p2513_p3 = pnand %p2512_p1, %p2506_p8 }
 0x729   : > { %2516 = shalt.err (!%p2513_p3)
}
 0x72a   : > { %s2616_s1 = smov 128   ;;  %s2617_s14 = smov 8  }
 0x72b   : > { %2188 = dma.vmem_to_hbm [thread:$0]  (%p2782_p11), %s3533_s9, 384, %s3530_s15, %s1539_s20, %s2616_s1, %s2616_s1, %s2617_s14  }
 0x72c   : > { %s2618_s8 = smov [#allocation13]  }
 0x72d   : > { %s1582_s29 = sshll.u32 %s2618_s8, 4  ;;  %s1583_s29 = int_to_ptr.vmem [resolvable:$true] %s1582_s29 }
 0x72e   : > { %s2517_s7 = scalar_lea.vmem %s1583_s29, 128  ;;  %p2524_p4 = scmp.lt.s32.totalorder %s1583_s29, %s1583_s29 }
 0x72f   : > { %p2518_p7 = scmp.ne.s32.totalorder %s1583_s29, %s2517_s7  ;;  %p2525_p6 = scmp.lt.s32.totalorder %s2517_s7, %s2517_s7 }
 0x731   : > { %p2519_p10 = pnand %p2518_p7, %p3788_p9  ;;  %p2526_p8 = por %p2525_p6, %p2524_p4 }
 0x733   : > { %p2520_p2 = pneg %p2519_p10 }
 0x735   : > { %p2527_p13 = pnand %p2526_p8, %p2520_p2 }
 0x737   : > { %2530 = shalt.err (!%p2527_p13)
}
 0x738   : > { %s2531_s12 = scalar_lea.hbm %s3609_s6, 128 }
 0x739   : > { %p2532_p11 = scmp.ne.s32.totalorder %s3609_s6, %s2531_s12  ;;  %p2537_p12 = scmp.lt.u32.totalorder %s2531_s12, %s3609_s6 }
 0x73b   : > { %p2533_p0 = pnand %p2532_p11, %p3788_p9 }
 0x73d   : > { %p2534_p5 = pneg %p2533_p0 }
 0x73f   : > { %p2539_p1 = pnand %p2537_p12, %p2534_p5 }
 0x741   : > { %2542 = shalt.err (!%p2539_p1)
}
 0x742   : > { %2192 = dma.vmem_to_hbm [thread:$0]  (%p3788_p9), %s1583_s29, 128, %s3609_s6, [#allocation12]  }
 0x743   : > { %2576 = dma.done.wait (%p3788_p9), [#allocation12], 256  }
 0x744   : > { %2578 = vsyncadd (%p3788_p9), [#allocation12], 4294967040 }
 0x745 PF: > { %s3789_s18 = sld [smem:[#allocation18_spill]]  ;;  %p2222_p3 = scmp.ge.s32.totalorder %s2605_s26, 2 }
 0x746   : > { %s1602_s17 = sand.u32 1, %s2585_s21  }
 0x747   : > { %s1603_s10 = scalar_lea.sflag [#allocation6], %s1602_s17 }
 0x74b   : > { %p3790_p7 = scmp.ne.s32.totalorder %s3789_s18, 0 }
 0x74d   : > { %p2210_p10 = pnand %p2222_p3, %p3790_p7 }
 0x74f   : > { %2580 = dma.done.wait (!%p2210_p10), %s1603_s10, 384  }
 0x750   : > { %2582 = vsyncadd (!%p2210_p10), %s1603_s10, 4294966912  ;;  %s25_s26 = sadd.s32 1, %s2605_s26   ;;  %s3791_s21 = smov %s2589_s22 }
 0x751   : > { %p22_p2 = scmp.ge.s32.totalorder %s25_s26, 5   ;;  %s3792_s22 = smov %s2593_s23 }
 0x752   : > { %s3793_s23 = smov %s2794_s27  ;;  %s3794_s24 = smov %s2601_s25 }
 0x753   : > { %s3795_s25 = smov %s3797_s16  ;;  %24 = sbr.rel (!%p22_p2) target bundleno = 10 (0xa), region = 135 }
 0x75a   :  { %1608 = vsyncpa [#allocation5], 1 }
 0x75b   :  { %1610 = vsyncpa [#allocation5 + $0x1], 1 }
 0x75c   :  { %1611 = vsyncpa [#allocation8], 1 }
 0x75d   :  { %1612 = vsyncpa [#allocation6], 1 }
 0x75e   :  { %1614 = vsyncpa [#allocation6 + $0x1], 1 }
 0x75f   :  { %1615 = vsyncpa [#allocation12], 1 }

// kernel: tpu_custom_call.1
= control target key start
LH: loop header
LB: loop body
LE: loop exit
PB: predicated region body
PF: predicated region fallthrough
CT: control target
= control target key end

     0   :  { %s3603_s0 = inlined_call_operand.hbm [shape: f32[9,8,512], index: 0, kind: input, shape index: {}]   ;;  %s3604_s1 = inlined_call_operand.hbm [shape: f32[128,512], index: 1, kind: input, shape index: {}]   ;;  %s3605_s2 = inlined_call_operand.hbm [shape: f32[8,128], index: 2, kind: input, shape index: {}]   ;;  %s3606_s3 = inlined_call_operand.vmem [shape: f32[8,128], index: 3, kind: input, shape index: {}]   ;;  %s3607_s4 = inlined_call_operand.hbm [shape: f32[9,8,128], index: 4, kind: output, shape index: {0}]   ;;  %s3608_s5 = inlined_call_operand.hbm [shape: f32[8,128], index: 5, kind: output, shape index: {1}]   ;;  %s3609_s6 = inlined_call_operand.hbm [shape: f32[8,128], index: 6, kind: output, shape index: {2}]  }
   0x1   :  { %3665 = sst [smem:[#allocation69_spill]] %s3604_s1 }
   0x2   :  { %12 = vsyncpa [#allocation5], 0 }
   0x3   :  { %14 = vsyncpa [#allocation5 + $0x1], 0 }
   0x4   :  { %15 = vsyncpa [#allocation8], 0 }
   0x5   :  { %16 = vsyncpa [#allocation6], 0 }
   0x6   :  { %18 = vsyncpa [#allocation6 + $0x1], 0 }
   0x7   :  { %19 = vsyncpa [#allocation12], 0  ;;  %s2654_s21 = smov 0   ;;  %s2656_s22 = smov 0  }
   0x8   :  { %s2658_s23 = smov 0   ;;  %s2660_s24 = smov 0  }
   0x9   :  { %s2662_s25 = smov 0   ;;  %s2664_s26 = smov 0  }
   0xa LB: > { %s1726_s27 = sadd.s32 4294967295, %s2605_s26   ;;  %s1727_s28 = sadd.s32 4294967294, %s2605_s26   ;;  %s2605_s26 = sphi %s2664_s26, %s25_s26   ;;  %s2601_s25 = sphi %s2662_s25, %s3795_s25   ;;  %s2597_s24 = sphi %s2660_s24, %s3794_s24   ;;  %s2593_s23 = sphi %s2658_s23, %s3793_s23   ;;  %s2589_s22 = sphi %s2656_s22, %s3792_s22   ;;  %s2585_s21 = sphi %s2654_s21, %s3791_s21  }
   0xb   : > { %p59_p0 = scmp.ne.s32.totalorder %s2589_s22, %s2585_s21  ;;  %p2688_p1 = scmp.eq.s32.totalorder %s1726_s27, 0 }
   0xc   : > { %p2692_p2 = scmp.eq.s32.totalorder %s1726_s27, 2  ;;  %p164_p3 = scmp.eq.s32.totalorder %s1727_s28, 2 }
   0xd   : > { %s3666_s29 = scalar_select %p2688_p1, 1, 0 }
   0xe   : > { %s3667_s30 = scalar_select %p2692_p2, 1, 0 }
   0xf   : > { %p2698_p4 = por %p2688_p1, %p59_p0  ;;  %p1728_p5 = scmp.ge.s32.totalorder %s2605_s26, 1 }
  0x10   : > { %p2703_p6 = por %p164_p3, %p59_p0  ;;  %p223_p7 = scmp.lt.s32.totalorder %s2605_s26, 4 }
  0x11   : > { %s3668_s7 = scalar_select %p2698_p4, 1, 0 }
  0x12   : > { %s3669_s8 = scalar_select %p2703_p6, 1, 0 }
  0x13   : > { %p2708_p8 = pnand %p1728_p5, %p223_p7  ;;  %s2607_s10 = smov [#allocation7]  }
  0x14   : > { %3670 = sst [smem:[#allocation18_spill]] %s3669_s8  ;;  %s235_s11 = sshll.u32 %s2607_s10, 4  ;;  %s236_s11 = int_to_ptr.vmem [resolvable:$true] %s235_s11 }
  0x15   : > { %s3671_s9 = scalar_select %p2708_p8, 1, 0 }
  0x16   : > { %p2198_p9 = pneg %p2708_p8  ;;  %s2608_s13 = smov [#allocation9]  }
  0x17   : > { %s251_s14 = sshll.u32 %s2608_s13, 4  ;;  %s3673_s1 = sld [smem:[#allocation69_spill]]  ;;  %s2720_s14 = int_to_ptr.vmem [resolvable:$true] %s251_s14 }
  0x18   : > { %p2716_p10 = pnand %p2198_p9, %p2688_p1 }
  0x1a   : > { %p2379_p12 = pneg %p2716_p10 }
  0x1d   : > { %s2377_s17 = scalar_lea.hbm %s3673_s1, 8192 }
  0x1e   : > { %p2378_p11 = scmp.ne.s32.totalorder %s3673_s1, %s2377_s17  ;;  %p2384_p3 = scmp.lt.u32.totalorder %s2377_s17, %s3673_s1 }
  0x20   : > { %p2380_p13 = pnand %p2379_p12, %p2378_p11 }
  0x22   : > { %p2381_p0 = pneg %p2380_p13 }
  0x24   : > { %p2386_p5 = pnand %p2384_p3, %p2381_p0 }
  0x26   : > { %2389 = shalt.err (!%p2386_p5)
}
  0x27   : > { %s2390_s28 = scalar_lea.vmem %s236_s11, 8192  ;;  %p2398_p1 = scmp.lt.s32.totalorder %s236_s11, %s236_s11 }
  0x28   : > { %p2391_p7 = scmp.ne.s32.totalorder %s236_s11, %s2390_s28  ;;  %p2399_p4 = scmp.lt.s32.totalorder %s2390_s28, %s2390_s28 }
  0x2a   : > { %p2393_p9 = pnand %p2391_p7, %p2379_p12  ;;  %p2400_p8 = por %p2399_p4, %p2398_p1 }
  0x2c   : > { %p2394_p6 = pneg %p2393_p9 }
  0x2e   : > { %p2401_p2 = pnand %p2400_p8, %p2394_p6 }
  0x30   : > { %2404 = shalt.err (!%p2401_p2)
}
  0x31   : > { %s3616_s10 = smov 512   ;;  %s3617_s13 = smov 32  }
  0x32   : > { %2201 = dma.hbm_to_vmem [thread:$0]  (!%p2716_p10), %s3673_s1, 8192, %s236_s11, [#allocation8], %s3616_s10, %s3616_s10, %s3617_s13  }
  0x33   : > { %s2405_s19 = scalar_lea.hbm %s3605_s2, 128 }
  0x34   : > { %p2406_p1 = scmp.ne.s32.totalorder %s3605_s2, %s2405_s19  ;;  %p2412_p6 = scmp.lt.u32.totalorder %s2405_s19, %s3605_s2 }
  0x36   : > { %p2408_p2 = pnand %p2406_p1, %p2379_p12 }
  0x38   : > { %p2409_p4 = pneg %p2408_p2 }
  0x3a   : > { %p2414_p8 = pnand %p2412_p6, %p2409_p4 }
  0x3c   : > { %2417 = shalt.err (!%p2414_p8)
}
  0x3d   : > { %s2418_s11 = scalar_lea.vmem %s2720_s14, 128  ;;  %p2426_p3 = scmp.lt.s32.totalorder %s2720_s14, %s2720_s14 }
  0x3e   : > { %p2419_p11 = scmp.ne.s32.totalorder %s2720_s14, %s2418_s11  ;;  %p2427_p5 = scmp.lt.s32.totalorder %s2418_s11, %s2418_s11 }
  0x40   : > { %p2421_p13 = pnand %p2419_p11, %p2379_p12  ;;  %p2428_p7 = por %p2427_p5, %p2426_p3 }
  0x42   : > { %p2422_p0 = pneg %p2421_p13 }
  0x44   : > { %p2429_p9 = pnand %p2428_p7, %p2422_p0 }
  0x46   : > { %2432 = shalt.err (!%p2429_p9)
}
  0x47   : > { %2204 = dma.hbm_to_vmem [thread:$0]  (!%p2716_p10), %s3605_s2, 128, %s2720_s14, [#allocation8]  }
  0x48   : > { %s34_s16 = sadd.s32 1, %s2601_s25  ;;  %s46_s17 = sadd.s32 1, %s2593_s23 }
  0x49   : > { %p35_p12 = scmp.ge.s32.totalorder %s34_s16, 3  ;;  %p53_p1 = scmp.ne.s32.totalorder %s2593_s23, %s2589_s22 }
  0x4a   : > { %p54_p2 = scmp.eq.s32.totalorder %s2605_s26, 0  ;;  %p2215_p4 = scmp.lt.s32.totalorder %s2605_s26, 3 }
  0x4b   : > { %s3797_s16 = smov (%p35_p12, %s34_s16), 0  ;;  %p3674_p8 = scmp.ne.s32.totalorder %s3667_s30, 0 }
  0x4c   : > { %p55_p6 = por %p54_p2, %p53_p1  ;;  %s41_s18 = ssub.s32 %s2601_s25, %s3797_s16 }
  0x4d   : > { %p2782_p11 = por %p3674_p8, %p53_p1  ;;  %s269_s19 = sand.u32 1, %s2593_s23  }
  0x4e   : > { %p44_p13 = scmp.eq.s32.totalorder %s41_s18, 0  ;;  %s2175_s14 = smul.u32 96, %s269_s19 }
  0x4f   : > { %p2789_p10 = pnand %p2215_p4, %p55_p6  ;;  %s1790_s28 = smul.u32 1536, %s2601_s25 }
  0x50   : > { %s2794_s27 = scalar_select %p44_p13, %s2593_s23, %s46_s17  }
  0x51   : > { %s273_s11 = scalar_lea.vmem [#allocation4], %s2175_s14  ;;  %s2800_s13 = scalar_lea.hbm %s3603_s0, %s1790_s28 }
  0x52   : > { %s283_s8 = sshll.u32 %s273_s11, 4  ;;  %s2804_s18 = scalar_lea.sflag [#allocation5], %s269_s19  ;;  %s2802_s8 = int_to_ptr.vmem [resolvable:$true] %s283_s8 }
  0x53   : > { %s2433_s1 = scalar_lea.hbm %s2800_s13, 1536  ;;  %p2435_p3 = pneg %p2789_p10 }
  0x54   : > { %p2434_p0 = scmp.ne.s32.totalorder %s2800_s13, %s2433_s1  ;;  %s2438_s14 = scalar_lea.hbm %s3603_s0, 4608 }
  0x55   : > { %p2439_p9 = scmp.lt.u32.totalorder %s2800_s13, %s3603_s0  ;;  %p2440_p12 = scmp.lt.u32.totalorder %s2438_s14, %s2433_s1 }
  0x56   : > { %p2436_p5 = pnand %p2435_p3, %p2434_p0  ;;  %p2442_p2 = scmp.lt.u32.totalorder %s2433_s1, %s2800_s13 }
  0x57   : > { %p2441_p1 = por %p2440_p12, %p2439_p9 }
  0x58   : > { %p2437_p7 = pneg %p2436_p5 }
  0x59   : > { %p2443_p4 = por %p2442_p2, %p2441_p1 }
  0x5b   : > { %p2444_p6 = pnand %p2443_p4, %p2437_p7 }
  0x5d   : > { %2447 = shalt.err (!%p2444_p6)
}
  0x5e   : > { %s2448_s19 = scalar_lea.vmem %s2802_s8, 1536  ;;  %s2611_s15 = smov [#allocation4]  }
  0x5f   : > { %p2449_p8 = scmp.ne.s32.totalorder %s2802_s8, %s2448_s19  ;;  %s2453_s17 = sshll.u32 %s2611_s15, 4  ;;  %s2454_s17 = int_to_ptr.vmem [resolvable:$false] %s2453_s17 }
  0x60   : > { %s2455_s10 = scalar_lea.vmem %s2454_s17, 3072  ;;  %p2456_p5 = scmp.lt.s32.totalorder %s2802_s8, %s2454_s17 }
  0x61   : > { %p2451_p13 = pnand %p2449_p8, %p2435_p3  ;;  %p2457_p9 = scmp.lt.s32.totalorder %s2455_s10, %s2448_s19 }
  0x63   : > { %p2452_p0 = pneg %p2451_p13  ;;  %p2458_p12 = por %p2457_p9, %p2456_p5 }
  0x65   : > { %p2459_p1 = pnand %p2458_p12, %p2452_p0 }
  0x67   : > { %2462 = shalt.err (!%p2459_p1)
}
  0x68   : > { %s3677_s1 = smov 32   ;;  %s3678_s14 = smov 512  }
  0x69   : > { %2208 = dma.hbm_to_vmem [thread:$0]  (!%p2789_p10), %s2800_s13, 1536, %s2802_s8, %s2804_s18, %s3678_s14, %s3678_s14, %s3677_s1  }
  0x6a   : > { %p3679_p3 = scmp.ne.s32.totalorder %s3671_s9, 0 }
  0x6c   : > { %295 = sbr.rel (%p3679_p3) target bundleno = 1861 (0x745), region = 36 }
  0x73   : > { %s2838_s28 = sand.u32 1, %s2589_s22   ;;  %p3680_p7 = scmp.ne.s32.totalorder %s3668_s7, 0 }
  0x74   : > { %s2176_s11 = smul.u32 96, %s2838_s28  ;;  %s298_s19 = scalar_lea.sflag [#allocation5], %s2838_s28 }
  0x76   : > { %s2842_s15 = scalar_lea.vmem [#allocation4], %s2176_s11 }
  0x77   : > { %2568 = dma.done.wait (%p3680_p7), %s298_s19, 1536  }
  0x78   : > { %2570 = vsyncadd (%p3680_p7), %s298_s19, 4294965760  ;;  %p3681_p10 = scmp.ne.s32.totalorder %s3666_s29, 0 }
  0x7a   : > { %2572 = dma.done.wait (%p3681_p10), [#allocation8], 8320  }
  0x7b   : > { %2574 = vsyncadd (%p3681_p10), [#allocation8], 4294958976  ;;  %s2177_s9 = smul.u32 24, %s2838_s28  ;;  %p1738_p2 = scmp.ne.s32.totalorder %s2597_s24, 0 }
  0x7c   : > { %v352_v0 = vld [vmem:[#allocation9] sm:$0xff] (!%p1738_p2)  ;;  %v354_v1 = vld [vmem:[%s3606_s3] sm:$0xff] (!%p1738_p2) }
  0x7d   : > { %s2853_s13 = scalar_lea.vmem [#allocation10], %s2177_s9  ;;  %351 = sbr.rel (%p1738_p2) target bundleno = 132 (0x84), region = 52  ;;  %353 = vst [vmem:[#allocation2] sm:$0xff] (!%p1738_p2), %v352_v0  ;;  %355 = vst [vmem:[#allocation3] sm:$0xff] (!%p1738_p2), %v354_v1 }
  0x84 PF: > { %v2859_v2 = vld [vmem:[#allocation7] sm:$0xff]  ;;  %v2861_v3 = vld [vmem:[#allocation7 + $0x8] sm:$0xff]  ;;  %v2863_v4 = vld [vmem:[#allocation7 + $0x10] sm:$0xff]  ;;  %p1739_p4 = scmp.ne.s32.totalorder %s2597_s24, 2 }
  0x85   : > { %v2865_v5 = vld [vmem:[#allocation7 + $0x18] sm:$0xff]  ;;  %v2867_v6 = vld [vmem:[#allocation7 + $0x20] sm:$0xff]  ;;  %v2869_v7 = vld [vmem:[#allocation7 + $0x28] sm:$0xff]  ;;  %s3197_s29 = smul.u32 (!%p1739_p4), 3, %s2597_s24 }
  0x86   : > { %3682 = vst [vmem:[#allocation19_spill] sm:$0xff] %v2867_v6  ;;  %v2871_v8 = vld [vmem:[#allocation7 + $0x30] sm:$0xff]  ;;  %v2873_v9 = vld [vmem:[#allocation7 + $0x38] sm:$0xff]  ;;  %v2875_v10 = vld [vmem:[#allocation7 + $0x40] sm:$0xff] }
  0x87   : > { %3683 = vst [vmem:[#allocation20_spill] sm:$0xff] %v2871_v8  ;;  %3684 = vst [vmem:[#allocation21_spill] sm:$0xff] %v2873_v9  ;;  %v2877_v11 = vld [vmem:[#allocation7 + $0x48] sm:$0xff]  ;;  %v2879_v12 = vld [vmem:[#allocation7 + $0x50] sm:$0xff]  ;;  %p601_p6 = scmp.lt.s32.totalorder (!%p1739_p4), %s3197_s29, 8  ;;  %s787_s18 = sadd.s32 (!%p1739_p4), 1, %s3197_s29 }
  0x88   : > { %v2881_v13 = vld [vmem:[#allocation7 + $0x58] sm:$0xff]  ;;  %v2883_v14 = vld [vmem:[#allocation7 + $0x60] sm:$0xff]  ;;  %v2885_v15 = vld [vmem:[#allocation7 + $0x68] sm:$0xff]  ;;  %p788_p8 = scmp.lt.s32.totalorder (!%p1739_p4), %s787_s18, 8  ;;  %s975_s10 = sadd.s32 (!%p1739_p4), 2, %s3197_s29 }
  0x89   : > { %3685 = vst [vmem:[#allocation22_spill] sm:$0xff] %v2881_v13  ;;  %3686 = vst [vmem:[#allocation23_spill] sm:$0xff] %v2885_v15  ;;  %v2887_v16 = vld [vmem:[#allocation7 + $0x70] sm:$0xff]  ;;  %v2889_v17 = vld [vmem:[#allocation7 + $0x78] sm:$0xff]  ;;  %p976_p13 = scmp.lt.s32.totalorder (!%p1739_p4), %s975_s10, 8 }
  0x8a   : > { %3687 = vst [vmem:[#allocation24_spill] sm:$0xff] %v2887_v16  ;;  %3688 = vst [vmem:[#allocation25_spill] sm:$0xff] %v2889_v17  ;;  %v2891_v18 = vld [vmem:[#allocation7 + $0x80] sm:$0xff]  ;;  %v2893_v19 = vld [vmem:[#allocation7 + $0x88] sm:$0xff] }
  0x8b   : > { %v2895_v20 = vld [vmem:[#allocation7 + $0x90] sm:$0xff]  ;;  %v2897_v21 = vld [vmem:[#allocation7 + $0x98] sm:$0xff]  ;;  %v2899_v22 = vld [vmem:[#allocation7 + $0xa0] sm:$0xff] }
  0x8c   : > { %3689 = vst [vmem:[#allocation26_spill] sm:$0xff] %v2899_v22  ;;  %v2901_v23 = vld [vmem:[#allocation7 + $0xa8] sm:$0xff]  ;;  %v2903_v24 = vld [vmem:[#allocation7 + $0xb0] sm:$0xff]  ;;  %v2905_v25 = vld [vmem:[#allocation7 + $0xb8] sm:$0xff] }
  0x8d   : > { %3690 = vst [vmem:[#allocation27_spill] sm:$0xff] %v2901_v23  ;;  %3691 = vst [vmem:[#allocation28_spill] sm:$0xff] %v2903_v24  ;;  %v2907_v26 = vld [vmem:[#allocation7 + $0xc0] sm:$0xff]  ;;  %v2909_v27 = vld [vmem:[#allocation7 + $0xc8] sm:$0xff] }
  0x8e   : > { %3692 = vst [vmem:[#allocation29_spill] sm:$0xff] %v2905_v25  ;;  %3693 = vst [vmem:[#allocation30_spill] sm:$0xff] %v2907_v26  ;;  %v2911_v28 = vld [vmem:[#allocation7 + $0xd0] sm:$0xff]  ;;  %v2913_v29 = vld [vmem:[#allocation7 + $0xd8] sm:$0xff] }
  0x8f   : > { %3694 = vst [vmem:[#allocation31_spill] sm:$0xff] %v2911_v28  ;;  %3695 = vst [vmem:[#allocation32_spill] sm:$0xff] %v2913_v29  ;;  %v2915_v30 = vld [vmem:[#allocation7 + $0xe0] sm:$0xff]  ;;  %v2917_v31 = vld [vmem:[#allocation7 + $0xe8] sm:$0xff] }
  0x90   : > { %3696 = vst [vmem:[#allocation33_spill] sm:$0xff] %v2915_v30  ;;  %3697 = vst [vmem:[#allocation34_spill] sm:$0xff] %v2917_v31  ;;  %v2919_v32 = vld [vmem:[#allocation7 + $0xf0] sm:$0xff]  ;;  %v2921_v33 = vld [vmem:[#allocation7 + $0xf8] sm:$0xff] }
  0x91   : > { %3698 = vst [vmem:[#allocation35_spill] sm:$0xff] %v2919_v32  ;;  %3699 = vst [vmem:[#allocation36_spill] sm:$0xff] %v2921_v33  ;;  %v2923_v34 = vld [vmem:[#allocation7 + $0x100] sm:$0xff]  ;;  %v2925_v35 = vld [vmem:[#allocation7 + $0x108] sm:$0xff] }
  0x92   : > { %3700 = vst [vmem:[#allocation37_spill] sm:$0xff] %v2923_v34  ;;  %3701 = vst [vmem:[#allocation38_spill] sm:$0xff] %v2925_v35  ;;  %v2927_v36 = vld [vmem:[#allocation7 + $0x110] sm:$0xff]  ;;  %v2929_v37 = vld [vmem:[#allocation7 + $0x118] sm:$0xff] }
  0x93   : > { %3702 = vst [vmem:[#allocation39_spill] sm:$0xff] %v2927_v36  ;;  %3703 = vst [vmem:[#allocation40_spill] sm:$0xff] %v2929_v37  ;;  %v2931_v38 = vld [vmem:[#allocation7 + $0x120] sm:$0xff]  ;;  %v2933_v39 = vld [vmem:[#allocation7 + $0x128] sm:$0xff] }
  0x94   : > { %3704 = vst [vmem:[#allocation41_spill] sm:$0xff] %v2931_v38  ;;  %3705 = vst [vmem:[#allocation42_spill] sm:$0xff] %v2933_v39  ;;  %v2935_v40 = vld [vmem:[#allocation7 + $0x130] sm:$0xff]  ;;  %v2937_v41 = vld [vmem:[#allocation7 + $0x138] sm:$0xff] }
  0x95   : > { %3706 = vst [vmem:[#allocation43_spill] sm:$0xff] %v2935_v40  ;;  %3707 = vst [vmem:[#allocation44_spill] sm:$0xff] %v2937_v41  ;;  %v2939_v42 = vld [vmem:[#allocation7 + $0x140] sm:$0xff]  ;;  %v2941_v43 = vld [vmem:[#allocation7 + $0x148] sm:$0xff] }
  0x96   : > { %3708 = vst [vmem:[#allocation45_spill] sm:$0xff] %v2939_v42  ;;  %3709 = vst [vmem:[#allocation46_spill] sm:$0xff] %v2941_v43  ;;  %v2943_v44 = vld [vmem:[#allocation7 + $0x150] sm:$0xff]  ;;  %v2945_v45 = vld [vmem:[#allocation7 + $0x158] sm:$0xff] }
  0x97   : > { %3710 = vst [vmem:[#allocation47_spill] sm:$0xff] %v2943_v44  ;;  %3711 = vst [vmem:[#allocation48_spill] sm:$0xff] %v2945_v45  ;;  %v2947_v46 = vld [vmem:[#allocation7 + $0x160] sm:$0xff]  ;;  %v2949_v47 = vld [vmem:[#allocation7 + $0x168] sm:$0xff] }
  0x98   : > { %3712 = vst [vmem:[#allocation49_spill] sm:$0xff] %v2947_v46  ;;  %3713 = vst [vmem:[#allocation50_spill] sm:$0xff] %v2949_v47  ;;  %v2951_v48 = vld [vmem:[#allocation7 + $0x170] sm:$0xff]  ;;  %v2953_v49 = vld [vmem:[#allocation7 + $0x178] sm:$0xff] }
  0x99   : > { %3714 = vst [vmem:[#allocation51_spill] sm:$0xff] %v2951_v48  ;;  %3715 = vst [vmem:[#allocation52_spill] sm:$0xff] %v2953_v49  ;;  %v2955_v50 = vld [vmem:[#allocation7 + $0x180] sm:$0xff]  ;;  %v2957_v51 = vld [vmem:[#allocation7 + $0x188] sm:$0xff] }
  0x9a   : > { %3716 = vst [vmem:[#allocation53_spill] sm:$0xff] %v2955_v50  ;;  %3717 = vst [vmem:[#allocation54_spill] sm:$0xff] %v2957_v51  ;;  %v2959_v52 = vld [vmem:[#allocation7 + $0x190] sm:$0xff]  ;;  %v2961_v53 = vld [vmem:[#allocation7 + $0x198] sm:$0xff] }
  0x9b   : > { %3718 = vst [vmem:[#allocation55_spill] sm:$0xff] %v2959_v52  ;;  %3719 = vst [vmem:[#allocation56_spill] sm:$0xff] %v2961_v53  ;;  %v2963_v54 = vld [vmem:[#allocation7 + $0x1a0] sm:$0xff]  ;;  %v2965_v55 = vld [vmem:[#allocation7 + $0x1a8] sm:$0xff]  ;;  %423 = sbr.rel (%p1739_p4) target bundleno = 970 (0x3ca), region = 56 }
  0x9c   : > { %3720 = vst [vmem:[#allocation57_spill] sm:$0xff] %v2963_v54  ;;  %3721 = vst [vmem:[#allocation58_spill] sm:$0xff] %v2965_v55  ;;  %v2967_v56 = vld [vmem:[#allocation7 + $0x1b0] sm:$0xff]  ;;  %v2969_v57 = vld [vmem:[#allocation7 + $0x1b8] sm:$0xff] }
  0x9d   : > { %3722 = vst [vmem:[#allocation59_spill] sm:$0xff] %v2967_v56  ;;  %3723 = vst [vmem:[#allocation60_spill] sm:$0xff] %v2969_v57  ;;  %v2971_v58 = vld [vmem:[#allocation7 + $0x1c0] sm:$0xff]  ;;  %v2973_v59 = vld [vmem:[#allocation7 + $0x1c8] sm:$0xff] }
  0x9e   : > { %3724 = vst [vmem:[#allocation61_spill] sm:$0xff] %v2971_v58  ;;  %3725 = vst [vmem:[#allocation62_spill] sm:$0xff] %v2973_v59  ;;  %v2975_v60 = vld [vmem:[#allocation7 + $0x1d0] sm:$0xff]  ;;  %v2977_v61 = vld [vmem:[#allocation7 + $0x1d8] sm:$0xff]  ;;  %v2992_v58 = vpack.c.bf16 (!%p1739_p4), %v2869_v7, %v2861_v3 }
  0x9f   : > { %3726 = vst [vmem:[#allocation63_spill] sm:$0xff] %v2975_v60  ;;  %3727 = vst [vmem:[#allocation64_spill] sm:$0xff] %v2977_v61  ;;  %v2979_v62 = vld [vmem:[#allocation7 + $0x1e0] sm:$0xff]  ;;  %v2981_v63 = vld [vmem:[#allocation7 + $0x1e8] sm:$0xff]  ;;  %v2996_v60 = vpack.c.bf16 (!%p1739_p4), %v2867_v6, %v2859_v2  ;;  %v3014_v6 = vpack.c.bf16 (!%p1739_p4), %v2883_v14, %v2875_v10 }
  0xa0   : > { %3728 = vst [vmem:[#allocation65_spill] sm:$0xff] %v2979_v62  ;;  %3729 = vst [vmem:[#allocation66_spill] sm:$0xff] %v2981_v63  ;;  %v2983_v0 = vld [vmem:[#allocation7 + $0x1f0] sm:$0xff]  ;;  %v2985_v1 = vld [vmem:[#allocation7 + $0x1f8] sm:$0xff]  ;;  %v3000_v62 = vpack.c.bf16 (!%p1739_p4), %v2885_v15, %v2877_v11  ;;  %1792 = vmatprep.subr.bf16.mxu0 (!%p1739_p4), %v2992_v58  ;;  %v3018_v15 = vpack.c.bf16 (!%p1739_p4), %v2889_v17, %v2881_v13  ;;  %v3034_v17 = vpack.c.bf16 (!%p1739_p4), %v2905_v25, %v2897_v21  ;;  %v3629_v13 = vmov (!%p1739_p4), 0.0  }
  0xa1   : > { %3730 = vst [vmem:[#allocation67_spill] sm:$0xff] %v2983_v0  ;;  %3731 = vst [vmem:[#allocation68_spill] sm:$0xff] %v2985_v1  ;;  %v3005_v0 = vpack.c.bf16 (!%p1739_p4), %v2873_v9, %v2865_v5  ;;  %v3009_v1 = vpack.c.bf16 (!%p1739_p4), %v2871_v8, %v2863_v4  ;;  %1794 = vmatpush1.bf16.msra.mxu0 (!%p1739_p4), %v2996_v60  ;;  %v3023_v9 = vpack.c.bf16 (!%p1739_p4), %v2901_v23, %v2893_v19 }
  0xa2   : > { %1796 = vmatprep.subr.bf16.mxu0 %v3000_v62  ;;  %v3029_v8 = vpack.c.bf16 %v2887_v16, %v2879_v12  ;;  %494 = vmatprep.mubr.f32.mxu0 %v3629_v13  ;;  %v3040_v23 = vpack.c.bf16 %v2899_v22, %v2891_v18  ;;  %v3045_v16 = vpack.c.bf16 %v2917_v31, %v2909_v27  ;;  %s602_s7 = scalar_select %p601_p6, 1, 0 }
  0xa3   : > { %1824 = vmatprep.subr.bf16.mxu1 %v3005_v0  ;;  %565 = vmatprep.mubr.f32.mxu1 %v3629_v13  ;;  %v3051_v25 = vpack.c.bf16 %v2903_v24, %v2895_v20  ;;  %v3056_v22 = vpack.c.bf16 %v2921_v33, %v2913_v29  ;;  %v3061_v31 = vpack.c.bf16 %v2915_v30, %v2907_v26  ;;  %s789_s17 = scalar_select %p788_p8, 1, 0 }
  0xa4   : > { %1826 = vmatpush1.bf16.msra.mxu1 %v3009_v1  ;;  %v3066_v13 = vpack.c.bf16 %v2933_v39, %v2925_v35  ;;  %v3071_v24 = vpack.c.bf16 %v2919_v32, %v2911_v28  ;;  %v3076_v33 = vpack.c.bf16 %v2937_v41, %v2929_v37  ;;  %v3081_v30 = vpack.c.bf16 %v2931_v38, %v2923_v34  ;;  %v429_v34 = vld [vmem:[%s2842_s15 + $0x18] sm:$0xff]  ;;  %v428_v37 = vld [vmem:[%s2842_s15 + $0x10] sm:$0xff]  ;;  %s977_s1 = scalar_select %p976_p13, 1, 0 }
  0xa5   : > { %1828 = vmatprep.subr.bf16.mxu1 %v3018_v15  ;;  %1798 = vmatpush1.bf16.msra.mxu0 %v3014_v6  ;;  %v3086_v39 = vpack.c.bf16 %v2949_v47, %v2941_v43  ;;  %v3091_v32 = vpack.c.bf16 %v2935_v40, %v2927_v36  ;;  %v3096_v41 = vpack.c.bf16 %v2953_v49, %v2945_v45 }
  0xa6   : > { %1800 = vmatprep.subr.bf16.mxu0 %v3023_v9  ;;  %v3101_v38 = vpack.c.bf16 %v2947_v46, %v2939_v42  ;;  %v3106_v47 = vpack.c.bf16 %v2965_v55, %v2957_v51  ;;  %v3111_v40 = vpack.c.bf16 %v2951_v48, %v2943_v44  ;;  %v3116_v49 = vpack.c.bf16 %v2969_v57, %v2961_v53 }
  0xa7   : > { %v3121_v46 = vpack.c.bf16 %v2963_v54, %v2955_v50  ;;  %v3126_v55 = vpack.c.bf16 %v2981_v63, %v2973_v59  ;;  %v3131_v48 = vpack.c.bf16 %v2967_v56, %v2959_v52  ;;  %v3733_v54 = vld [vmem:[#allocation61_spill] sm:$0xff]  ;;  %v3735_v63 = vld [vmem:[#allocation63_spill] sm:$0xff] }
  0xa8   : > { %1830 = vmatpush1.bf16.msra.mxu1 %v3029_v8  ;;  %v3732_v57 = vld [vmem:[#allocation68_spill] sm:$0xff]  ;;  %v3734_v50 = vld [vmem:[#allocation65_spill] sm:$0xff]  ;;  %v3736_v59 = vld [vmem:[#allocation67_spill] sm:$0xff] }
  0xa9   : > { %1832 = vmatprep.subr.bf16.mxu1 %v3034_v17  ;;  %1802 = vmatpush1.bf16.msra.mxu0 %v3040_v23  ;;  %v3136_v53 = vpack.c.bf16 %v3732_v57, %v2977_v61  ;;  %v3141_v44 = vpack.c.bf16 %v3734_v50, %v3733_v54  ;;  %v3147_v56 = vpack.c.bf16 %v3736_v59, %v3735_v63  ;;  %v3151_v57 = vld [vmem:[#allocation2] sm:$0xff]  ;;  %v3737_v50 = vmov 0.0   ;;  %v426_v54 = vld [vmem:[%s2842_s15] sm:$0xff]  ;;  %v427_v59 = vld [vmem:[%s2842_s15 + $0x8] sm:$0xff] }
  0xaa   : > { %1804 = vmatprep.subr.bf16.mxu0 %v3045_v16 }
  0xac   : > { %1834 = vmatpush1.bf16.msra.mxu1 %v3051_v25 }
  0xad   : > { %1836 = vmatprep.subr.bf16.mxu1 %v3056_v22  ;;  %1806 = vmatpush1.bf16.msra.mxu0 %v3061_v31 }
  0xae   : > { %1808 = vmatprep.subr.bf16.mxu0 %v3066_v13 }
  0xb0   : > { %1838 = vmatpush1.bf16.msra.mxu1 %v3071_v24 }
  0xb1   : > { %1840 = vmatprep.subr.bf16.mxu1 %v3076_v33  ;;  %1810 = vmatpush1.bf16.msra.mxu0 %v3081_v30 }
  0xb2   : > { %1812 = vmatprep.subr.bf16.mxu0 %v3086_v39 }
  0xb4   : > { %1842 = vmatpush1.bf16.msra.mxu1 %v3091_v32 }
  0xb5   : > { %1844 = vmatprep.subr.bf16.mxu1 %v3096_v41  ;;  %1814 = vmatpush1.bf16.msra.mxu0 %v3101_v38 }
  0xb6   : > { %1816 = vmatprep.subr.bf16.mxu0 %v3106_v47 }
  0xb8   : > { %1846 = vmatpush1.bf16.msra.mxu1 %v3111_v40 }
  0xb9   : > { %1848 = vmatprep.subr.bf16.mxu1 %v3116_v49  ;;  %1818 = vmatpush1.bf16.msra.mxu0 %v3121_v46 }
  0xba   : > { %1820 = vmatprep.subr.bf16.mxu0 %v3126_v55 }
  0xbc   : > { %1850 = vmatpush1.bf16.msra.mxu1 %v3131_v48 }
  0xbd   : > { %1852 = vmatprep.subr.bf16.mxu1 %v3136_v53  ;;  %1822 = vmatpush1.bf16.msra.mxu0 %v3141_v44 }
  0xbe   : > { %1856 = vmatprep.subr.bf16.mxu0 %v2992_v58 }
  0xc0   : > { %1854 = vmatpush1.bf16.msra.mxu1 %v3147_v56  ;;  %495 = vmatmul.mubr.f32.vlgmr.msra.gmra.mrb[0].mxu0 %v3151_v57 }
  0xc1   : > { %1888 = vmatprep.subr.bf16.mxu1 %v3005_v0  ;;  %1858 = vmatpush1.bf16.msra.mxu0 %v2996_v60 }
  0xc2   : > { %681 = vmatprep.mubr.f32.mxu0 %v3737_v50  ;;  %1860 = vmatprep.subr.bf16.mxu0 %v3000_v62 }
  0xc3   : > { %566 = vmatmul.mubr.f32.vlgmr.msra.gmra.mrb[0].mxu1 %v3151_v57 }
  0xc4   : > { %1890 = vmatpush1.bf16.msra.mxu1 %v3009_v1  ;;  %752 = vmatprep.mubr.f32.mxu1 %v3737_v50 }
  0xc5   : > { %1892 = vmatprep.subr.bf16.mxu1 %v3018_v15  ;;  %1862 = vmatpush1.bf16.msra.mxu0 %v3014_v6 }
  0xc6   : > { %1864 = vmatprep.subr.bf16.mxu0 %v3023_v9 }
  0xc8   : > { %1894 = vmatpush1.bf16.msra.mxu1 %v3029_v8 }
  0xc9   : > { %1896 = vmatprep.subr.bf16.mxu1 %v3034_v17  ;;  %1866 = vmatpush1.bf16.msra.mxu0 %v3040_v23 }
  0xca   : > { %1868 = vmatprep.subr.bf16.mxu0 %v3045_v16 }
  0xcc   : > { %1898 = vmatpush1.bf16.msra.mxu1 %v3051_v25 }
  0xcd   : > { %1900 = vmatprep.subr.bf16.mxu1 %v3056_v22  ;;  %1870 = vmatpush1.bf16.msra.mxu0 %v3061_v31 }
  0xce   : > { %1872 = vmatprep.subr.bf16.mxu0 %v3066_v13 }
  0xd0   : > { %1902 = vmatpush1.bf16.msra.mxu1 %v3071_v24 }
  0xd1   : > { %1904 = vmatprep.subr.bf16.mxu1 %v3076_v33  ;;  %1874 = vmatpush1.bf16.msra.mxu0 %v3081_v30 }
  0xd2   : > { %1876 = vmatprep.subr.bf16.mxu0 %v3086_v39 }
  0xd4   : > { %1906 = vmatpush1.bf16.msra.mxu1 %v3091_v32 }
  0xd5   : > { %1908 = vmatprep.subr.bf16.mxu1 %v3096_v41  ;;  %1878 = vmatpush1.bf16.msra.mxu0 %v3101_v38 }
  0xd6   : > { %1880 = vmatprep.subr.bf16.mxu0 %v3106_v47 }
  0xd8   : > { %1910 = vmatpush1.bf16.msra.mxu1 %v3111_v40 }
  0xd9   : > { %1912 = vmatprep.subr.bf16.mxu1 %v3116_v49  ;;  %1882 = vmatpush1.bf16.msra.mxu0 %v3121_v46 }
  0xda   : > { %1884 = vmatprep.subr.bf16.mxu0 %v3126_v55 }
  0xdc   : > { %1914 = vmatpush1.bf16.msra.mxu1 %v3131_v48 }
  0xdd   : > { %1916 = vmatprep.subr.bf16.mxu1 %v3136_v53  ;;  %1886 = vmatpush1.bf16.msra.mxu0 %v3141_v44 }
  0xde   : > { %1920 = vmatprep.subr.bf16.mxu0 %v2992_v58 }
  0xe0   : > { %1918 = vmatpush1.bf16.msra.mxu1 %v3147_v56 }
  0xe1   : > { %1952 = vmatprep.subr.bf16.mxu1 %v3005_v0 }
 0x193   : > { %v496_v63 = vpop.f32.mrb[0].mxu0 }
 0x194   : > { %v572_v61 = vadd.f32 %v496_v63, %v426_v54  ;;  %v498_v52 = vpop.f32.mrb[1].mxu0 }
 0x195   : > { %v573_v51 = vadd.f32 %v498_v52, %v427_v59 }
 0x196   : > { %v567_v42 = vpop.f32.mrb[0].mxu1  ;;  %v1740_v45 = vmul.f32 -1.442695, %v572_v61 }
 0x197   : > { %v569_v36 = vpop.f32.mrb[1].mxu1  ;;  %v1741_v43 = vmul.f32 -1.442695, %v573_v51  ;;  %v574_v35 = vadd.f32 %v567_v42, %v428_v37 }
 0x198   : > { %2281 = vpow2.f32 %v1740_v45  ;;  %v575_v58 = vadd.f32 %v569_v36, %v429_v34  ;;  %v603_v36 = vstv %s602_s7 }
 0x199   : > { %2283 = vpow2.f32 %v1741_v43  ;;  %v425_v43 = vld [vmem:[#allocation3] sm:$0xff]  ;;  %vm604_vm0 = vcmp.eq.s32.totalorder %v603_v36, 1 }
 0x19a   : > { %v1742_v28 = vmul.f32 -1.442695, %v575_v58 }
 0x19c   : > { %2285 = vpow2.f32 %v1742_v28 }
 0x19d   : > { %2287 = vtanh.f32 %v574_v35 }
 0x1a2   : > { %v2282_v26 = vpop.eup %2281 }
 0x1a3   : > { %v2284_v0 = vpop.eup %2283  ;;  %v579_v29 = vadd.f32 1.0, %v2282_v26 }
 0x1a4   : > { %v585_v52 = vadd.f32 1.0, %v2284_v0  ;;  %v1751_v0 = vld [vmem:[%s2842_s15 + $0x40] sm:$0xff] }
 0x1a5   : > { %2289 = vrcp.f32 %v579_v29 }
 0x1a6   : > { %2291 = vrcp.f32 %v585_v52  ;;  %v2286_v51 = vpop.eup %2285  ;;  %v1752_v52 = vld [vmem:[%s2842_s15 + $0x48] sm:$0xff] }
 0x1a7   : > { %v2288_v45 = vpop.eup %2287  ;;  %v592_v37 = vadd.f32 1.0, %v2286_v51 }
 0x1a9   : > { %2293 = vrcp.f32 %v592_v37 }
 0x1af   : > { %v2290_v34 = vpop.eup %2289 }
 0x1b0   : > { %v2292_v42 = vpop.eup %2291  ;;  %v596_v28 = vmul.f32 %v2290_v34, %v2288_v45 }
 0x1b1   : > { %v595_v61 = vmul.f32 %v2292_v42, %v425_v43 }
 0x1b3   : > { %v597_v26 = vadd.f32 %v596_v28, %v595_v61  ;;  %v2294_v29 = vpop.eup %2293  ;;  %v1754_v61 = vld [vmem:[%s2842_s15 + $0x58] sm:$0xff] }
 0x1b5   : > { %2295 = vtanh.f32 %v597_v26  ;;  %v3200_v35 = vsel %vm604_vm0, %v597_v26, %v425_v43 }
 0x1bf   : > { %v2296_v54 = vpop.eup %2295 }
 0x1c0   : > { %v599_v59 = vmul.f32 %v2296_v54, %v2294_v29 }
 0x1c2   : > { %v3203_v63 = vsel %vm604_vm0, %v599_v59, %v3151_v57 }
 0x1c3   : > { %607 = vst [vmem:[%s2853_s13] sm:$0xff] %v3203_v63  ;;  %682 = vmatmul.mubr.f32.vlgmr.msra.gmra.mrb[2].mxu0 %v3203_v63  ;;  %753 = vmatmul.mubr.f32.vlgmr.msra.gmra.mrb[2].mxu1 %v3203_v63 }
 0x1c4   : > { %1922 = vmatpush1.bf16.msra.mxu0 %v2996_v60  ;;  %1954 = vmatpush1.bf16.msra.mxu1 %v3009_v1 }
 0x1c5   : > { %1924 = vmatprep.subr.bf16.mxu0 %v3000_v62  ;;  %1956 = vmatprep.subr.bf16.mxu1 %v3018_v15 }
 0x1c6   : > { %869 = vmatprep.mubr.f32.mxu0 %v3737_v50  ;;  %940 = vmatprep.mubr.f32.mxu1 %v3737_v50 }
 0x1c8   : > { %1926 = vmatpush1.bf16.msra.mxu0 %v3014_v6  ;;  %1958 = vmatpush1.bf16.msra.mxu1 %v3029_v8  ;;  %v1743_v6 = vld [vmem:[%s2842_s15 + $0x20] sm:$0xff]  ;;  %v1744_v8 = vld [vmem:[%s2842_s15 + $0x28] sm:$0xff] }
 0x1c9   : > { %1928 = vmatprep.subr.bf16.mxu0 %v3023_v9  ;;  %1960 = vmatprep.subr.bf16.mxu1 %v3034_v17 }
 0x1cc   : > { %1930 = vmatpush1.bf16.msra.mxu0 %v3040_v23  ;;  %1962 = vmatpush1.bf16.msra.mxu1 %v3051_v25  ;;  %v1746_v25 = vld [vmem:[%s2842_s15 + $0x38] sm:$0xff] }
 0x1cd   : > { %1932 = vmatprep.subr.bf16.mxu0 %v3045_v16  ;;  %1964 = vmatprep.subr.bf16.mxu1 %v3056_v22 }
 0x1d0   : > { %1934 = vmatpush1.bf16.msra.mxu0 %v3061_v31  ;;  %1966 = vmatpush1.bf16.msra.mxu1 %v3071_v24  ;;  %v1745_v31 = vld [vmem:[%s2842_s15 + $0x30] sm:$0xff] }
 0x1d1   : > { %1936 = vmatprep.subr.bf16.mxu0 %v3066_v13  ;;  %1968 = vmatprep.subr.bf16.mxu1 %v3076_v33 }
 0x1d4   : > { %1938 = vmatpush1.bf16.msra.mxu0 %v3081_v30  ;;  %1970 = vmatpush1.bf16.msra.mxu1 %v3091_v32 }
 0x1d5   : > { %1940 = vmatprep.subr.bf16.mxu0 %v3086_v39  ;;  %1972 = vmatprep.subr.bf16.mxu1 %v3096_v41 }
 0x1d8   : > { %1942 = vmatpush1.bf16.msra.mxu0 %v3101_v38  ;;  %1974 = vmatpush1.bf16.msra.mxu1 %v3111_v40 }
 0x1d9   : > { %1944 = vmatprep.subr.bf16.mxu0 %v3106_v47  ;;  %1976 = vmatprep.subr.bf16.mxu1 %v3116_v49 }
 0x1dc   : > { %1946 = vmatpush1.bf16.msra.mxu0 %v3121_v46  ;;  %1978 = vmatpush1.bf16.msra.mxu1 %v3131_v48  ;;  %v790_v48 = vstv %s789_s17 }
 0x1dd   : > { %1948 = vmatprep.subr.bf16.mxu0 %v3126_v55  ;;  %1980 = vmatprep.subr.bf16.mxu1 %v3136_v53  ;;  %vm791_vm1 = vcmp.eq.s32.totalorder %v790_v48, 1 }
 0x1e0   : > { %1950 = vmatpush1.bf16.msra.mxu0 %v3141_v44  ;;  %1982 = vmatpush1.bf16.msra.mxu1 %v3147_v56 }
 0x296   : > { %v683_v9 = vpop.f32.mrb[2].mxu0  ;;  %v754_v13 = vpop.f32.mrb[2].mxu1 }
 0x297   : > { %v759_v15 = vadd.f32 %v1743_v6, %v683_v9  ;;  %v685_v16 = vpop.f32.mrb[3].mxu0  ;;  %v756_v17 = vpop.f32.mrb[3].mxu1  ;;  %v761_v33 = vadd.f32 %v1745_v31, %v754_v13 }
 0x298   : > { %v760_v22 = vadd.f32 %v1744_v8, %v685_v16  ;;  %v762_v30 = vadd.f32 %v1746_v25, %v756_v17  ;;  %v978_v16 = vstv %s977_s1 }
 0x299   : > { %v1747_v23 = vmul.f32 -1.442695, %v759_v15  ;;  %vm979_vm2 = vcmp.eq.s32.totalorder %v978_v16, 1 }
 0x29a   : > { %v1748_v24 = vmul.f32 -1.442695, %v760_v22  ;;  %v1749_v32 = vmul.f32 -1.442695, %v762_v30 }
 0x29b   : > { %2297 = vpow2.f32 %v1747_v23 }
 0x29c   : > { %2299 = vpow2.f32 %v1748_v24 }
 0x29d   : > { %2301 = vpow2.f32 %v1749_v32 }
 0x29e   : > { %2303 = vtanh.f32 %v761_v33 }
 0x2a5   : > { %v2298_v38 = vpop.eup %2297 }
 0x2a6   : > { %v2300_v39 = vpop.eup %2299  ;;  %v766_v40 = vadd.f32 1.0, %v2298_v38 }
 0x2a7   : > { %v772_v41 = vadd.f32 1.0, %v2300_v39  ;;  %v2302_v44 = vpop.eup %2301 }
 0x2a8   : > { %2305 = vrcp.f32 %v766_v40  ;;  %v2304_v46 = vpop.eup %2303  ;;  %v779_v55 = vadd.f32 1.0, %v2302_v44 }
 0x2a9   : > { %2307 = vrcp.f32 %v772_v41 }
 0x2aa   : > { %2309 = vrcp.f32 %v779_v55 }
 0x2b2   : > { %v2306_v47 = vpop.eup %2305 }
 0x2b3   : > { %v2308_v49 = vpop.eup %2307  ;;  %v783_v53 = vmul.f32 %v2306_v47, %v2304_v46 }
 0x2b4   : > { %v782_v56 = vmul.f32 %v2308_v49, %v3200_v35  ;;  %v2310_v1 = vpop.eup %2309 }
 0x2b6   : > { %v784_v60 = vadd.f32 %v783_v53, %v782_v56 }
 0x2b8   : > { %2311 = vtanh.f32 %v784_v60  ;;  %v792_v62 = vsel %vm791_vm1, %v784_v60, %v3200_v35  ;;  %v1753_v35 = vld [vmem:[%s2842_s15 + $0x50] sm:$0xff] }
 0x2c2   : > { %v2312_v57 = vpop.eup %2311 }
 0x2c3   : > { %v786_v50 = vmul.f32 %v2312_v57, %v2310_v1 }
 0x2c5   : > { %v793_v58 = vsel %vm791_vm1, %v786_v50, %v3203_v63 }
 0x2c6   : > { %1750 = vst [vmem:[%s2853_s13 + $0x8] sm:$0xff] %v793_v58  ;;  %870 = vmatmul.mubr.f32.vlgmr.msra.gmra.mrb[4].mxu0 %v793_v58  ;;  %941 = vmatmul.mubr.f32.vlgmr.msra.gmra.mrb[4].mxu1 %v793_v58 }
 0x399   : > { %v871_v51 = vpop.f32.mrb[4].mxu0  ;;  %v942_v45 = vpop.f32.mrb[4].mxu1 }
 0x39a   : > { %v947_v43 = vadd.f32 %v1751_v0, %v871_v51  ;;  %v873_v34 = vpop.f32.mrb[5].mxu0  ;;  %v944_v36 = vpop.f32.mrb[5].mxu1  ;;  %v949_v54 = vadd.f32 %v1753_v35, %v942_v45 }
 0x39b   : > { %v948_v37 = vadd.f32 %v1752_v52, %v873_v34  ;;  %v950_v26 = vadd.f32 %v1754_v61, %v944_v36 }
 0x39c   : > { %v1755_v42 = vmul.f32 -1.442695, %v947_v43 }
 0x39d   : > { %v1756_v28 = vmul.f32 -1.442695, %v948_v37  ;;  %v1757_v29 = vmul.f32 -1.442695, %v950_v26 }
 0x39e   : > { %2313 = vpow2.f32 %v1755_v42 }
 0x39f   : > { %2315 = vpow2.f32 %v1756_v28 }
 0x3a0   : > { %2317 = vpow2.f32 %v1757_v29 }
 0x3a1   : > { %2319 = vtanh.f32 %v949_v54 }
 0x3a8   : > { %v2314_v59 = vpop.eup %2313 }
 0x3a9   : > { %v2316_v63 = vpop.eup %2315  ;;  %v954_v6 = vadd.f32 1.0, %v2314_v59 }
 0x3aa   : > { %v960_v8 = vadd.f32 1.0, %v2316_v63  ;;  %v2318_v9 = vpop.eup %2317 }
 0x3ab   : > { %2321 = vrcp.f32 %v954_v6  ;;  %v2320_v13 = vpop.eup %2319  ;;  %v967_v23 = vadd.f32 1.0, %v2318_v9 }
 0x3ac   : > { %2323 = vrcp.f32 %v960_v8 }
 0x3ad   : > { %2325 = vrcp.f32 %v967_v23 }
 0x3b5   : > { %v2322_v15 = vpop.eup %2321 }
 0x3b6   : > { %v2324_v17 = vpop.eup %2323  ;;  %v971_v22 = vmul.f32 %v2322_v15, %v2320_v13 }
 0x3b7   : > { %v970_v24 = vmul.f32 %v2324_v17, %v792_v62  ;;  %v2326_v31 = vpop.eup %2325 }
 0x3b9   : > { %v972_v25 = vadd.f32 %v971_v22, %v970_v24 }
 0x3bb   : > { %2327 = vtanh.f32 %v972_v25  ;;  %v980_v30 = vsel %vm979_vm2, %v972_v25, %v792_v62 }
 0x3bc   : > { %985 = vst [vmem:[#allocation3] sm:$0xff] %v980_v30 }
 0x3c5   : > { %v2328_v32 = vpop.eup %2327 }
 0x3c6   : > { %v974_v33 = vmul.f32 %v2328_v32, %v2326_v31 }
 0x3c8   : > { %v981_v38 = vsel %vm979_vm2, %v974_v33, %v793_v58 }
 0x3c9   : > { %1758 = vst [vmem:[%s2853_s13 + $0x10] sm:$0xff] %v981_v38  ;;  %984 = vst [vmem:[#allocation2] sm:$0xff] %v981_v38 }
 0x3ca PF: > { %p1759_p0 = scmp.eq.s32.totalorder %s2597_s24, 2 }
 0x3cb   : > { %v3259_v39 = vpack.c.bf16 (!%p1759_p0), %v2869_v7, %v2861_v3  ;;  %v3738_v40 = vld [vmem:[#allocation19_spill] sm:$0xff] (!%p1759_p0)  ;;  %v3740_v47 = vld [vmem:[#allocation21_spill] sm:$0xff] (!%p1759_p0)  ;;  %v3741_v49 = vld [vmem:[#allocation20_spill] sm:$0xff] (!%p1759_p0)  ;;  %v2613_v60 = vmov (!%p1759_p0), 0.0  }
 0x3cc   : > { %989 = sbr.rel (%p1759_p0) target bundleno = 1780 (0x6f4), region = 60  ;;  %v3263_v41 = vpack.c.bf16 (!%p1759_p0), %v3738_v40, %v2859_v2  ;;  %v3739_v44 = vld [vmem:[#allocation23_spill] sm:$0xff] (!%p1759_p0)  ;;  %v3272_v48 = vpack.c.bf16 (!%p1759_p0), %v3740_v47, %v2865_v5  ;;  %v3276_v53 = vpack.c.bf16 (!%p1759_p0), %v3741_v49, %v2863_v4  ;;  %v3281_v2 = vpack.c.bf16 (!%p1759_p0), %v2883_v14, %v2875_v10  ;;  %v3742_v3 = vld [vmem:[#allocation22_spill] sm:$0xff] (!%p1759_p0)  ;;  %v3743_v7 = vld [vmem:[#allocation25_spill] sm:$0xff] (!%p1759_p0)  ;;  %1060 = vmatprep.mubr.f32.mxu0 (!%p1759_p0), %v2613_v60 }
 0x3cd   : > { %v3267_v46 = vpack.c.bf16 (!%p1759_p0), %v3739_v44, %v2877_v11  ;;  %1984 = vmatprep.subr.bf16.mxu0 (!%p1759_p0), %v3259_v39  ;;  %v3285_v11 = vpack.c.bf16 (!%p1759_p0), %v3743_v7, %v3742_v3  ;;  %v3744_v55 = vld [vmem:[#allocation27_spill] sm:$0xff] (!%p1759_p0)  ;;  %v3745_v4 = vld [vmem:[#allocation24_spill] sm:$0xff] (!%p1759_p0)  ;;  %v3746_v10 = vld [vmem:[#allocation29_spill] sm:$0xff] (!%p1759_p0)  ;;  %1131 = vmatprep.mubr.f32.mxu1 (!%p1759_p0), %v2613_v60 }
 0x3ce   : > { %1986 = vmatpush1.bf16.msra.mxu0 (!%p1759_p0), %v3263_v41  ;;  %v3290_v5 = vpack.c.bf16 (!%p1759_p0), %v3744_v55, %v2893_v19  ;;  %2016 = vmatprep.subr.bf16.mxu1 (!%p1759_p0), %v3272_v48  ;;  %v3296_v56 = vpack.c.bf16 (!%p1759_p0), %v3745_v4, %v2879_v12  ;;  %v3301_v14 = vpack.c.bf16 (!%p1759_p0), %v3746_v10, %v2897_v21  ;;  %v3747_v19 = vld [vmem:[#allocation26_spill] sm:$0xff] (!%p1759_p0)  ;;  %v3749_v21 = vld [vmem:[#allocation28_spill] sm:$0xff] (!%p1759_p0)  ;;  %v3753_v52 = vld [vmem:[#allocation33_spill] sm:$0xff] (!%p1759_p0) }
 0x3cf   : > { %1988 = vmatprep.subr.bf16.mxu0 (!%p1759_p0), %v3267_v46  ;;  %2018 = vmatpush1.bf16.msra.mxu1 (!%p1759_p0), %v3276_v53  ;;  %v3307_v62 = vpack.c.bf16 (!%p1759_p0), %v3747_v19, %v2891_v18  ;;  %v3748_v12 = vld [vmem:[#allocation34_spill] sm:$0xff] (!%p1759_p0)  ;;  %v3318_v57 = vpack.c.bf16 (!%p1759_p0), %v3749_v21, %v2895_v20  ;;  %v3750_v50 = vld [vmem:[#allocation32_spill] sm:$0xff] (!%p1759_p0)  ;;  %v3756_v20 = vld [vmem:[#allocation31_spill] sm:$0xff] (!%p1759_p0) }
 0x3d0   : > { %2020 = vmatprep.subr.bf16.mxu1 (!%p1759_p0), %v3285_v11  ;;  %v3312_v1 = vpack.c.bf16 (!%p1759_p0), %v3748_v12, %v2909_v27  ;;  %v3751_v58 = vld [vmem:[#allocation36_spill] sm:$0xff] (!%p1759_p0)  ;;  %v3752_v0 = vld [vmem:[#allocation30_spill] sm:$0xff] (!%p1759_p0)  ;;  %v3757_v34 = vld [vmem:[#allocation35_spill] sm:$0xff] (!%p1759_p0) }
 0x3d1   : > { %v3323_v18 = vpack.c.bf16 (!%p1759_p0), %v3751_v58, %v3750_v50  ;;  %v3328_v27 = vpack.c.bf16 (!%p1759_p0), %v3753_v52, %v3752_v0  ;;  %v3754_v51 = vld [vmem:[#allocation38_spill] sm:$0xff] (!%p1759_p0)  ;;  %v3338_v36 = vpack.c.bf16 (!%p1759_p0), %v3757_v34, %v3756_v20  ;;  %v3758_v37 = vld [vmem:[#allocation40_spill] sm:$0xff] (!%p1759_p0)  ;;  %v3760_v61 = vld [vmem:[#allocation37_spill] sm:$0xff] (!%p1759_p0) }
 0x3d2   : > { %1990 = vmatpush1.bf16.msra.mxu0 (!%p1759_p0), %v3281_v2  ;;  %v3755_v45 = vld [vmem:[#allocation42_spill] sm:$0xff] (!%p1759_p0)  ;;  %v3759_v42 = vld [vmem:[#allocation44_spill] sm:$0xff] (!%p1759_p0)  ;;  %v3761_v26 = vld [vmem:[#allocation41_spill] sm:$0xff] (!%p1759_p0) }
 0x3d3   : > { %1992 = vmatprep.subr.bf16.mxu0 %v3290_v5  ;;  %2022 = vmatpush1.bf16.msra.mxu1 %v3296_v56  ;;  %v3333_v43 = vpack.c.bf16 %v3755_v45, %v3754_v51  ;;  %v3343_v28 = vpack.c.bf16 %v3759_v42, %v3758_v37  ;;  %v3348_v35 = vpack.c.bf16 %v3761_v26, %v3760_v61  ;;  %v3762_v29 = vld [vmem:[#allocation46_spill] sm:$0xff]  ;;  %v3764_v63 = vld [vmem:[#allocation39_spill] sm:$0xff]  ;;  %v3766_v9 = vld [vmem:[#allocation48_spill] sm:$0xff] }
 0x3d4   : > { %2024 = vmatprep.subr.bf16.mxu1 %v3301_v14  ;;  %v3763_v54 = vld [vmem:[#allocation50_spill] sm:$0xff]  ;;  %v3765_v6 = vld [vmem:[#allocation43_spill] sm:$0xff]  ;;  %v3767_v13 = vld [vmem:[#allocation52_spill] sm:$0xff] }
 0x3d5   : > { %v3353_v59 = vpack.c.bf16 %v3763_v54, %v3762_v29  ;;  %v3358_v8 = vpack.c.bf16 %v3765_v6, %v3764_v63  ;;  %v3363_v15 = vpack.c.bf16 %v3767_v13, %v3766_v9  ;;  %v3768_v16 = vld [vmem:[#allocation45_spill] sm:$0xff]  ;;  %v3770_v23 = vld [vmem:[#allocation54_spill] sm:$0xff]  ;;  %v3772_v30 = vld [vmem:[#allocation47_spill] sm:$0xff] }
 0x3d6   : > { %1994 = vmatpush1.bf16.msra.mxu0 %v3307_v62  ;;  %v3769_v17 = vld [vmem:[#allocation49_spill] sm:$0xff]  ;;  %v3771_v24 = vld [vmem:[#allocation58_spill] sm:$0xff]  ;;  %v3773_v31 = vld [vmem:[#allocation51_spill] sm:$0xff] }
 0x3d7   : > { %1996 = vmatprep.subr.bf16.mxu0 %v3312_v1  ;;  %2026 = vmatpush1.bf16.msra.mxu1 %v3318_v57  ;;  %v3368_v22 = vpack.c.bf16 %v3769_v17, %v3768_v16  ;;  %v3373_v25 = vpack.c.bf16 %v3771_v24, %v3770_v23  ;;  %v3378_v32 = vpack.c.bf16 %v3773_v31, %v3772_v30  ;;  %v3774_v33 = vld [vmem:[#allocation56_spill] sm:$0xff]  ;;  %v3776_v44 = vld [vmem:[#allocation53_spill] sm:$0xff]  ;;  %v3778_v3 = vld [vmem:[#allocation62_spill] sm:$0xff] }
 0x3d8   : > { %2028 = vmatprep.subr.bf16.mxu1 %v3323_v18  ;;  %v3775_v38 = vld [vmem:[#allocation60_spill] sm:$0xff]  ;;  %v3777_v47 = vld [vmem:[#allocation57_spill] sm:$0xff]  ;;  %v3779_v7 = vld [vmem:[#allocation66_spill] sm:$0xff] }
 0x3d9   : > { %v3383_v40 = vpack.c.bf16 %v3775_v38, %v3774_v33  ;;  %v3388_v49 = vpack.c.bf16 %v3777_v47, %v3776_v44  ;;  %v3393_v55 = vpack.c.bf16 %v3779_v7, %v3778_v3  ;;  %v3780_v4 = vld [vmem:[#allocation55_spill] sm:$0xff]  ;;  %v3782_v12 = vld [vmem:[#allocation64_spill] sm:$0xff]  ;;  %v3784_v58 = vld [vmem:[#allocation61_spill] sm:$0xff] }
 0x3da   : > { %1998 = vmatpush1.bf16.msra.mxu0 %v3328_v27  ;;  %v3781_v10 = vld [vmem:[#allocation59_spill] sm:$0xff]  ;;  %v3783_v21 = vld [vmem:[#allocation68_spill] sm:$0xff]  ;;  %v3785_v0 = vld [vmem:[#allocation65_spill] sm:$0xff] }
 0x3db   : > { %2000 = vmatprep.subr.bf16.mxu0 %v3333_v43  ;;  %2030 = vmatpush1.bf16.msra.mxu1 %v3338_v36  ;;  %v3398_v19 = vpack.c.bf16 %v3781_v10, %v3780_v4  ;;  %v3403_v50 = vpack.c.bf16 %v3783_v21, %v3782_v12  ;;  %v3408_v52 = vpack.c.bf16 %v3785_v0, %v3784_v58  ;;  %v3786_v51 = vld [vmem:[#allocation63_spill] sm:$0xff]  ;;  %v990_v34 = vld [vmem:[#allocation2] sm:$0xff]  ;;  %v992_v37 = vld [vmem:[%s2842_s15] sm:$0xff] }
 0x3dc   : > { %2032 = vmatprep.subr.bf16.mxu1 %v3343_v28  ;;  %v3787_v45 = vld [vmem:[#allocation67_spill] sm:$0xff]  ;;  %v995_v16 = vld [vmem:[%s2842_s15 + $0x18] sm:$0xff] }
 0x3dd   : > { %v3414_v20 = vpack.c.bf16 %v3787_v45, %v3786_v51  ;;  %v993_v42 = vld [vmem:[%s2842_s15 + $0x8] sm:$0xff]  ;;  %v991_v47 = vld [vmem:[#allocation3] sm:$0xff]  ;;  %v1771_v45 = vld [vmem:[%s2842_s15 + $0x40] sm:$0xff] }
 0x3de   : > { %2002 = vmatpush1.bf16.msra.mxu0 %v3348_v35 }
 0x3df   : > { %2004 = vmatprep.subr.bf16.mxu0 %v3353_v59  ;;  %2034 = vmatpush1.bf16.msra.mxu1 %v3358_v8 }
 0x3e0   : > { %2036 = vmatprep.subr.bf16.mxu1 %v3363_v15 }
 0x3e2   : > { %2006 = vmatpush1.bf16.msra.mxu0 %v3368_v22 }
 0x3e3   : > { %2008 = vmatprep.subr.bf16.mxu0 %v3373_v25  ;;  %2038 = vmatpush1.bf16.msra.mxu1 %v3378_v32 }
 0x3e4   : > { %2040 = vmatprep.subr.bf16.mxu1 %v3383_v40 }
 0x3e6   : > { %2010 = vmatpush1.bf16.msra.mxu0 %v3388_v49 }
 0x3e7   : > { %2012 = vmatprep.subr.bf16.mxu0 %v3393_v55  ;;  %2042 = vmatpush1.bf16.msra.mxu1 %v3398_v19 }
 0x3e8   : > { %2044 = vmatprep.subr.bf16.mxu1 %v3403_v50 }
 0x3ea   : > { %2014 = vmatpush1.bf16.msra.mxu0 %v3408_v52 }
 0x3eb   : > { %2048 = vmatprep.subr.bf16.mxu0 %v3259_v39  ;;  %2046 = vmatpush1.bf16.msra.mxu1 %v3414_v20 }
 0x3ec   : > { %2080 = vmatprep.subr.bf16.mxu1 %v3272_v48 }
 0x3ed   : > { %1061 = vmatmul.mubr.f32.vlgmr.msra.gmra.mrb[0].mxu0 %v990_v34 }
 0x3ee   : > { %2050 = vmatpush1.bf16.msra.mxu0 %v3263_v41  ;;  %1240 = vmatprep.mubr.f32.mxu0 %v2613_v60 }
 0x3ef   : > { %1132 = vmatmul.mubr.f32.vlgmr.msra.gmra.mrb[0].mxu1 %v990_v34  ;;  %2052 = vmatprep.subr.bf16.mxu0 %v3267_v46 }
 0x3f0   : > { %2082 = vmatpush1.bf16.msra.mxu1 %v3276_v53  ;;  %1311 = vmatprep.mubr.f32.mxu1 %v2613_v60 }
 0x3f1   : > { %2084 = vmatprep.subr.bf16.mxu1 %v3285_v11 }
 0x3f2   : > { %2054 = vmatpush1.bf16.msra.mxu0 %v3281_v2 }
 0x3f3   : > { %2056 = vmatprep.subr.bf16.mxu0 %v3290_v5 }
 0x3f4   : > { %2086 = vmatpush1.bf16.msra.mxu1 %v3296_v56 }
 0x3f5   : > { %2088 = vmatprep.subr.bf16.mxu1 %v3301_v14 }
 0x3f6   : > { %2058 = vmatpush1.bf16.msra.mxu0 %v3307_v62 }
 0x3f7   : > { %2060 = vmatprep.subr.bf16.mxu0 %v3312_v1 }
 0x3f8   : > { %2090 = vmatpush1.bf16.msra.mxu1 %v3318_v57 }
 0x3f9   : > { %2092 = vmatprep.subr.bf16.mxu1 %v3323_v18 }
 0x3fa   : > { %2062 = vmatpush1.bf16.msra.mxu0 %v3328_v27 }
 0x3fb   : > { %2064 = vmatprep.subr.bf16.mxu0 %v3333_v43 }
 0x3fc   : > { %2094 = vmatpush1.bf16.msra.mxu1 %v3338_v36 }
 0x3fd   : > { %2096 = vmatprep.subr.bf16.mxu1 %v3343_v28 }
 0x3fe   : > { %2066 = vmatpush1.bf16.msra.mxu0 %v3348_v35 }
 0x3ff   : > { %2068 = vmatprep.subr.bf16.mxu0 %v3353_v59 }
 0x400   : > { %2098 = vmatpush1.bf16.msra.mxu1 %v3358_v8 }
 0x401   : > { %2100 = vmatprep.subr.bf16.mxu1 %v3363_v15 }
 0x402   : > { %2070 = vmatpush1.bf16.msra.mxu0 %v3368_v22 }
 0x403   : > { %2072 = vmatprep.subr.bf16.mxu0 %v3373_v25 }
 0x404   : > { %2102 = vmatpush1.bf16.msra.mxu1 %v3378_v32 }
 0x405   : > { %2104 = vmatprep.subr.bf16.mxu1 %v3383_v40 }
 0x406   : > { %2074 = vmatpush1.bf16.msra.mxu0 %v3388_v49 }
 0x407   : > { %2076 = vmatprep.subr.bf16.mxu0 %v3393_v55 }
 0x408   : > { %2106 = vmatpush1.bf16.msra.mxu1 %v3398_v19 }
 0x409   : > { %2108 = vmatprep.subr.bf16.mxu1 %v3403_v50 }
 0x40a   : > { %2078 = vmatpush1.bf16.msra.mxu0 %v3408_v52 }
 0x40b   : > { %2112 = vmatprep.subr.bf16.mxu0 %v3259_v39  ;;  %v994_v39 = vld [vmem:[%s2842_s15 + $0x10] sm:$0xff] }
 0x40c   : > { %2110 = vmatpush1.bf16.msra.mxu1 %v3414_v20 }
 0x40d   : > { %2144 = vmatprep.subr.bf16.mxu1 %v3272_v48 }
 0x4c0   : > { %v1062_v61 = vpop.f32.mrb[0].mxu0 }
 0x4c1   : > { %v1138_v26 = vadd.f32 %v1062_v61, %v992_v37  ;;  %v1064_v29 = vpop.f32.mrb[1].mxu0 }
 0x4c2   : > { %v1139_v54 = vadd.f32 %v1064_v29, %v993_v42  ;;  %v1133_v63 = vpop.f32.mrb[0].mxu1 }
 0x4c3   : > { %v1760_v6 = vmul.f32 -1.442695, %v1138_v26  ;;  %v1135_v9 = vpop.f32.mrb[1].mxu1  ;;  %v1140_v24 = vadd.f32 %v1133_v63, %v994_v39 }
 0x4c4   : > { %v1761_v13 = vmul.f32 -1.442695, %v1139_v54  ;;  %v1141_v17 = vadd.f32 %v1135_v9, %v995_v16 }
 0x4c5   : > { %2329 = vpow2.f32 %v1760_v6  ;;  %v1774_v6 = vld [vmem:[%s2842_s15 + $0x58] sm:$0xff] }
 0x4c6   : > { %2331 = vpow2.f32 %v1761_v13  ;;  %v1762_v23 = vmul.f32 -1.442695, %v1141_v17  ;;  %v1773_v13 = vld [vmem:[%s2842_s15 + $0x50] sm:$0xff] }
 0x4c8   : > { %2333 = vpow2.f32 %v1762_v23 }
 0x4c9   : > { %2335 = vtanh.f32 %v1140_v24 }
 0x4cf   : > { %v2330_v30 = vpop.eup %2329 }
 0x4d0   : > { %v2332_v48 = vpop.eup %2331  ;;  %v1145_v31 = vadd.f32 1.0, %v2330_v30 }
 0x4d1   : > { %v1151_v33 = vadd.f32 1.0, %v2332_v48 }
 0x4d2   : > { %2337 = vrcp.f32 %v1145_v31  ;;  %v2334_v38 = vpop.eup %2333 }
 0x4d3   : > { %2339 = vrcp.f32 %v1151_v33  ;;  %v2336_v44 = vpop.eup %2335  ;;  %v1158_v7 = vadd.f32 1.0, %v2334_v38 }
 0x4d5   : > { %2341 = vrcp.f32 %v1158_v7 }
 0x4dc   : > { %v2338_v3 = vpop.eup %2337 }
 0x4dd   : > { %v2340_v4 = vpop.eup %2339  ;;  %v1162_v10 = vmul.f32 %v2338_v3, %v2336_v44 }
 0x4de   : > { %v1161_v12 = vmul.f32 %v2340_v4, %v991_v47 }
 0x4df   : > { %v2342_v58 = vpop.eup %2341 }
 0x4e0   : > { %v3459_v21 = vadd.f32 %v1162_v10, %v1161_v12 }
 0x4e2   : > { %2343 = vtanh.f32 %v3459_v21 }
 0x4ec   : > { %v2344_v0 = vpop.eup %2343 }
 0x4ed   : > { %v1165_v51 = vmul.f32 %v2344_v0, %v2342_v58 }
 0x4ef   : > { %1166 = vst [vmem:[%s2853_s13] sm:$0xff] %v1165_v51  ;;  %1241 = vmatmul.mubr.f32.vlgmr.msra.gmra.mrb[2].mxu0 %v1165_v51  ;;  %1312 = vmatmul.mubr.f32.vlgmr.msra.gmra.mrb[2].mxu1 %v1165_v51 }
 0x4f0   : > { %2114 = vmatpush1.bf16.msra.mxu0 %v3263_v41  ;;  %2146 = vmatpush1.bf16.msra.mxu1 %v3276_v53  ;;  %v1763_v41 = vld [vmem:[%s2842_s15 + $0x20] sm:$0xff] }
 0x4f1   : > { %2116 = vmatprep.subr.bf16.mxu0 %v3267_v46  ;;  %2148 = vmatprep.subr.bf16.mxu1 %v3285_v11  ;;  %v1764_v46 = vld [vmem:[%s2842_s15 + $0x28] sm:$0xff] }
 0x4f2   : > { %1421 = vmatprep.mubr.f32.mxu0 %v2613_v60  ;;  %1492 = vmatprep.mubr.f32.mxu1 %v2613_v60 }
 0x4f4   : > { %2118 = vmatpush1.bf16.msra.mxu0 %v3281_v2  ;;  %2150 = vmatpush1.bf16.msra.mxu1 %v3296_v56 }
 0x4f5   : > { %2120 = vmatprep.subr.bf16.mxu0 %v3290_v5  ;;  %2152 = vmatprep.subr.bf16.mxu1 %v3301_v14 }
 0x4f8   : > { %2122 = vmatpush1.bf16.msra.mxu0 %v3307_v62  ;;  %2154 = vmatpush1.bf16.msra.mxu1 %v3318_v57 }
 0x4f9   : > { %2124 = vmatprep.subr.bf16.mxu0 %v3312_v1  ;;  %2156 = vmatprep.subr.bf16.mxu1 %v3323_v18  ;;  %v1766_v1 = vld [vmem:[%s2842_s15 + $0x38] sm:$0xff]  ;;  %v1765_v18 = vld [vmem:[%s2842_s15 + $0x30] sm:$0xff] }
 0x4fc   : > { %2126 = vmatpush1.bf16.msra.mxu0 %v3328_v27  ;;  %2158 = vmatpush1.bf16.msra.mxu1 %v3338_v36 }
 0x4fd   : > { %2128 = vmatprep.subr.bf16.mxu0 %v3333_v43  ;;  %2160 = vmatprep.subr.bf16.mxu1 %v3343_v28 }
 0x500   : > { %2130 = vmatpush1.bf16.msra.mxu0 %v3348_v35  ;;  %2162 = vmatpush1.bf16.msra.mxu1 %v3358_v8 }
 0x501   : > { %2132 = vmatprep.subr.bf16.mxu0 %v3353_v59  ;;  %2164 = vmatprep.subr.bf16.mxu1 %v3363_v15 }
 0x504   : > { %2134 = vmatpush1.bf16.msra.mxu0 %v3368_v22  ;;  %2166 = vmatpush1.bf16.msra.mxu1 %v3378_v32 }
 0x505   : > { %2136 = vmatprep.subr.bf16.mxu0 %v3373_v25  ;;  %2168 = vmatprep.subr.bf16.mxu1 %v3383_v40 }
 0x508   : > { %2138 = vmatpush1.bf16.msra.mxu0 %v3388_v49  ;;  %2170 = vmatpush1.bf16.msra.mxu1 %v3398_v19 }
 0x509   : > { %2140 = vmatprep.subr.bf16.mxu0 %v3393_v55  ;;  %2172 = vmatprep.subr.bf16.mxu1 %v3403_v50 }
 0x50c   : > { %2142 = vmatpush1.bf16.msra.mxu0 %v3408_v52  ;;  %2174 = vmatpush1.bf16.msra.mxu1 %v3414_v20  ;;  %v1772_v20 = vld [vmem:[%s2842_s15 + $0x48] sm:$0xff] }
 0x5c2   : > { %v1242_v53 = vpop.f32.mrb[2].mxu0  ;;  %v1313_v2 = vpop.f32.mrb[2].mxu1 }
 0x5c3   : > { %v1318_v11 = vadd.f32 %v1763_v41, %v1242_v53  ;;  %v1244_v5 = vpop.f32.mrb[3].mxu0  ;;  %v1315_v56 = vpop.f32.mrb[3].mxu1  ;;  %v1320_v43 = vadd.f32 %v1765_v18, %v1313_v2 }
 0x5c4   : > { %v1319_v14 = vadd.f32 %v1764_v46, %v1244_v5  ;;  %v1321_v57 = vadd.f32 %v1766_v1, %v1315_v56 }
 0x5c5   : > { %v1767_v60 = vmul.f32 -1.442695, %v1318_v11 }
 0x5c6   : > { %v1768_v62 = vmul.f32 -1.442695, %v1319_v14  ;;  %v1769_v27 = vmul.f32 -1.442695, %v1321_v57 }
 0x5c7   : > { %2345 = vpow2.f32 %v1767_v60 }
 0x5c8   : > { %2347 = vpow2.f32 %v1768_v62 }
 0x5c9   : > { %2349 = vpow2.f32 %v1769_v27 }
 0x5ca   : > { %2351 = vtanh.f32 %v1320_v43 }
 0x5d1   : > { %v2346_v36 = vpop.eup %2345 }
 0x5d2   : > { %v2348_v28 = vpop.eup %2347  ;;  %v1325_v35 = vadd.f32 1.0, %v2346_v36 }
 0x5d3   : > { %v1331_v59 = vadd.f32 1.0, %v2348_v28  ;;  %v2350_v8 = vpop.eup %2349 }
 0x5d4   : > { %2353 = vrcp.f32 %v1325_v35  ;;  %v2352_v15 = vpop.eup %2351  ;;  %v1338_v40 = vadd.f32 1.0, %v2350_v8 }
 0x5d5   : > { %2355 = vrcp.f32 %v1331_v59 }
 0x5d6   : > { %2357 = vrcp.f32 %v1338_v40 }
 0x5de   : > { %v2354_v22 = vpop.eup %2353 }
 0x5df   : > { %v2356_v25 = vpop.eup %2355  ;;  %v1342_v32 = vmul.f32 %v2354_v22, %v2352_v15 }
 0x5e0   : > { %v1341_v49 = vmul.f32 %v2356_v25, %v3459_v21  ;;  %v2358_v19 = vpop.eup %2357 }
 0x5e2   : > { %v1343_v55 = vadd.f32 %v1342_v32, %v1341_v49 }
 0x5e4   : > { %2359 = vtanh.f32 %v1343_v55 }
 0x5ee   : > { %v2360_v50 = vpop.eup %2359 }
 0x5ef   : > { %v1345_v52 = vmul.f32 %v2360_v50, %v2358_v19 }
 0x5f1   : > { %1770 = vst [vmem:[%s2853_s13 + $0x8] sm:$0xff] %v1345_v52  ;;  %1422 = vmatmul.mubr.f32.vlgmr.msra.gmra.mrb[4].mxu0 %v1345_v52  ;;  %1493 = vmatmul.mubr.f32.vlgmr.msra.gmra.mrb[4].mxu1 %v1345_v52 }
 0x6c4   : > { %v1423_v34 = vpop.f32.mrb[4].mxu0  ;;  %v1494_v37 = vpop.f32.mrb[4].mxu1 }
 0x6c5   : > { %v1499_v42 = vadd.f32 %v1771_v45, %v1423_v34  ;;  %v1425_v61 = vpop.f32.mrb[5].mxu0  ;;  %v1496_v26 = vpop.f32.mrb[5].mxu1  ;;  %v1501_v17 = vadd.f32 %v1773_v13, %v1494_v37 }
 0x6c6   : > { %v1500_v29 = vadd.f32 %v1772_v20, %v1425_v61  ;;  %v1502_v9 = vadd.f32 %v1774_v6, %v1496_v26 }
 0x6c7   : > { %v1775_v54 = vmul.f32 -1.442695, %v1499_v42 }
 0x6c8   : > { %v1776_v63 = vmul.f32 -1.442695, %v1500_v29  ;;  %v1777_v16 = vmul.f32 -1.442695, %v1502_v9 }
 0x6c9   : > { %2361 = vpow2.f32 %v1775_v54 }
 0x6ca   : > { %2363 = vpow2.f32 %v1776_v63 }
 0x6cb   : > { %2365 = vpow2.f32 %v1777_v16 }
 0x6cc   : > { %2367 = vtanh.f32 %v1501_v17 }
 0x6d3   : > { %v2362_v39 = vpop.eup %2361 }
 0x6d4   : > { %v2364_v23 = vpop.eup %2363  ;;  %v1506_v24 = vadd.f32 1.0, %v2362_v39 }
 0x6d5   : > { %v1512_v30 = vadd.f32 1.0, %v2364_v23  ;;  %v2366_v48 = vpop.eup %2365 }
 0x6d6   : > { %2369 = vrcp.f32 %v1506_v24  ;;  %v2368_v31 = vpop.eup %2367  ;;  %v1519_v47 = vadd.f32 1.0, %v2366_v48 }
 0x6d7   : > { %2371 = vrcp.f32 %v1512_v30 }
 0x6d8   : > { %2373 = vrcp.f32 %v1519_v47 }
 0x6e0   : > { %v2370_v33 = vpop.eup %2369 }
 0x6e1   : > { %v2372_v38 = vpop.eup %2371  ;;  %v1523_v44 = vmul.f32 %v2370_v33, %v2368_v31 }
 0x6e2   : > { %v1522_v3 = vmul.f32 %v2372_v38, %v1343_v55  ;;  %v2374_v4 = vpop.eup %2373 }
 0x6e4   : > { %v1524_v7 = vadd.f32 %v1523_v44, %v1522_v3 }
 0x6e6   : > { %2375 = vtanh.f32 %v1524_v7  ;;  %1530 = vst [vmem:[#allocation3] sm:$0xff] %v1524_v7 }
 0x6f0   : > { %v2376_v10 = vpop.eup %2375 }
 0x6f1   : > { %v1526_v12 = vmul.f32 %v2376_v10, %v2374_v4 }
 0x6f3   : > { %1778 = vst [vmem:[%s2853_s13 + $0x10] sm:$0xff] %v1526_v12  ;;  %1529 = vst [vmem:[#allocation2] sm:$0xff] %v1526_v12 }
 0x6f4 PF: > { %1533 = sbr.rel (%p1739_p4) target bundleno = 1788 (0x6fc), region = 64  ;;  %v1536_v58 = vld [vmem:[#allocation3] sm:$0xff] (!%p1739_p4) }
 0x6f5   : > { %1537 = vst [vmem:[#allocation13] sm:$0xff] (!%p1739_p4), %v1536_v58 }
 0x6fa   : > { %v1534_v21 = vld [vmem:[#allocation2] sm:$0xff] (!%p1739_p4) }
 0x6fb   : > { %1535 = vst [vmem:[#allocation11] sm:$0xff] %v1534_v21 }
 0x6fc PF: > { %s2614_s14 = smov [#allocation11]   ;;  %s1789_s19 = smul.u32 384, %s2597_s24 }
 0x6fd   : > { %s1569_s11 = sshll.u32 %s2614_s14, 4  ;;  %p3788_p9 = scmp.ne.s32.totalorder %s3667_s30, 0  ;;  %s1570_s11 = int_to_ptr.vmem [resolvable:$true] %s1569_s11 }
 0x6fe   : > { %s2463_s15 = scalar_lea.vmem %s1570_s11, 128  ;;  %p2470_p3 = scmp.lt.s32.totalorder %s1570_s11, %s1570_s11 }
 0x6ff   : > { %p2464_p5 = scmp.ne.s32.totalorder %s1570_s11, %s2463_s15  ;;  %p2471_p7 = scmp.lt.s32.totalorder %s2463_s15, %s2463_s15 }
 0x701   : > { %p2465_p12 = pnand %p2464_p5, %p3788_p9  ;;  %p2472_p10 = por %p2471_p7, %p2470_p3 }
 0x703   : > { %p2466_p1 = pneg %p2465_p12 }
 0x705   : > { %p2473_p2 = pnand %p2472_p10, %p2466_p1 }
 0x707   : > { %2476 = shalt.err (!%p2473_p2)
}
 0x708   : > { %s2477_s8 = scalar_lea.hbm %s3608_s5, 128 }
 0x709   : > { %p2478_p4 = scmp.ne.s32.totalorder %s3608_s5, %s2477_s8  ;;  %p2483_p13 = scmp.lt.u32.totalorder %s2477_s8, %s3608_s5 }
 0x70b   : > { %p2479_p6 = pnand %p2478_p4, %p3788_p9 }
 0x70d   : > { %p2480_p8 = pneg %p2479_p6 }
 0x70f   : > { %p2485_p0 = pnand %p2483_p13, %p2480_p8 }
 0x711   : > { %2488 = shalt.err (!%p2485_p0)
}
 0x712   : > { %2190 = dma.vmem_to_hbm [thread:$0]  (%p3788_p9), %s1570_s11, 128, %s3608_s5, [#allocation12]  }
 0x713   : > { %s3530_s15 = scalar_lea.hbm %s3607_s4, %s1789_s19  ;;  %s1553_s9 = sshll.u32 %s2853_s13, 4  ;;  %s3533_s9 = int_to_ptr.vmem [resolvable:$true] %s1553_s9 }
 0x714   : > { %s1539_s20 = scalar_lea.sflag [#allocation6], %s2838_s28  ;;  %s2489_s8 = scalar_lea.vmem %s3533_s9, 384 }
 0x715   : > { %p2490_p5 = scmp.ne.s32.totalorder %s3533_s9, %s2489_s8  ;;  %s2615_s29 = smov [#allocation10]  }
 0x716   : > { %s2493_s7 = sshll.u32 %s2615_s29, 4  ;;  %s2494_s7 = int_to_ptr.vmem [resolvable:$false] %s2493_s7 }
 0x717   : > { %p2491_p12 = pnand %p2490_p5, %p2782_p11  ;;  %s2495_s11 = scalar_lea.vmem %s2494_s7, 768 }
 0x718   : > { %p2496_p3 = scmp.lt.s32.totalorder %s3533_s9, %s2494_s7  ;;  %p2497_p7 = scmp.lt.s32.totalorder %s2495_s11, %s2489_s8 }
 0x719   : > { %p2492_p1 = pneg %p2491_p12 }
 0x71a   : > { %p2498_p10 = por %p2497_p7, %p2496_p3 }
 0x71c   : > { %p2499_p2 = pnand %p2498_p10, %p2492_p1 }
 0x71e   : > { %2502 = shalt.err (!%p2499_p2)
}
 0x71f   : > { %s2503_s13 = scalar_lea.hbm %s3530_s15, 384  ;;  %s2507_s18 = scalar_lea.hbm %s3607_s4, 1152 }
 0x720   : > { %p2504_p4 = scmp.ne.s32.totalorder %s3530_s15, %s2503_s13  ;;  %p2508_p13 = scmp.lt.u32.totalorder %s3530_s15, %s3607_s4 }
 0x721   : > { %p2509_p0 = scmp.lt.u32.totalorder %s2507_s18, %s2503_s13  ;;  %p2511_p12 = scmp.lt.u32.totalorder %s2503_s13, %s3530_s15 }
 0x722   : > { %p2505_p6 = pnand %p2504_p4, %p2782_p11 }
 0x723   : > { %p2510_p5 = por %p2509_p0, %p2508_p13 }
 0x724   : > { %p2506_p8 = pneg %p2505_p6 }
 0x725   : > { %p2512_p1 = por %p2511_p12, %p2510_p5 }
 0x727   : > { %p2513_p3 = pnand %p2512_p1, %p2506_p8 }
 0x729   : > { %2516 = shalt.err (!%p2513_p3)
}
 0x72a   : > { %s2616_s1 = smov 128   ;;  %s2617_s14 = smov 8  }
 0x72b   : > { %2188 = dma.vmem_to_hbm [thread:$0]  (%p2782_p11), %s3533_s9, 384, %s3530_s15, %s1539_s20, %s2616_s1, %s2616_s1, %s2617_s14  }
 0x72c   : > { %s2618_s8 = smov [#allocation13]  }
 0x72d   : > { %s1582_s29 = sshll.u32 %s2618_s8, 4  ;;  %s1583_s29 = int_to_ptr.vmem [resolvable:$true] %s1582_s29 }
 0x72e   : > { %s2517_s7 = scalar_lea.vmem %s1583_s29, 128  ;;  %p2524_p4 = scmp.lt.s32.totalorder %s1583_s29, %s1583_s29 }
 0x72f   : > { %p2518_p7 = scmp.ne.s32.totalorder %s1583_s29, %s2517_s7  ;;  %p2525_p6 = scmp.lt.s32.totalorder %s2517_s7, %s2517_s7 }
 0x731   : > { %p2519_p10 = pnand %p2518_p7, %p3788_p9  ;;  %p2526_p8 = por %p2525_p6, %p2524_p4 }
 0x733   : > { %p2520_p2 = pneg %p2519_p10 }
 0x735   : > { %p2527_p13 = pnand %p2526_p8, %p2520_p2 }
 0x737   : > { %2530 = shalt.err (!%p2527_p13)
}
 0x738   : > { %s2531_s12 = scalar_lea.hbm %s3609_s6, 128 }
 0x739   : > { %p2532_p11 = scmp.ne.s32.totalorder %s3609_s6, %s2531_s12  ;;  %p2537_p12 = scmp.lt.u32.totalorder %s2531_s12, %s3609_s6 }
 0x73b   : > { %p2533_p0 = pnand %p2532_p11, %p3788_p9 }
 0x73d   : > { %p2534_p5 = pneg %p2533_p0 }
 0x73f   : > { %p2539_p1 = pnand %p2537_p12, %p2534_p5 }
 0x741   : > { %2542 = shalt.err (!%p2539_p1)
}
 0x742   : > { %2192 = dma.vmem_to_hbm [thread:$0]  (%p3788_p9), %s1583_s29, 128, %s3609_s6, [#allocation12]  }
 0x743   : > { %2576 = dma.done.wait (%p3788_p9), [#allocation12], 256  }
 0x744   : > { %2578 = vsyncadd (%p3788_p9), [#allocation12], 4294967040 }
 0x745 PF: > { %s3789_s18 = sld [smem:[#allocation18_spill]]  ;;  %p2222_p3 = scmp.ge.s32.totalorder %s2605_s26, 2 }
 0x746   : > { %s1602_s17 = sand.u32 1, %s2585_s21  }
 0x747   : > { %s1603_s10 = scalar_lea.sflag [#allocation6], %s1602_s17 }
 0x74b   : > { %p3790_p7 = scmp.ne.s32.totalorder %s3789_s18, 0 }
 0x74d   : > { %p2210_p10 = pnand %p2222_p3, %p3790_p7 }
 0x74f   : > { %2580 = dma.done.wait (!%p2210_p10), %s1603_s10, 384  }
 0x750   : > { %2582 = vsyncadd (!%p2210_p10), %s1603_s10, 4294966912  ;;  %s25_s26 = sadd.s32 1, %s2605_s26   ;;  %s3791_s21 = smov %s2589_s22 }
 0x751   : > { %p22_p2 = scmp.ge.s32.totalorder %s25_s26, 5   ;;  %s3792_s22 = smov %s2593_s23 }
 0x752   : > { %s3793_s23 = smov %s2794_s27  ;;  %s3794_s24 = smov %s2601_s25 }
 0x753   : > { %s3795_s25 = smov %s3797_s16  ;;  %24 = sbr.rel (!%p22_p2) target bundleno = 10 (0xa), region = 135 }
 0x75a   :  { %1608 = vsyncpa [#allocation5], 1 }
 0x75b   :  { %1610 = vsyncpa [#allocation5 + $0x1], 1 }
 0x75c   :  { %1611 = vsyncpa [#allocation8], 1 }
 0x75d   :  { %1612 = vsyncpa [#allocation6], 1 }
 0x75e   :  { %1614 = vsyncpa [#allocation6 + $0x1], 1 }
 0x75f   :  { %1615 = vsyncpa [#allocation12], 1 }

</bundles_post_ra>
